<compile_context>
chip_gen: v5e
topology: v5e:2x2
jax: 0.10.0
libtpu: 0.0.40
codegen_flags: <defaults>
</compile_context>

<pallas_src>
import math

import jax
import jax.numpy as jnp
from jax.experimental import pallas as pl
from jax.experimental.pallas import tpu as pltpu

# ---------------- synthetic "bert-base-chinese"-style hyperparams -----------
B = 2            # batch
S = 16           # sequence length (max_length)
H = 128          # hidden size (stand-in for 768)
NH = 2           # attention heads (stand-in for 12)
HD = H // NH     # head dim
I = 4 * H        # intermediate (FFN) size
V = 512          # vocab size
L = 2            # num_layers
LN_EPS = 1e-12   # BERT LayerNorm eps
PAD_TOKEN_ID = 0
M = B * S        # batch-folded matmul M dimension


# ------------------------------- helpers ------------------------------------
def _ln(x, g, b):
    mu = jnp.mean(x, axis=-1, keepdims=True)
    var = jnp.mean(jnp.square(x - mu), axis=-1, keepdims=True)
    return (x - mu) * jax.lax.rsqrt(var + LN_EPS) * g + b


def _gelu(x):
    # TODO(synk): HF BERT uses exact erf-GELU; tanh-approximate GELU is used
    # here (erf lowering inside Mosaic is not guaranteed).
    c = math.sqrt(2.0 / math.pi)
    return 0.5 * x * (1.0 + jnp.tanh(c * (x + 0.044715 * x * x * x)))


# --------------------------- fused Pallas kernel ----------------------------
def fused_bert_kernel(x_ref, mb_ref, embln_ref,
                      wqkv_ref, wo_ref, w1_ref, w2_ref,
                      vecs_ref, b1_ref, predw_ref, predb_ref,
                      out_ref):
    """Entire BERT forward on a (B*S, H) activation slab, fully VMEM-resident.

    vecs_ref rows (per layer, packed to cut DMA descriptor count):
      0 bq (pre-scaled by 1/sqrt(HD)), 1 bk, 2 bv, 3 bo, 4 b2,
      5 ln1_g, 6 ln1_b, 7 ln2_g, 8 ln2_b
    """
    # embedding LayerNorm (f32 stats)
    h = _ln(x_ref[...], embln_ref[0:1], embln_ref[1:2])            # (M, H) f32

    # NOTE: static unroll is fine at L=2; convert to a grid axis / fori_loop
    # with per-layer weight streaming when L grows (see scaling TODOs above).
    for l in range(L):
        vecs = vecs_ref[l]                                         # (9, H) f32

        # fused QKV projection: one (M, H) x (H, 3H) bf16 matmul, f32 accum.
        # The 1/sqrt(HD) attention scale is already folded into the Q columns.
        qkv = jnp.dot(h.astype(jnp.bfloat16), wqkv_ref[l],
                      preferred_element_type=jnp.float32)          # (M, 3H)
        q = qkv[:, 0 * H:1 * H] + vecs[0:1]
        k = qkv[:, 1 * H:2 * H] + vecs[1:2]
        v = qkv[:, 2 * H:3 * H] + vecs[2:3]

        # multi-head attention: static (batch, head) loop; per-head contexts
        # are pure values (no scratch stores), concatenated lane-wise per
        # batch and row-wise across batches, then fed straight into W_o.
        ctx_rows = []
        for b in range(B):
            mb = mb_ref[b]                                         # (S, S)
            rows = slice(b * S, (b + 1) * S)
            head_ctx = []
            for n in range(NH):
                cols = slice(n * HD, (n + 1) * HD)
                qh = q[rows, cols].astype(jnp.bfloat16)            # (S, HD)
                kh = k[rows, cols].astype(jnp.bfloat16)
                vh = v[rows, cols].astype(jnp.bfloat16)
                # bf16 MXU operands, f32 accumulation
                s = jnp.dot(qh, kh.T,
                            preferred_element_type=jnp.float32) + mb
                s = s - jnp.max(s, axis=-1, keepdims=True)
                p = jnp.exp(s)
                # EUP reciprocal instead of a VPU divide (approx ~2^-12 rel
                # error per row; use approx=False for bit-level parity).
                p = p * pl.reciprocal(jnp.sum(p, axis=-1, keepdims=True),
                                      approx=True)
                head_ctx.append(jnp.dot(p.astype(jnp.bfloat16), vh,
                                        preferred_element_type=jnp.float32))
            ctx_rows.append(jnp.concatenate(head_ctx, axis=-1))    # (S, H)
        ctx = jnp.concatenate(ctx_rows, axis=0)                    # (M, H) f32

        attn = jnp.dot(ctx.astype(jnp.bfloat16), wo_ref[l],
                       preferred_element_type=jnp.float32) + vecs[3:4]
        h1 = _ln(h + attn, vecs[5:6], vecs[6:7])

        ff = jnp.dot(h1.astype(jnp.bfloat16), w1_ref[l],
                     preferred_element_type=jnp.float32) + b1_ref[l:l + 1]
        ff = _gelu(ff)
        ff = jnp.dot(ff.astype(jnp.bfloat16), w2_ref[l],
                     preferred_element_type=jnp.float32) + vecs[4:5]
        h = _ln(h1 + ff, vecs[7:8], vecs[8:9])

    # prediction head: (M, H) x (H, V) -> lane-dense (M, V) output slab
    out_ref[...] = (jnp.dot(h.astype(jnp.bfloat16), predw_ref[...],
                            preferred_element_type=jnp.float32)
                    + predb_ref[...])


def fused_bert_forward(x_emb2d, mask_bias, p):
    # Single invocation (no grid): everything — activations, bf16 weights,
    # packed bias/LN vectors — lives in VMEM for the whole forward.
    return pl.pallas_call(
        fused_bert_kernel,
        out_shape=jax.ShapeDtypeStruct((M, V), jnp.float32),
        compiler_params=pltpu.CompilerParams(
            vmem_limit_bytes=32 * 1024 * 1024),
    )(x_emb2d, mask_bias, p['emb_ln'],
      p['wqkv'], p['wo'], p['w1'], p['w2'],
      p['vecs'], p['b1'], p['pred_w'], p['pred_b'])


# ------------------------------ parameters ----------------------------------
def init_params(key):
    keys = iter(jax.random.split(key, 4 + 4 * L))

    def nrm_f32(shape):
        return jax.random.normal(next(keys), shape, jnp.float32) * 0.02

    def nrm(shape, dtype=jnp.float32):
        return nrm_f32(shape).astype(dtype)

    scale = 1.0 / math.sqrt(HD)   # folded into Q weight/bias at init time

    wqkv, wo, w1, w2, vecs, b1 = [], [], [], [], [], []
    for _ in range(L):
        wq = nrm_f32((H, 3 * H))
        wq = wq.at[:, 0:H].multiply(scale)           # fold 1/sqrt(HD) into Q
        wqkv.append(wq.astype(jnp.bfloat16))         # fused Q|K|V projection
        wo.append(nrm((H, H), jnp.bfloat16))
        w1.append(nrm((H, I), jnp.bfloat16))
        w2.append(nrm((I, H), jnp.bfloat16))
        # packed per-layer vectors: bq bk bv bo b2 ln1_g ln1_b ln2_g ln2_b
        vec = jnp.concatenate([
            jnp.zeros((5, H), jnp.float32),
            jnp.ones((1, H), jnp.float32),
            jnp.zeros((1, H), jnp.float32),
            jnp.ones((1, H), jnp.float32),
            jnp.zeros((1, H), jnp.float32),
        ], axis=0)
        vec = vec.at[0].multiply(scale)               # bq gets the same fold
        vecs.append(vec)
        b1.append(jnp.zeros((I,), jnp.float32))

    return {
        'word_emb': nrm((V, H)),
        'pos_emb': nrm((S, H)),
        'type_emb': nrm((2, H)),
        'emb_ln': jnp.concatenate([jnp.ones((1, H), jnp.float32),
                                   jnp.zeros((1, H), jnp.float32)], axis=0),
        'pred_w': nrm((H, V), jnp.bfloat16),
        'pred_b': jnp.zeros((1, V), jnp.float32),
        'wqkv': jnp.stack(wqkv), 'wo': jnp.stack(wo),
        'w1': jnp.stack(w1), 'w2': jnp.stack(w2),
        'vecs': jnp.stack(vecs), 'b1': jnp.stack(b1),
    }


# ------------------------------- forward ------------------------------------
def bert_predictor_forward(params, x_ids, mask, tag=None):
    # _process_mask (mask.dim() == 2 path), exactly mirroring the module:
    # causal tril AND mask.unsqueeze(-1) (the module broadcasts the padding
    # mask over the key axis per query row), then the HF extended-mask bias
    # (1 - m) * finfo.min added to the raw attention scores.
    causal = jnp.tril(jnp.ones((S, S), dtype=bool))
    padding = mask[:, :, None].astype(bool)                        # (B, S, 1)
    attn_mask = jnp.logical_and(causal[None], padding).astype(jnp.float32)
    mask_bias = (1.0 - attn_mask) * jnp.finfo(jnp.float32).min     # (B, S, S)

    # embeddings: word + position + token_type(0)  (gather = glue JAX)
    emb = (params['word_emb'][x_ids]
           + params['pos_emb'][None, :S, :]
           + params['type_emb'][0][None, None, :])
    # TODO(synk): dropout omitted (deterministic / eval-mode forward).

    logits2d = fused_bert_forward(emb.reshape(M, H), mask_bias, params)
    logits = logits2d.reshape(B, S, V)
    # permute(0, 2, 1) kept in plain JAX to preserve the module's (B, V, S)
    # output contract; the kernel itself stores the lane-dense (B*S, V) slab
    # (last dim S=16 inside the kernel would force masked partial stores).
    out = jnp.transpose(logits, (0, 2, 1))

    output = {'out': out}
    # TODO(synk): loss_fn (cross-entropy with ignore_index=pad_token_id) not
    # implemented; the tag path is not exercised here (tag=None).
    return output


# --------------------------------- main -------------------------------------
if __name__ == "__main__":
    key = jax.random.PRNGKey(0)
    pkey, xkey = jax.random.split(key)
    params = init_params(pkey)

    x_ids = jax.random.randint(xkey, (B, S), 1, V, dtype=jnp.int32)
    mask = jnp.ones((B, S), jnp.int32).at[1, 12:].set(0)  # pad tail of seq 1

    out = bert_predictor_forward(params, x_ids, mask)
    jax.block_until_ready(out['out'])
    assert out['out'].shape == (B, V, S)
    assert out['out'].dtype == jnp.float32
    print("KERNEL_OK")
</pallas_src>

<mosaic_0001>
module attributes {stable_mosaic.version = 11 : i64} {
  func.func @fused_bert_kernel(%arg0: memref<32x128xf32, #tpu.memory_space<vmem>>, %arg1: memref<2x16x16xf32, #tpu.memory_space<vmem>>, %arg2: memref<2x128xf32, #tpu.memory_space<vmem>>, %arg3: memref<2x128x384xbf16, #tpu.memory_space<vmem>>, %arg4: memref<2x128x128xbf16, #tpu.memory_space<vmem>>, %arg5: memref<2x128x512xbf16, #tpu.memory_space<vmem>>, %arg6: memref<2x512x128xbf16, #tpu.memory_space<vmem>>, %arg7: memref<2x9x128xf32, #tpu.memory_space<vmem>>, %arg8: memref<2x512xf32, #tpu.memory_space<vmem>>, %arg9: memref<128x512xbf16, #tpu.memory_space<vmem>>, %arg10: memref<1x512xf32, #tpu.memory_space<vmem>>, %arg11: memref<32x512xf32, #tpu.memory_space<vmem>>) attributes {dimension_semantics = [], scalar_prefetch = 0 : i64, scratch_operands = 0 : i64, tpu.core_type = #tpu.core_type<tc>} {
    %c0 = arith.constant 0 : index
    %c0_0 = arith.constant 0 : index
    %0 = vector.load %arg0[%c0, %c0_0] : memref<32x128xf32, #tpu.memory_space<vmem>>, vector<32x128xf32>
    %c0_1 = arith.constant 0 : index
    %c0_2 = arith.constant 0 : index
    %1 = vector.load %arg2[%c0_1, %c0_2] : memref<2x128xf32, #tpu.memory_space<vmem>>, vector<1x128xf32>
    %c1 = arith.constant 1 : index
    %c0_3 = arith.constant 0 : index
    %2 = vector.load %arg2[%c1, %c0_3] : memref<2x128xf32, #tpu.memory_space<vmem>>, vector<1x128xf32>
    %cst = arith.constant dense<0.000000e+00> : vector<32xf32>
    %3 = vector.multi_reduction <add>, %0, %cst [1] : vector<32x128xf32> to vector<32xf32>
    %4 = vector.shape_cast %3 : vector<32xf32> to vector<32x1xf32>
    %cst_4 = arith.constant 1.280000e+02 : f32
    %5 = vector.broadcast %cst_4 : f32 to vector<32x1xf32>
    %6 = arith.divf %4, %5 : vector<32x1xf32>
    %7 = vector.broadcast %6 : vector<32x1xf32> to vector<32x128xf32>
    %8 = arith.subf %0, %7 : vector<32x128xf32>
    %9 = arith.mulf %8, %8 : vector<32x128xf32>
    %cst_5 = arith.constant dense<0.000000e+00> : vector<32xf32>
    %10 = vector.multi_reduction <add>, %9, %cst_5 [1] : vector<32x128xf32> to vector<32xf32>
    %11 = vector.shape_cast %10 : vector<32xf32> to vector<32x1xf32>
    %cst_6 = arith.constant 1.280000e+02 : f32
    %12 = vector.broadcast %cst_6 : f32 to vector<32x1xf32>
    %13 = arith.divf %11, %12 : vector<32x1xf32>
    %14 = vector.broadcast %6 : vector<32x1xf32> to vector<32x128xf32>
    %15 = arith.subf %0, %14 : vector<32x128xf32>
    %cst_7 = arith.constant 9.99999996E-13 : f32
    %16 = vector.broadcast %cst_7 : f32 to vector<32x1xf32>
    %17 = arith.addf %13, %16 : vector<32x1xf32>
    %18 = math.rsqrt %17 : vector<32x1xf32>
    %19 = vector.broadcast %18 : vector<32x1xf32> to vector<32x128xf32>
    %20 = arith.mulf %15, %19 : vector<32x128xf32>
    %21 = vector.broadcast %1 : vector<1x128xf32> to vector<32x128xf32>
    %22 = arith.mulf %20, %21 : vector<32x128xf32>
    %23 = vector.broadcast %2 : vector<1x128xf32> to vector<32x128xf32>
    %24 = arith.addf %22, %23 : vector<32x128xf32>
    %c0_8 = arith.constant 0 : index
    %c0_9 = arith.constant 0 : index
    %c0_10 = arith.constant 0 : index
    %25 = vector.load %arg7[%c0_8, %c0_9, %c0_10] : memref<2x9x128xf32, #tpu.memory_space<vmem>>, vector<1x9x128xf32>
    %26 = vector.shape_cast %25 : vector<1x9x128xf32> to vector<9x128xf32>
    %27 = arith.truncf %24 : vector<32x128xf32> to vector<32x128xbf16>
    %c0_11 = arith.constant 0 : index
    %c0_12 = arith.constant 0 : index
    %c0_13 = arith.constant 0 : index
    %28 = vector.load %arg3[%c0_11, %c0_12, %c0_13] : memref<2x128x384xbf16, #tpu.memory_space<vmem>>, vector<1x128x384xbf16>
    %29 = vector.shape_cast %28 : vector<1x128x384xbf16> to vector<128x384xbf16>
    %cst_14 = arith.constant dense<0.000000e+00> : vector<32x384xf32>
    %30 = tpu.matmul %27, %29, %cst_14 {dimension_numbers = #tpu.dot_dimension_numbers<[1], [0], [0], [1], [0, 0, 1, 1], [], []>} : vector<32x128xbf16>, vector<128x384xbf16>, vector<32x384xf32> -> vector<32x384xf32>
    %31 = vector.extract_strided_slice %30 {offsets = [0, 0], sizes = [32, 128], strides = [1, 1]} : vector<32x384xf32> to vector<32x128xf32>
    %32 = vector.extract_strided_slice %26 {offsets = [0, 0], sizes = [1, 128], strides = [1, 1]} : vector<9x128xf32> to vector<1x128xf32>
    %33 = vector.broadcast %32 : vector<1x128xf32> to vector<32x128xf32>
    %34 = arith.addf %31, %33 : vector<32x128xf32>
    %35 = vector.extract_strided_slice %30 {offsets = [0, 128], sizes = [32, 128], strides = [1, 1]} : vector<32x384xf32> to vector<32x128xf32>
    %36 = vector.extract_strided_slice %26 {offsets = [1, 0], sizes = [1, 128], strides = [1, 1]} : vector<9x128xf32> to vector<1x128xf32>
    %37 = vector.broadcast %36 : vector<1x128xf32> to vector<32x128xf32>
    %38 = arith.addf %35, %37 : vector<32x128xf32>
    %39 = vector.extract_strided_slice %30 {offsets = [0, 256], sizes = [32, 128], strides = [1, 1]} : vector<32x384xf32> to vector<32x128xf32>
    %40 = vector.extract_strided_slice %26 {offsets = [2, 0], sizes = [1, 128], strides = [1, 1]} : vector<9x128xf32> to vector<1x128xf32>
    %41 = vector.broadcast %40 : vector<1x128xf32> to vector<32x128xf32>
    %42 = arith.addf %39, %41 : vector<32x128xf32>
    %c0_15 = arith.constant 0 : index
    %c0_16 = arith.constant 0 : index
    %c0_17 = arith.constant 0 : index
    %43 = vector.load %arg1[%c0_15, %c0_16, %c0_17] : memref<2x16x16xf32, #tpu.memory_space<vmem>>, vector<1x16x16xf32>
    %44 = vector.shape_cast %43 : vector<1x16x16xf32> to vector<16x16xf32>
    %45 = vector.extract_strided_slice %34 {offsets = [0, 0], sizes = [16, 64], strides = [1, 1]} : vector<32x128xf32> to vector<16x64xf32>
    %46 = arith.truncf %45 : vector<16x64xf32> to vector<16x64xbf16>
    %47 = vector.extract_strided_slice %38 {offsets = [0, 0], sizes = [16, 64], strides = [1, 1]} : vector<32x128xf32> to vector<16x64xf32>
    %48 = arith.truncf %47 : vector<16x64xf32> to vector<16x64xbf16>
    %49 = vector.extract_strided_slice %42 {offsets = [0, 0], sizes = [16, 64], strides = [1, 1]} : vector<32x128xf32> to vector<16x64xf32>
    %50 = arith.truncf %49 : vector<16x64xf32> to vector<16x64xbf16>
    %51 = tpu.transpose %48, [1, 0] : vector<16x64xbf16> -> vector<64x16xbf16>
    %cst_18 = arith.constant dense<0.000000e+00> : vector<16x16xf32>
    %52 = tpu.matmul %46, %51, %cst_18 {dimension_numbers = #tpu.dot_dimension_numbers<[1], [0], [0], [1], [0, 0, 1, 1], [], []>} : vector<16x64xbf16>, vector<64x16xbf16>, vector<16x16xf32> -> vector<16x16xf32>
    %53 = arith.addf %52, %44 : vector<16x16xf32>
    %cst_19 = arith.constant dense<0xFF800000> : vector<16xf32>
    %54 = vector.multi_reduction <maximumf>, %53, %cst_19 [1] : vector<16x16xf32> to vector<16xf32>
    %55 = vector.shape_cast %54 : vector<16xf32> to vector<16x1xf32>
    %56 = vector.broadcast %55 : vector<16x1xf32> to vector<16x16xf32>
    %57 = arith.subf %53, %56 : vector<16x16xf32>
    %58 = math.exp %57 : vector<16x16xf32>
    %cst_20 = arith.constant dense<0.000000e+00> : vector<16xf32>
    %59 = vector.multi_reduction <add>, %58, %cst_20 [1] : vector<16x16xf32> to vector<16xf32>
    %60 = vector.shape_cast %59 : vector<16xf32> to vector<16x1xf32>
    %61 = tpu.reciprocal %60 {approx = true} : vector<16x1xf32> -> vector<16x1xf32>
    %62 = vector.broadcast %61 : vector<16x1xf32> to vector<16x16xf32>
    %63 = arith.mulf %58, %62 : vector<16x16xf32>
    %64 = arith.truncf %63 : vector<16x16xf32> to vector<16x16xbf16>
    %cst_21 = arith.constant dense<0.000000e+00> : vector<16x64xf32>
    %65 = tpu.matmul %64, %50, %cst_21 {dimension_numbers = #tpu.dot_dimension_numbers<[1], [0], [0], [1], [0, 0, 1, 1], [], []>} : vector<16x16xbf16>, vector<16x64xbf16>, vector<16x64xf32> -> vector<16x64xf32>
    %66 = vector.extract_strided_slice %34 {offsets = [0, 64], sizes = [16, 64], strides = [1, 1]} : vector<32x128xf32> to vector<16x64xf32>
    %67 = arith.truncf %66 : vector<16x64xf32> to vector<16x64xbf16>
    %68 = vector.extract_strided_slice %38 {offsets = [0, 64], sizes = [16, 64], strides = [1, 1]} : vector<32x128xf32> to vector<16x64xf32>
    %69 = arith.truncf %68 : vector<16x64xf32> to vector<16x64xbf16>
    %70 = vector.extract_strided_slice %42 {offsets = [0, 64], sizes = [16, 64], strides = [1, 1]} : vector<32x128xf32> to vector<16x64xf32>
    %71 = arith.truncf %70 : vector<16x64xf32> to vector<16x64xbf16>
    %72 = tpu.transpose %69, [1, 0] : vector<16x64xbf16> -> vector<64x16xbf16>
    %cst_22 = arith.constant dense<0.000000e+00> : vector<16x16xf32>
    %73 = tpu.matmul %67, %72, %cst_22 {dimension_numbers = #tpu.dot_dimension_numbers<[1], [0], [0], [1], [0, 0, 1, 1], [], []>} : vector<16x64xbf16>, vector<64x16xbf16>, vector<16x16xf32> -> vector<16x16xf32>
    %74 = arith.addf %73, %44 : vector<16x16xf32>
    %cst_23 = arith.constant dense<0xFF800000> : vector<16xf32>
    %75 = vector.multi_reduction <maximumf>, %74, %cst_23 [1] : vector<16x16xf32> to vector<16xf32>
    %76 = vector.shape_cast %75 : vector<16xf32> to vector<16x1xf32>
    %77 = vector.broadcast %76 : vector<16x1xf32> to vector<16x16xf32>
    %78 = arith.subf %74, %77 : vector<16x16xf32>
    %79 = math.exp %78 : vector<16x16xf32>
    %cst_24 = arith.constant dense<0.000000e+00> : vector<16xf32>
    %80 = vector.multi_reduction <add>, %79, %cst_24 [1] : vector<16x16xf32> to vector<16xf32>
    %81 = vector.shape_cast %80 : vector<16xf32> to vector<16x1xf32>
    %82 = tpu.reciprocal %81 {approx = true} : vector<16x1xf32> -> vector<16x1xf32>
    %83 = vector.broadcast %82 : vector<16x1xf32> to vector<16x16xf32>
    %84 = arith.mulf %79, %83 : vector<16x16xf32>
    %85 = arith.truncf %84 : vector<16x16xf32> to vector<16x16xbf16>
    %cst_25 = arith.constant dense<0.000000e+00> : vector<16x64xf32>
    %86 = tpu.matmul %85, %71, %cst_25 {dimension_numbers = #tpu.dot_dimension_numbers<[1], [0], [0], [1], [0, 0, 1, 1], [], []>} : vector<16x16xbf16>, vector<16x64xbf16>, vector<16x64xf32> -> vector<16x64xf32>
    %87 = tpu.concatenate %65, %86 in 1 : vector<16x64xf32>, vector<16x64xf32> -> vector<16x128xf32>
    %c1_26 = arith.constant 1 : index
    %c0_27 = arith.constant 0 : index
    %c0_28 = arith.constant 0 : index
    %88 = vector.load %arg1[%c1_26, %c0_27, %c0_28] : memref<2x16x16xf32, #tpu.memory_space<vmem>>, vector<1x16x16xf32>
    %89 = vector.shape_cast %88 : vector<1x16x16xf32> to vector<16x16xf32>
    %90 = vector.extract_strided_slice %34 {offsets = [16, 0], sizes = [16, 64], strides = [1, 1]} : vector<32x128xf32> to vector<16x64xf32>
    %91 = arith.truncf %90 : vector<16x64xf32> to vector<16x64xbf16>
    %92 = vector.extract_strided_slice %38 {offsets = [16, 0], sizes = [16, 64], strides = [1, 1]} : vector<32x128xf32> to vector<16x64xf32>
    %93 = arith.truncf %92 : vector<16x64xf32> to vector<16x64xbf16>
    %94 = vector.extract_strided_slice %42 {offsets = [16, 0], sizes = [16, 64], strides = [1, 1]} : vector<32x128xf32> to vector<16x64xf32>
    %95 = arith.truncf %94 : vector<16x64xf32> to vector<16x64xbf16>
    %96 = tpu.transpose %93, [1, 0] : vector<16x64xbf16> -> vector<64x16xbf16>
    %cst_29 = arith.constant dense<0.000000e+00> : vector<16x16xf32>
    %97 = tpu.matmul %91, %96, %cst_29 {dimension_numbers = #tpu.dot_dimension_numbers<[1], [0], [0], [1], [0, 0, 1, 1], [], []>} : vector<16x64xbf16>, vector<64x16xbf16>, vector<16x16xf32> -> vector<16x16xf32>
    %98 = arith.addf %97, %89 : vector<16x16xf32>
    %cst_30 = arith.constant dense<0xFF800000> : vector<16xf32>
    %99 = vector.multi_reduction <maximumf>, %98, %cst_30 [1] : vector<16x16xf32> to vector<16xf32>
    %100 = vector.shape_cast %99 : vector<16xf32> to vector<16x1xf32>
    %101 = vector.broadcast %100 : vector<16x1xf32> to vector<16x16xf32>
    %102 = arith.subf %98, %101 : vector<16x16xf32>
    %103 = math.exp %102 : vector<16x16xf32>
    %cst_31 = arith.constant dense<0.000000e+00> : vector<16xf32>
    %104 = vector.multi_reduction <add>, %103, %cst_31 [1] : vector<16x16xf32> to vector<16xf32>
    %105 = vector.shape_cast %104 : vector<16xf32> to vector<16x1xf32>
    %106 = tpu.reciprocal %105 {approx = true} : vector<16x1xf32> -> vector<16x1xf32>
    %107 = vector.broadcast %106 : vector<16x1xf32> to vector<16x16xf32>
    %108 = arith.mulf %103, %107 : vector<16x16xf32>
    %109 = arith.truncf %108 : vector<16x16xf32> to vector<16x16xbf16>
    %cst_32 = arith.constant dense<0.000000e+00> : vector<16x64xf32>
    %110 = tpu.matmul %109, %95, %cst_32 {dimension_numbers = #tpu.dot_dimension_numbers<[1], [0], [0], [1], [0, 0, 1, 1], [], []>} : vector<16x16xbf16>, vector<16x64xbf16>, vector<16x64xf32> -> vector<16x64xf32>
    %111 = vector.extract_strided_slice %34 {offsets = [16, 64], sizes = [16, 64], strides = [1, 1]} : vector<32x128xf32> to vector<16x64xf32>
    %112 = arith.truncf %111 : vector<16x64xf32> to vector<16x64xbf16>
    %113 = vector.extract_strided_slice %38 {offsets = [16, 64], sizes = [16, 64], strides = [1, 1]} : vector<32x128xf32> to vector<16x64xf32>
    %114 = arith.truncf %113 : vector<16x64xf32> to vector<16x64xbf16>
    %115 = vector.extract_strided_slice %42 {offsets = [16, 64], sizes = [16, 64], strides = [1, 1]} : vector<32x128xf32> to vector<16x64xf32>
    %116 = arith.truncf %115 : vector<16x64xf32> to vector<16x64xbf16>
    %117 = tpu.transpose %114, [1, 0] : vector<16x64xbf16> -> vector<64x16xbf16>
    %cst_33 = arith.constant dense<0.000000e+00> : vector<16x16xf32>
    %118 = tpu.matmul %112, %117, %cst_33 {dimension_numbers = #tpu.dot_dimension_numbers<[1], [0], [0], [1], [0, 0, 1, 1], [], []>} : vector<16x64xbf16>, vector<64x16xbf16>, vector<16x16xf32> -> vector<16x16xf32>
    %119 = arith.addf %118, %89 : vector<16x16xf32>
    %cst_34 = arith.constant dense<0xFF800000> : vector<16xf32>
    %120 = vector.multi_reduction <maximumf>, %119, %cst_34 [1] : vector<16x16xf32> to vector<16xf32>
    %121 = vector.shape_cast %120 : vector<16xf32> to vector<16x1xf32>
    %122 = vector.broadcast %121 : vector<16x1xf32> to vector<16x16xf32>
    %123 = arith.subf %119, %122 : vector<16x16xf32>
    %124 = math.exp %123 : vector<16x16xf32>
    %cst_35 = arith.constant dense<0.000000e+00> : vector<16xf32>
    %125 = vector.multi_reduction <add>, %124, %cst_35 [1] : vector<16x16xf32> to vector<16xf32>
    %126 = vector.shape_cast %125 : vector<16xf32> to vector<16x1xf32>
    %127 = tpu.reciprocal %126 {approx = true} : vector<16x1xf32> -> vector<16x1xf32>
    %128 = vector.broadcast %127 : vector<16x1xf32> to vector<16x16xf32>
    %129 = arith.mulf %124, %128 : vector<16x16xf32>
    %130 = arith.truncf %129 : vector<16x16xf32> to vector<16x16xbf16>
    %cst_36 = arith.constant dense<0.000000e+00> : vector<16x64xf32>
    %131 = tpu.matmul %130, %116, %cst_36 {dimension_numbers = #tpu.dot_dimension_numbers<[1], [0], [0], [1], [0, 0, 1, 1], [], []>} : vector<16x16xbf16>, vector<16x64xbf16>, vector<16x64xf32> -> vector<16x64xf32>
    %132 = tpu.concatenate %110, %131 in 1 : vector<16x64xf32>, vector<16x64xf32> -> vector<16x128xf32>
    %133 = tpu.concatenate %87, %132 in 0 : vector<16x128xf32>, vector<16x128xf32> -> vector<32x128xf32>
    %134 = arith.truncf %133 : vector<32x128xf32> to vector<32x128xbf16>
    %c0_37 = arith.constant 0 : index
    %c0_38 = arith.constant 0 : index
    %c0_39 = arith.constant 0 : index
    %135 = vector.load %arg4[%c0_37, %c0_38, %c0_39] : memref<2x128x128xbf16, #tpu.memory_space<vmem>>, vector<1x128x128xbf16>
    %136 = vector.shape_cast %135 : vector<1x128x128xbf16> to vector<128x128xbf16>
    %cst_40 = arith.constant dense<0.000000e+00> : vector<32x128xf32>
    %137 = tpu.matmul %134, %136, %cst_40 {dimension_numbers = #tpu.dot_dimension_numbers<[1], [0], [0], [1], [0, 0, 1, 1], [], []>} : vector<32x128xbf16>, vector<128x128xbf16>, vector<32x128xf32> -> vector<32x128xf32>
    %138 = vector.extract_strided_slice %26 {offsets = [3, 0], sizes = [1, 128], strides = [1, 1]} : vector<9x128xf32> to vector<1x128xf32>
    %139 = vector.broadcast %138 : vector<1x128xf32> to vector<32x128xf32>
    %140 = arith.addf %137, %139 : vector<32x128xf32>
    %141 = arith.addf %24, %140 : vector<32x128xf32>
    %142 = vector.extract_strided_slice %26 {offsets = [5, 0], sizes = [1, 128], strides = [1, 1]} : vector<9x128xf32> to vector<1x128xf32>
    %143 = vector.extract_strided_slice %26 {offsets = [6, 0], sizes = [1, 128], strides = [1, 1]} : vector<9x128xf32> to vector<1x128xf32>
    %cst_41 = arith.constant dense<0.000000e+00> : vector<32xf32>
    %144 = vector.multi_reduction <add>, %141, %cst_41 [1] : vector<32x128xf32> to vector<32xf32>
    %145 = vector.shape_cast %144 : vector<32xf32> to vector<32x1xf32>
    %cst_42 = arith.constant 1.280000e+02 : f32
    %146 = vector.broadcast %cst_42 : f32 to vector<32x1xf32>
    %147 = arith.divf %145, %146 : vector<32x1xf32>
    %148 = vector.broadcast %147 : vector<32x1xf32> to vector<32x128xf32>
    %149 = arith.subf %141, %148 : vector<32x128xf32>
    %150 = arith.mulf %149, %149 : vector<32x128xf32>
    %cst_43 = arith.constant dense<0.000000e+00> : vector<32xf32>
    %151 = vector.multi_reduction <add>, %150, %cst_43 [1] : vector<32x128xf32> to vector<32xf32>
    %152 = vector.shape_cast %151 : vector<32xf32> to vector<32x1xf32>
    %cst_44 = arith.constant 1.280000e+02 : f32
    %153 = vector.broadcast %cst_44 : f32 to vector<32x1xf32>
    %154 = arith.divf %152, %153 : vector<32x1xf32>
    %155 = vector.broadcast %147 : vector<32x1xf32> to vector<32x128xf32>
    %156 = arith.subf %141, %155 : vector<32x128xf32>
    %cst_45 = arith.constant 9.99999996E-13 : f32
    %157 = vector.broadcast %cst_45 : f32 to vector<32x1xf32>
    %158 = arith.addf %154, %157 : vector<32x1xf32>
    %159 = math.rsqrt %158 : vector<32x1xf32>
    %160 = vector.broadcast %159 : vector<32x1xf32> to vector<32x128xf32>
    %161 = arith.mulf %156, %160 : vector<32x128xf32>
    %162 = vector.broadcast %142 : vector<1x128xf32> to vector<32x128xf32>
    %163 = arith.mulf %161, %162 : vector<32x128xf32>
    %164 = vector.broadcast %143 : vector<1x128xf32> to vector<32x128xf32>
    %165 = arith.addf %163, %164 : vector<32x128xf32>
    %166 = arith.truncf %165 : vector<32x128xf32> to vector<32x128xbf16>
    %c0_46 = arith.constant 0 : index
    %c0_47 = arith.constant 0 : index
    %c0_48 = arith.constant 0 : index
    %167 = vector.load %arg5[%c0_46, %c0_47, %c0_48] : memref<2x128x512xbf16, #tpu.memory_space<vmem>>, vector<1x128x512xbf16>
    %168 = vector.shape_cast %167 : vector<1x128x512xbf16> to vector<128x512xbf16>
    %cst_49 = arith.constant dense<0.000000e+00> : vector<32x512xf32>
    %169 = tpu.matmul %166, %168, %cst_49 {dimension_numbers = #tpu.dot_dimension_numbers<[1], [0], [0], [1], [0, 0, 1, 1], [], []>} : vector<32x128xbf16>, vector<128x512xbf16>, vector<32x512xf32> -> vector<32x512xf32>
    %c0_50 = arith.constant 0 : index
    %c0_51 = arith.constant 0 : index
    %170 = vector.load %arg8[%c0_50, %c0_51] : memref<2x512xf32, #tpu.memory_space<vmem>>, vector<1x512xf32>
    %171 = vector.broadcast %170 : vector<1x512xf32> to vector<32x512xf32>
    %172 = arith.addf %169, %171 : vector<32x512xf32>
    %cst_52 = arith.constant 5.000000e-01 : f32
    %173 = vector.broadcast %cst_52 : f32 to vector<32x512xf32>
    %174 = arith.mulf %173, %172 : vector<32x512xf32>
    %cst_53 = arith.constant 4.471500e-02 : f32
    %175 = vector.broadcast %cst_53 : f32 to vector<32x512xf32>
    %176 = arith.mulf %175, %172 : vector<32x512xf32>
    %177 = arith.mulf %176, %172 : vector<32x512xf32>
    %178 = arith.mulf %177, %172 : vector<32x512xf32>
    %179 = arith.addf %172, %178 : vector<32x512xf32>
    %cst_54 = arith.constant 0.797884583 : f32
    %180 = vector.broadcast %cst_54 : f32 to vector<32x512xf32>
    %181 = arith.mulf %180, %179 : vector<32x512xf32>
    %182 = math.tanh %181 : vector<32x512xf32>
    %cst_55 = arith.constant 1.000000e+00 : f32
    %183 = vector.broadcast %cst_55 : f32 to vector<32x512xf32>
    %184 = arith.addf %183, %182 : vector<32x512xf32>
    %185 = arith.mulf %174, %184 : vector<32x512xf32>
    %186 = arith.truncf %185 : vector<32x512xf32> to vector<32x512xbf16>
    %c0_56 = arith.constant 0 : index
    %c0_57 = arith.constant 0 : index
    %c0_58 = arith.constant 0 : index
    %187 = vector.load %arg6[%c0_56, %c0_57, %c0_58] : memref<2x512x128xbf16, #tpu.memory_space<vmem>>, vector<1x512x128xbf16>
    %188 = vector.shape_cast %187 : vector<1x512x128xbf16> to vector<512x128xbf16>
    %cst_59 = arith.constant dense<0.000000e+00> : vector<32x128xf32>
    %189 = tpu.matmul %186, %188, %cst_59 {dimension_numbers = #tpu.dot_dimension_numbers<[1], [0], [0], [1], [0, 0, 1, 1], [], []>} : vector<32x512xbf16>, vector<512x128xbf16>, vector<32x128xf32> -> vector<32x128xf32>
    %190 = vector.extract_strided_slice %26 {offsets = [4, 0], sizes = [1, 128], strides = [1, 1]} : vector<9x128xf32> to vector<1x128xf32>
    %191 = vector.broadcast %190 : vector<1x128xf32> to vector<32x128xf32>
    %192 = arith.addf %189, %191 : vector<32x128xf32>
    %193 = arith.addf %165, %192 : vector<32x128xf32>
    %194 = vector.extract_strided_slice %26 {offsets = [7, 0], sizes = [1, 128], strides = [1, 1]} : vector<9x128xf32> to vector<1x128xf32>
    %195 = vector.extract_strided_slice %26 {offsets = [8, 0], sizes = [1, 128], strides = [1, 1]} : vector<9x128xf32> to vector<1x128xf32>
    %cst_60 = arith.constant dense<0.000000e+00> : vector<32xf32>
    %196 = vector.multi_reduction <add>, %193, %cst_60 [1] : vector<32x128xf32> to vector<32xf32>
    %197 = vector.shape_cast %196 : vector<32xf32> to vector<32x1xf32>
    %cst_61 = arith.constant 1.280000e+02 : f32
    %198 = vector.broadcast %cst_61 : f32 to vector<32x1xf32>
    %199 = arith.divf %197, %198 : vector<32x1xf32>
    %200 = vector.broadcast %199 : vector<32x1xf32> to vector<32x128xf32>
    %201 = arith.subf %193, %200 : vector<32x128xf32>
    %202 = arith.mulf %201, %201 : vector<32x128xf32>
    %cst_62 = arith.constant dense<0.000000e+00> : vector<32xf32>
    %203 = vector.multi_reduction <add>, %202, %cst_62 [1] : vector<32x128xf32> to vector<32xf32>
    %204 = vector.shape_cast %203 : vector<32xf32> to vector<32x1xf32>
    %cst_63 = arith.constant 1.280000e+02 : f32
    %205 = vector.broadcast %cst_63 : f32 to vector<32x1xf32>
    %206 = arith.divf %204, %205 : vector<32x1xf32>
    %207 = vector.broadcast %199 : vector<32x1xf32> to vector<32x128xf32>
    %208 = arith.subf %193, %207 : vector<32x128xf32>
    %cst_64 = arith.constant 9.99999996E-13 : f32
    %209 = vector.broadcast %cst_64 : f32 to vector<32x1xf32>
    %210 = arith.addf %206, %209 : vector<32x1xf32>
    %211 = math.rsqrt %210 : vector<32x1xf32>
    %212 = vector.broadcast %211 : vector<32x1xf32> to vector<32x128xf32>
    %213 = arith.mulf %208, %212 : vector<32x128xf32>
    %214 = vector.broadcast %194 : vector<1x128xf32> to vector<32x128xf32>
    %215 = arith.mulf %213, %214 : vector<32x128xf32>
    %216 = vector.broadcast %195 : vector<1x128xf32> to vector<32x128xf32>
    %217 = arith.addf %215, %216 : vector<32x128xf32>
    %c1_65 = arith.constant 1 : index
    %c0_66 = arith.constant 0 : index
    %c0_67 = arith.constant 0 : index
    %218 = vector.load %arg7[%c1_65, %c0_66, %c0_67] : memref<2x9x128xf32, #tpu.memory_space<vmem>>, vector<1x9x128xf32>
    %219 = vector.shape_cast %218 : vector<1x9x128xf32> to vector<9x128xf32>
    %220 = arith.truncf %217 : vector<32x128xf32> to vector<32x128xbf16>
    %c1_68 = arith.constant 1 : index
    %c0_69 = arith.constant 0 : index
    %c0_70 = arith.constant 0 : index
    %221 = vector.load %arg3[%c1_68, %c0_69, %c0_70] : memref<2x128x384xbf16, #tpu.memory_space<vmem>>, vector<1x128x384xbf16>
    %222 = vector.shape_cast %221 : vector<1x128x384xbf16> to vector<128x384xbf16>
    %cst_71 = arith.constant dense<0.000000e+00> : vector<32x384xf32>
    %223 = tpu.matmul %220, %222, %cst_71 {dimension_numbers = #tpu.dot_dimension_numbers<[1], [0], [0], [1], [0, 0, 1, 1], [], []>} : vector<32x128xbf16>, vector<128x384xbf16>, vector<32x384xf32> -> vector<32x384xf32>
    %224 = vector.extract_strided_slice %223 {offsets = [0, 0], sizes = [32, 128], strides = [1, 1]} : vector<32x384xf32> to vector<32x128xf32>
    %225 = vector.extract_strided_slice %219 {offsets = [0, 0], sizes = [1, 128], strides = [1, 1]} : vector<9x128xf32> to vector<1x128xf32>
    %226 = vector.broadcast %225 : vector<1x128xf32> to vector<32x128xf32>
    %227 = arith.addf %224, %226 : vector<32x128xf32>
    %228 = vector.extract_strided_slice %223 {offsets = [0, 128], sizes = [32, 128], strides = [1, 1]} : vector<32x384xf32> to vector<32x128xf32>
    %229 = vector.extract_strided_slice %219 {offsets = [1, 0], sizes = [1, 128], strides = [1, 1]} : vector<9x128xf32> to vector<1x128xf32>
    %230 = vector.broadcast %229 : vector<1x128xf32> to vector<32x128xf32>
    %231 = arith.addf %228, %230 : vector<32x128xf32>
    %232 = vector.extract_strided_slice %223 {offsets = [0, 256], sizes = [32, 128], strides = [1, 1]} : vector<32x384xf32> to vector<32x128xf32>
    %233 = vector.extract_strided_slice %219 {offsets = [2, 0], sizes = [1, 128], strides = [1, 1]} : vector<9x128xf32> to vector<1x128xf32>
    %234 = vector.broadcast %233 : vector<1x128xf32> to vector<32x128xf32>
    %235 = arith.addf %232, %234 : vector<32x128xf32>
    %c0_72 = arith.constant 0 : index
    %c0_73 = arith.constant 0 : index
    %c0_74 = arith.constant 0 : index
    %236 = vector.load %arg1[%c0_72, %c0_73, %c0_74] : memref<2x16x16xf32, #tpu.memory_space<vmem>>, vector<1x16x16xf32>
    %237 = vector.shape_cast %236 : vector<1x16x16xf32> to vector<16x16xf32>
    %238 = vector.extract_strided_slice %227 {offsets = [0, 0], sizes = [16, 64], strides = [1, 1]} : vector<32x128xf32> to vector<16x64xf32>
    %239 = arith.truncf %238 : vector<16x64xf32> to vector<16x64xbf16>
    %240 = vector.extract_strided_slice %231 {offsets = [0, 0], sizes = [16, 64], strides = [1, 1]} : vector<32x128xf32> to vector<16x64xf32>
    %241 = arith.truncf %240 : vector<16x64xf32> to vector<16x64xbf16>
    %242 = vector.extract_strided_slice %235 {offsets = [0, 0], sizes = [16, 64], strides = [1, 1]} : vector<32x128xf32> to vector<16x64xf32>
    %243 = arith.truncf %242 : vector<16x64xf32> to vector<16x64xbf16>
    %244 = tpu.transpose %241, [1, 0] : vector<16x64xbf16> -> vector<64x16xbf16>
    %cst_75 = arith.constant dense<0.000000e+00> : vector<16x16xf32>
    %245 = tpu.matmul %239, %244, %cst_75 {dimension_numbers = #tpu.dot_dimension_numbers<[1], [0], [0], [1], [0, 0, 1, 1], [], []>} : vector<16x64xbf16>, vector<64x16xbf16>, vector<16x16xf32> -> vector<16x16xf32>
    %246 = arith.addf %245, %237 : vector<16x16xf32>
    %cst_76 = arith.constant dense<0xFF800000> : vector<16xf32>
    %247 = vector.multi_reduction <maximumf>, %246, %cst_76 [1] : vector<16x16xf32> to vector<16xf32>
    %248 = vector.shape_cast %247 : vector<16xf32> to vector<16x1xf32>
    %249 = vector.broadcast %248 : vector<16x1xf32> to vector<16x16xf32>
    %250 = arith.subf %246, %249 : vector<16x16xf32>
    %251 = math.exp %250 : vector<16x16xf32>
    %cst_77 = arith.constant dense<0.000000e+00> : vector<16xf32>
    %252 = vector.multi_reduction <add>, %251, %cst_77 [1] : vector<16x16xf32> to vector<16xf32>
    %253 = vector.shape_cast %252 : vector<16xf32> to vector<16x1xf32>
    %254 = tpu.reciprocal %253 {approx = true} : vector<16x1xf32> -> vector<16x1xf32>
    %255 = vector.broadcast %254 : vector<16x1xf32> to vector<16x16xf32>
    %256 = arith.mulf %251, %255 : vector<16x16xf32>
    %257 = arith.truncf %256 : vector<16x16xf32> to vector<16x16xbf16>
    %cst_78 = arith.constant dense<0.000000e+00> : vector<16x64xf32>
    %258 = tpu.matmul %257, %243, %cst_78 {dimension_numbers = #tpu.dot_dimension_numbers<[1], [0], [0], [1], [0, 0, 1, 1], [], []>} : vector<16x16xbf16>, vector<16x64xbf16>, vector<16x64xf32> -> vector<16x64xf32>
    %259 = vector.extract_strided_slice %227 {offsets = [0, 64], sizes = [16, 64], strides = [1, 1]} : vector<32x128xf32> to vector<16x64xf32>
    %260 = arith.truncf %259 : vector<16x64xf32> to vector<16x64xbf16>
    %261 = vector.extract_strided_slice %231 {offsets = [0, 64], sizes = [16, 64], strides = [1, 1]} : vector<32x128xf32> to vector<16x64xf32>
    %262 = arith.truncf %261 : vector<16x64xf32> to vector<16x64xbf16>
    %263 = vector.extract_strided_slice %235 {offsets = [0, 64], sizes = [16, 64], strides = [1, 1]} : vector<32x128xf32> to vector<16x64xf32>
    %264 = arith.truncf %263 : vector<16x64xf32> to vector<16x64xbf16>
    %265 = tpu.transpose %262, [1, 0] : vector<16x64xbf16> -> vector<64x16xbf16>
    %cst_79 = arith.constant dense<0.000000e+00> : vector<16x16xf32>
    %266 = tpu.matmul %260, %265, %cst_79 {dimension_numbers = #tpu.dot_dimension_numbers<[1], [0], [0], [1], [0, 0, 1, 1], [], []>} : vector<16x64xbf16>, vector<64x16xbf16>, vector<16x16xf32> -> vector<16x16xf32>
    %267 = arith.addf %266, %237 : vector<16x16xf32>
    %cst_80 = arith.constant dense<0xFF800000> : vector<16xf32>
    %268 = vector.multi_reduction <maximumf>, %267, %cst_80 [1] : vector<16x16xf32> to vector<16xf32>
    %269 = vector.shape_cast %268 : vector<16xf32> to vector<16x1xf32>
    %270 = vector.broadcast %269 : vector<16x1xf32> to vector<16x16xf32>
    %271 = arith.subf %267, %270 : vector<16x16xf32>
    %272 = math.exp %271 : vector<16x16xf32>
    %cst_81 = arith.constant dense<0.000000e+00> : vector<16xf32>
    %273 = vector.multi_reduction <add>, %272, %cst_81 [1] : vector<16x16xf32> to vector<16xf32>
    %274 = vector.shape_cast %273 : vector<16xf32> to vector<16x1xf32>
    %275 = tpu.reciprocal %274 {approx = true} : vector<16x1xf32> -> vector<16x1xf32>
    %276 = vector.broadcast %275 : vector<16x1xf32> to vector<16x16xf32>
    %277 = arith.mulf %272, %276 : vector<16x16xf32>
    %278 = arith.truncf %277 : vector<16x16xf32> to vector<16x16xbf16>
    %cst_82 = arith.constant dense<0.000000e+00> : vector<16x64xf32>
    %279 = tpu.matmul %278, %264, %cst_82 {dimension_numbers = #tpu.dot_dimension_numbers<[1], [0], [0], [1], [0, 0, 1, 1], [], []>} : vector<16x16xbf16>, vector<16x64xbf16>, vector<16x64xf32> -> vector<16x64xf32>
    %280 = tpu.concatenate %258, %279 in 1 : vector<16x64xf32>, vector<16x64xf32> -> vector<16x128xf32>
    %c1_83 = arith.constant 1 : index
    %c0_84 = arith.constant 0 : index
    %c0_85 = arith.constant 0 : index
    %281 = vector.load %arg1[%c1_83, %c0_84, %c0_85] : memref<2x16x16xf32, #tpu.memory_space<vmem>>, vector<1x16x16xf32>
    %282 = vector.shape_cast %281 : vector<1x16x16xf32> to vector<16x16xf32>
    %283 = vector.extract_strided_slice %227 {offsets = [16, 0], sizes = [16, 64], strides = [1, 1]} : vector<32x128xf32> to vector<16x64xf32>
    %284 = arith.truncf %283 : vector<16x64xf32> to vector<16x64xbf16>
    %285 = vector.extract_strided_slice %231 {offsets = [16, 0], sizes = [16, 64], strides = [1, 1]} : vector<32x128xf32> to vector<16x64xf32>
    %286 = arith.truncf %285 : vector<16x64xf32> to vector<16x64xbf16>
    %287 = vector.extract_strided_slice %235 {offsets = [16, 0], sizes = [16, 64], strides = [1, 1]} : vector<32x128xf32> to vector<16x64xf32>
    %288 = arith.truncf %287 : vector<16x64xf32> to vector<16x64xbf16>
    %289 = tpu.transpose %286, [1, 0] : vector<16x64xbf16> -> vector<64x16xbf16>
    %cst_86 = arith.constant dense<0.000000e+00> : vector<16x16xf32>
    %290 = tpu.matmul %284, %289, %cst_86 {dimension_numbers = #tpu.dot_dimension_numbers<[1], [0], [0], [1], [0, 0, 1, 1], [], []>} : vector<16x64xbf16>, vector<64x16xbf16>, vector<16x16xf32> -> vector<16x16xf32>
    %291 = arith.addf %290, %282 : vector<16x16xf32>
    %cst_87 = arith.constant dense<0xFF800000> : vector<16xf32>
    %292 = vector.multi_reduction <maximumf>, %291, %cst_87 [1] : vector<16x16xf32> to vector<16xf32>
    %293 = vector.shape_cast %292 : vector<16xf32> to vector<16x1xf32>
    %294 = vector.broadcast %293 : vector<16x1xf32> to vector<16x16xf32>
    %295 = arith.subf %291, %294 : vector<16x16xf32>
    %296 = math.exp %295 : vector<16x16xf32>
    %cst_88 = arith.constant dense<0.000000e+00> : vector<16xf32>
    %297 = vector.multi_reduction <add>, %296, %cst_88 [1] : vector<16x16xf32> to vector<16xf32>
    %298 = vector.shape_cast %297 : vector<16xf32> to vector<16x1xf32>
    %299 = tpu.reciprocal %298 {approx = true} : vector<16x1xf32> -> vector<16x1xf32>
    %300 = vector.broadcast %299 : vector<16x1xf32> to vector<16x16xf32>
    %301 = arith.mulf %296, %300 : vector<16x16xf32>
    %302 = arith.truncf %301 : vector<16x16xf32> to vector<16x16xbf16>
    %cst_89 = arith.constant dense<0.000000e+00> : vector<16x64xf32>
    %303 = tpu.matmul %302, %288, %cst_89 {dimension_numbers = #tpu.dot_dimension_numbers<[1], [0], [0], [1], [0, 0, 1, 1], [], []>} : vector<16x16xbf16>, vector<16x64xbf16>, vector<16x64xf32> -> vector<16x64xf32>
    %304 = vector.extract_strided_slice %227 {offsets = [16, 64], sizes = [16, 64], strides = [1, 1]} : vector<32x128xf32> to vector<16x64xf32>
    %305 = arith.truncf %304 : vector<16x64xf32> to vector<16x64xbf16>
    %306 = vector.extract_strided_slice %231 {offsets = [16, 64], sizes = [16, 64], strides = [1, 1]} : vector<32x128xf32> to vector<16x64xf32>
    %307 = arith.truncf %306 : vector<16x64xf32> to vector<16x64xbf16>
    %308 = vector.extract_strided_slice %235 {offsets = [16, 64], sizes = [16, 64], strides = [1, 1]} : vector<32x128xf32> to vector<16x64xf32>
    %309 = arith.truncf %308 : vector<16x64xf32> to vector<16x64xbf16>
    %310 = tpu.transpose %307, [1, 0] : vector<16x64xbf16> -> vector<64x16xbf16>
    %cst_90 = arith.constant dense<0.000000e+00> : vector<16x16xf32>
    %311 = tpu.matmul %305, %310, %cst_90 {dimension_numbers = #tpu.dot_dimension_numbers<[1], [0], [0], [1], [0, 0, 1, 1], [], []>} : vector<16x64xbf16>, vector<64x16xbf16>, vector<16x16xf32> -> vector<16x16xf32>
    %312 = arith.addf %311, %282 : vector<16x16xf32>
    %cst_91 = arith.constant dense<0xFF800000> : vector<16xf32>
    %313 = vector.multi_reduction <maximumf>, %312, %cst_91 [1] : vector<16x16xf32> to vector<16xf32>
    %314 = vector.shape_cast %313 : vector<16xf32> to vector<16x1xf32>
    %315 = vector.broadcast %314 : vector<16x1xf32> to vector<16x16xf32>
    %316 = arith.subf %312, %315 : vector<16x16xf32>
    %317 = math.exp %316 : vector<16x16xf32>
    %cst_92 = arith.constant dense<0.000000e+00> : vector<16xf32>
    %318 = vector.multi_reduction <add>, %317, %cst_92 [1] : vector<16x16xf32> to vector<16xf32>
    %319 = vector.shape_cast %318 : vector<16xf32> to vector<16x1xf32>
    %320 = tpu.reciprocal %319 {approx = true} : vector<16x1xf32> -> vector<16x1xf32>
    %321 = vector.broadcast %320 : vector<16x1xf32> to vector<16x16xf32>
    %322 = arith.mulf %317, %321 : vector<16x16xf32>
    %323 = arith.truncf %322 : vector<16x16xf32> to vector<16x16xbf16>
    %cst_93 = arith.constant dense<0.000000e+00> : vector<16x64xf32>
    %324 = tpu.matmul %323, %309, %cst_93 {dimension_numbers = #tpu.dot_dimension_numbers<[1], [0], [0], [1], [0, 0, 1, 1], [], []>} : vector<16x16xbf16>, vector<16x64xbf16>, vector<16x64xf32> -> vector<16x64xf32>
    %325 = tpu.concatenate %303, %324 in 1 : vector<16x64xf32>, vector<16x64xf32> -> vector<16x128xf32>
    %326 = tpu.concatenate %280, %325 in 0 : vector<16x128xf32>, vector<16x128xf32> -> vector<32x128xf32>
    %327 = arith.truncf %326 : vector<32x128xf32> to vector<32x128xbf16>
    %c1_94 = arith.constant 1 : index
    %c0_95 = arith.constant 0 : index
    %c0_96 = arith.constant 0 : index
    %328 = vector.load %arg4[%c1_94, %c0_95, %c0_96] : memref<2x128x128xbf16, #tpu.memory_space<vmem>>, vector<1x128x128xbf16>
    %329 = vector.shape_cast %328 : vector<1x128x128xbf16> to vector<128x128xbf16>
    %cst_97 = arith.constant dense<0.000000e+00> : vector<32x128xf32>
    %330 = tpu.matmul %327, %329, %cst_97 {dimension_numbers = #tpu.dot_dimension_numbers<[1], [0], [0], [1], [0, 0, 1, 1], [], []>} : vector<32x128xbf16>, vector<128x128xbf16>, vector<32x128xf32> -> vector<32x128xf32>
    %331 = vector.extract_strided_slice %219 {offsets = [3, 0], sizes = [1, 128], strides = [1, 1]} : vector<9x128xf32> to vector<1x128xf32>
    %332 = vector.broadcast %331 : vector<1x128xf32> to vector<32x128xf32>
    %333 = arith.addf %330, %332 : vector<32x128xf32>
    %334 = arith.addf %217, %333 : vector<32x128xf32>
    %335 = vector.extract_strided_slice %219 {offsets = [5, 0], sizes = [1, 128], strides = [1, 1]} : vector<9x128xf32> to vector<1x128xf32>
    %336 = vector.extract_strided_slice %219 {offsets = [6, 0], sizes = [1, 128], strides = [1, 1]} : vector<9x128xf32> to vector<1x128xf32>
    %cst_98 = arith.constant dense<0.000000e+00> : vector<32xf32>
    %337 = vector.multi_reduction <add>, %334, %cst_98 [1] : vector<32x128xf32> to vector<32xf32>
    %338 = vector.shape_cast %337 : vector<32xf32> to vector<32x1xf32>
    %cst_99 = arith.constant 1.280000e+02 : f32
    %339 = vector.broadcast %cst_99 : f32 to vector<32x1xf32>
    %340 = arith.divf %338, %339 : vector<32x1xf32>
    %341 = vector.broadcast %340 : vector<32x1xf32> to vector<32x128xf32>
    %342 = arith.subf %334, %341 : vector<32x128xf32>
    %343 = arith.mulf %342, %342 : vector<32x128xf32>
    %cst_100 = arith.constant dense<0.000000e+00> : vector<32xf32>
    %344 = vector.multi_reduction <add>, %343, %cst_100 [1] : vector<32x128xf32> to vector<32xf32>
    %345 = vector.shape_cast %344 : vector<32xf32> to vector<32x1xf32>
    %cst_101 = arith.constant 1.280000e+02 : f32
    %346 = vector.broadcast %cst_101 : f32 to vector<32x1xf32>
    %347 = arith.divf %345, %346 : vector<32x1xf32>
    %348 = vector.broadcast %340 : vector<32x1xf32> to vector<32x128xf32>
    %349 = arith.subf %334, %348 : vector<32x128xf32>
    %cst_102 = arith.constant 9.99999996E-13 : f32
    %350 = vector.broadcast %cst_102 : f32 to vector<32x1xf32>
    %351 = arith.addf %347, %350 : vector<32x1xf32>
    %352 = math.rsqrt %351 : vector<32x1xf32>
    %353 = vector.broadcast %352 : vector<32x1xf32> to vector<32x128xf32>
    %354 = arith.mulf %349, %353 : vector<32x128xf32>
    %355 = vector.broadcast %335 : vector<1x128xf32> to vector<32x128xf32>
    %356 = arith.mulf %354, %355 : vector<32x128xf32>
    %357 = vector.broadcast %336 : vector<1x128xf32> to vector<32x128xf32>
    %358 = arith.addf %356, %357 : vector<32x128xf32>
    %359 = arith.truncf %358 : vector<32x128xf32> to vector<32x128xbf16>
    %c1_103 = arith.constant 1 : index
    %c0_104 = arith.constant 0 : index
    %c0_105 = arith.constant 0 : index
    %360 = vector.load %arg5[%c1_103, %c0_104, %c0_105] : memref<2x128x512xbf16, #tpu.memory_space<vmem>>, vector<1x128x512xbf16>
    %361 = vector.shape_cast %360 : vector<1x128x512xbf16> to vector<128x512xbf16>
    %cst_106 = arith.constant dense<0.000000e+00> : vector<32x512xf32>
    %362 = tpu.matmul %359, %361, %cst_106 {dimension_numbers = #tpu.dot_dimension_numbers<[1], [0], [0], [1], [0, 0, 1, 1], [], []>} : vector<32x128xbf16>, vector<128x512xbf16>, vector<32x512xf32> -> vector<32x512xf32>
    %c1_107 = arith.constant 1 : index
    %c0_108 = arith.constant 0 : index
    %363 = vector.load %arg8[%c1_107, %c0_108] : memref<2x512xf32, #tpu.memory_space<vmem>>, vector<1x512xf32>
    %364 = vector.broadcast %363 : vector<1x512xf32> to vector<32x512xf32>
    %365 = arith.addf %362, %364 : vector<32x512xf32>
    %cst_109 = arith.constant 5.000000e-01 : f32
    %366 = vector.broadcast %cst_109 : f32 to vector<32x512xf32>
    %367 = arith.mulf %366, %365 : vector<32x512xf32>
    %cst_110 = arith.constant 4.471500e-02 : f32
    %368 = vector.broadcast %cst_110 : f32 to vector<32x512xf32>
    %369 = arith.mulf %368, %365 : vector<32x512xf32>
    %370 = arith.mulf %369, %365 : vector<32x512xf32>
    %371 = arith.mulf %370, %365 : vector<32x512xf32>
    %372 = arith.addf %365, %371 : vector<32x512xf32>
    %cst_111 = arith.constant 0.797884583 : f32
    %373 = vector.broadcast %cst_111 : f32 to vector<32x512xf32>
    %374 = arith.mulf %373, %372 : vector<32x512xf32>
    %375 = math.tanh %374 : vector<32x512xf32>
    %cst_112 = arith.constant 1.000000e+00 : f32
    %376 = vector.broadcast %cst_112 : f32 to vector<32x512xf32>
    %377 = arith.addf %376, %375 : vector<32x512xf32>
    %378 = arith.mulf %367, %377 : vector<32x512xf32>
    %379 = arith.truncf %378 : vector<32x512xf32> to vector<32x512xbf16>
    %c1_113 = arith.constant 1 : index
    %c0_114 = arith.constant 0 : index
    %c0_115 = arith.constant 0 : index
    %380 = vector.load %arg6[%c1_113, %c0_114, %c0_115] : memref<2x512x128xbf16, #tpu.memory_space<vmem>>, vector<1x512x128xbf16>
    %381 = vector.shape_cast %380 : vector<1x512x128xbf16> to vector<512x128xbf16>
    %cst_116 = arith.constant dense<0.000000e+00> : vector<32x128xf32>
    %382 = tpu.matmul %379, %381, %cst_116 {dimension_numbers = #tpu.dot_dimension_numbers<[1], [0], [0], [1], [0, 0, 1, 1], [], []>} : vector<32x512xbf16>, vector<512x128xbf16>, vector<32x128xf32> -> vector<32x128xf32>
    %383 = vector.extract_strided_slice %219 {offsets = [4, 0], sizes = [1, 128], strides = [1, 1]} : vector<9x128xf32> to vector<1x128xf32>
    %384 = vector.broadcast %383 : vector<1x128xf32> to vector<32x128xf32>
    %385 = arith.addf %382, %384 : vector<32x128xf32>
    %386 = arith.addf %358, %385 : vector<32x128xf32>
    %387 = vector.extract_strided_slice %219 {offsets = [7, 0], sizes = [1, 128], strides = [1, 1]} : vector<9x128xf32> to vector<1x128xf32>
    %388 = vector.extract_strided_slice %219 {offsets = [8, 0], sizes = [1, 128], strides = [1, 1]} : vector<9x128xf32> to vector<1x128xf32>
    %cst_117 = arith.constant dense<0.000000e+00> : vector<32xf32>
    %389 = vector.multi_reduction <add>, %386, %cst_117 [1] : vector<32x128xf32> to vector<32xf32>
    %390 = vector.shape_cast %389 : vector<32xf32> to vector<32x1xf32>
    %cst_118 = arith.constant 1.280000e+02 : f32
    %391 = vector.broadcast %cst_118 : f32 to vector<32x1xf32>
    %392 = arith.divf %390, %391 : vector<32x1xf32>
    %393 = vector.broadcast %392 : vector<32x1xf32> to vector<32x128xf32>
    %394 = arith.subf %386, %393 : vector<32x128xf32>
    %395 = arith.mulf %394, %394 : vector<32x128xf32>
    %cst_119 = arith.constant dense<0.000000e+00> : vector<32xf32>
    %396 = vector.multi_reduction <add>, %395, %cst_119 [1] : vector<32x128xf32> to vector<32xf32>
    %397 = vector.shape_cast %396 : vector<32xf32> to vector<32x1xf32>
    %cst_120 = arith.constant 1.280000e+02 : f32
    %398 = vector.broadcast %cst_120 : f32 to vector<32x1xf32>
    %399 = arith.divf %397, %398 : vector<32x1xf32>
    %400 = vector.broadcast %392 : vector<32x1xf32> to vector<32x128xf32>
    %401 = arith.subf %386, %400 : vector<32x128xf32>
    %cst_121 = arith.constant 9.99999996E-13 : f32
    %402 = vector.broadcast %cst_121 : f32 to vector<32x1xf32>
    %403 = arith.addf %399, %402 : vector<32x1xf32>
    %404 = math.rsqrt %403 : vector<32x1xf32>
    %405 = vector.broadcast %404 : vector<32x1xf32> to vector<32x128xf32>
    %406 = arith.mulf %401, %405 : vector<32x128xf32>
    %407 = vector.broadcast %387 : vector<1x128xf32> to vector<32x128xf32>
    %408 = arith.mulf %406, %407 : vector<32x128xf32>
    %409 = vector.broadcast %388 : vector<1x128xf32> to vector<32x128xf32>
    %410 = arith.addf %408, %409 : vector<32x128xf32>
    %411 = arith.truncf %410 : vector<32x128xf32> to vector<32x128xbf16>
    %c0_122 = arith.constant 0 : index
    %c0_123 = arith.constant 0 : index
    %412 = vector.load %arg9[%c0_122, %c0_123] : memref<128x512xbf16, #tpu.memory_space<vmem>>, vector<128x512xbf16>
    %cst_124 = arith.constant dense<0.000000e+00> : vector<32x512xf32>
    %413 = tpu.matmul %411, %412, %cst_124 {dimension_numbers = #tpu.dot_dimension_numbers<[1], [0], [0], [1], [0, 0, 1, 1], [], []>} : vector<32x128xbf16>, vector<128x512xbf16>, vector<32x512xf32> -> vector<32x512xf32>
    %c0_125 = arith.constant 0 : index
    %c0_126 = arith.constant 0 : index
    %414 = vector.load %arg10[%c0_125, %c0_126] : memref<1x512xf32, #tpu.memory_space<vmem>>, vector<1x512xf32>
    %415 = vector.broadcast %414 : vector<1x512xf32> to vector<32x512xf32>
    %416 = arith.addf %413, %415 : vector<32x512xf32>
    %c0_127 = arith.constant 0 : index
    %c0_128 = arith.constant 0 : index
    %417 = vector.load %arg11[%c0_127, %c0_128] : memref<32x512xf32, #tpu.memory_space<vmem>>, vector<32x512xf32>
    tpu.vector_store %arg11[%c0_127, %c0_128], %416 {strides = array<i32>} : memref<32x512xf32, #tpu.memory_space<vmem>>, vector<32x512xf32>,
    return
  }
}

</mosaic_0001>

<bundles_post_ra>
// kernel: tpu_custom_call.1
= control target key start
LH: loop header
LB: loop body
LE: loop exit
PB: predicated region body
PF: predicated region fallthrough
CT: control target
= control target key end

     0   :  { %16 = vsyncpa [#allocation3], 0  ;;  %s5956_s0 = inlined_call_operand.vmem [shape: f32[32,128], index: 0, kind: input, shape index: {}]   ;;  %s5957_s1 = inlined_call_operand.hbm [shape: f32[2,16,16], index: 1, kind: input, shape index: {}]   ;;  %s5958_s2 = inlined_call_operand.vmem [shape: f32[2,128], index: 2, kind: input, shape index: {}]   ;;  %s5959_s3 = inlined_call_operand.hbm [shape: bf16[2,128,384], index: 3, kind: input, shape index: {}]   ;;  %s5960_s4 = inlined_call_operand.hbm [shape: bf16[2,128,128], index: 4, kind: input, shape index: {}]   ;;  %s5961_s5 = inlined_call_operand.hbm [shape: bf16[2,128,512], index: 5, kind: input, shape index: {}]   ;;  %s5962_s6 = inlined_call_operand.hbm [shape: bf16[2,512,128], index: 6, kind: input, shape index: {}]   ;;  %s5963_s7 = inlined_call_operand.vmem [shape: f32[2,9,128], index: 7, kind: input, shape index: {}]   ;;  %s5964_s8 = inlined_call_operand.vmem [shape: f32[2,512], index: 8, kind: input, shape index: {}]   ;;  %s5965_s9 = inlined_call_operand.hbm [shape: bf16[128,512], index: 9, kind: input, shape index: {}]   ;;  %s5966_s10 = inlined_call_operand.vmem [shape: f32[1,512], index: 10, kind: input, shape index: {}]   ;;  %s5967_s11 = inlined_call_operand.hbm [shape: f32[32,512], index: 11, kind: output, shape index: {}]  }
   0x1   :  { %17 = vsyncpa [#allocation6], 0 }
   0x2   :  { %18 = vsyncpa [#allocation9], 0 }
   0x3   :  { %19 = vsyncpa [#allocation12], 0  ;;  %s42_s19 = sshll.u32 %s5959_s3, 4  ;;  %s43_s19 = int_to_ptr.hbm [resolvable:$true] %s42_s19 }
   0x4   :  { %20 = vsyncpa [#allocation4], 0  ;;  %s5225_s20 = smov [#allocation5]   ;;  %s68_s24 = sshll.u32 %s5961_s5, 4  ;;  %s69_s24 = int_to_ptr.hbm [resolvable:$true] %s68_s24 }
   0x5   :  { %s44_s21 = sshll.u32 %s5225_s20, 4  ;;  %s5226_s25 = smov 192   ;;  %s45_s21 = int_to_ptr.vmem [resolvable:$true] %s44_s21 }
   0x6   :  { %s5227_s26 = smov 12   ;;  %s5228_s27 = smov [#allocation8]  }
   0x7   :  { %50 = dma.hbm_to_vmem [thread:$0]  %s43_s19, 6144, %s45_s21, [#allocation6], %s5226_s25, %s5226_s25, %s5227_s26  }
   0x8   :  { %s70_s28 = sshll.u32 %s5228_s27, 4  ;;  %s5229_s29 = smov 256   ;;  %s71_s28 = int_to_ptr.vmem [resolvable:$true] %s70_s28 }
   0x9   :  { %s5230_s30 = smov 16   ;;  %s27_s13 = sshll.u32 %s5957_s1, 4  ;;  %s28_s13 = int_to_ptr.hbm [resolvable:$true] %s27_s13 }
   0xa   :  { %76 = dma.hbm_to_vmem [thread:$0]  %s69_s24, 8192, %s71_s28, [#allocation9], %s5229_s29, %s5229_s29, %s5230_s30  }
   0xb   :  { %s5231_s14 = smov [#allocation2]   ;;  %s55_s17 = sshll.u32 %s5960_s4, 4  ;;  %s56_s17 = int_to_ptr.hbm [resolvable:$true] %s55_s17 }
   0xc   :  { %s29_s5 = sshll.u32 %s5231_s14, 4  ;;  %s5232_s18 = smov 128   ;;  %s30_s5 = int_to_ptr.vmem [resolvable:$true] %s29_s5 }
   0xd   :  { %s5233_s19 = smov 8   ;;  %s5234_s20 = smov [#allocation7]  }
   0xe   :  { %35 = dma.hbm_to_vmem [thread:$0]  %s28_s13, 512, %s30_s5, [#allocation3], %s5232_s18, %s5232_s18, %s5233_s19  }
   0xf   :  { %s57_s21 = sshll.u32 %s5234_s20, 4  ;;  %s5235_s22 = smov 64   ;;  %s58_s21 = int_to_ptr.vmem [resolvable:$true] %s57_s21 }
  0x10   :  { %s5236_s23 = smov 4   ;;  %s81_s25 = sshll.u32 %s5962_s6, 4  ;;  %s82_s25 = int_to_ptr.hbm [resolvable:$true] %s81_s25 }
  0x11   :  { %63 = dma.hbm_to_vmem [thread:$0]  %s56_s17, 2048, %s58_s21, [#allocation6], %s5235_s22, %s5235_s22, %s5236_s23  }
  0x12   :  { %s5237_s26 = smov [#allocation10]   ;;  %s98_s3 = sshll.u32 %s5965_s9, 4  ;;  %s99_s3 = int_to_ptr.hbm [resolvable:$true] %s98_s3 }
  0x13   :  { %s83_s27 = sshll.u32 %s5237_s26, 4  ;;  %s5238_s12 = smov [#allocation11]   ;;  %s84_s27 = int_to_ptr.vmem [resolvable:$true] %s83_s27 }
  0x14   :  { %89 = dma.hbm_to_vmem [thread:$0]  %s82_s25, 8192, %s84_s27, [#allocation9], %s5235_s22, %s5235_s22, %s5236_s23  }
  0x15   :  { %s100_s13 = sshll.u32 %s5238_s12, 4  ;;  %s101_s13 = int_to_ptr.vmem [resolvable:$true] %s100_s13 }
  0x16   :  { %106 = dma.hbm_to_vmem [thread:$0]  %s99_s3, 4096, %s101_s13, [#allocation12], %s5229_s29, %s5229_s29, %s5230_s30  }
  0x17   :  { %5215 = dma.done.wait [#allocation3], 512  }
  0x18   :  { %5216 = vsyncadd [#allocation3], 4294966784 }
  0x19   :  { %5217 = dma.done.wait [#allocation6], 8192  }
  0x1a   :  { %5218 = vsyncadd [#allocation6], 4294959104 }
  0x1b   :  { %5219 = dma.done.wait [#allocation9], 16384  }
  0x1c   :  { %5220 = vsyncadd [#allocation9], 4294950912 }
  0x1d   :  { %5221 = dma.done.wait [#allocation12], 4096  }
  0x1e   :  { %5222 = vsyncadd [#allocation12], 4294963200  ;;  %v134_v0 = vld [vmem:[%s5956_s0] sm:$0xff]  ;;  %v135_v1 = vld [vmem:[%s5956_s0 + $0x8] sm:$0xff]  ;;  %v5239_v2 = vmov 128.0   ;;  %vm478_vm13 = vcmask 523264  }
  0x1f   :  { %140 = vadd.xlane.f32.xlu0 %v134_v0  ;;  %4871 = vrcp.f32 %v5239_v2  ;;  %v5340_v5 = vld [vmem:[%s5956_s0 + $0x10] sm:$0xff]  ;;  %v5346_v7 = vld [vmem:[%s5956_s0 + $0x18] sm:$0xff]  ;;  %v3776_v19 = vld [vmem:[#allocation5 + $0xa8] sm:$0xf]  ;;  %vm499_vm14 = vcmask 130048   ;;  %s3674_s29 = sshll.u32 %s5967_s11, 4  ;;  %s3675_s29 = int_to_ptr.hbm [resolvable:$true] %s3674_s29 }
  0x20   :  { %144 = vadd.xlane.f32.xlu2 %v5340_v5  ;;  %v4627_v20 = vld [vmem:[#allocation5 + $0xb0] sm:$0xf0]  ;;  %v4626_v21 = vld [vmem:[#allocation5 + $0xac] sm:$0xf]  ;;  %v3778_v23 = vld [vmem:[#allocation5 + $0xb4] sm:$0xf0] }
  0x21   :  { %v3777_v22 = vor.u32 %v4627_v20, %v3776_v19  ;;  %v3784_v24 = vld [vmem:[#allocation5 + $0xb0] sm:$0xf]  ;;  %v4628_v25 = vld [vmem:[#allocation5 + $0xb8] sm:$0xf0]  ;;  %v3781_v26 = vor.u32 %v4626_v21, %v3778_v23  ;;  %v4623_v30 = vld [vmem:[#allocation5 + $0x94] sm:$0xf] }
  0x22   :  { %v3785_v27 = vor.u32 %v4628_v25, %v3784_v24  ;;  %v3764_v28 = vld [vmem:[#allocation5 + $0x90] sm:$0xf]  ;;  %v4624_v29 = vld [vmem:[#allocation5 + $0x98] sm:$0xf0]  ;;  %v3766_v32 = vld [vmem:[#allocation5 + $0x9c] sm:$0xf0] }
  0x23   :  { %401 = vmatpush.bf16.msra.mxu0 %v3777_v22  ;;  %420 = vmatpush.bf16.msra.mxu1 %v3781_v26  ;;  %v3765_v31 = vor.u32 %v4624_v29, %v3764_v28  ;;  %v3772_v33 = vld [vmem:[#allocation5 + $0x98] sm:$0xf]  ;;  %v4625_v34 = vld [vmem:[#allocation5 + $0xa0] sm:$0xf0]  ;;  %v3769_v35 = vor.u32 %v4623_v30, %v3766_v32  ;;  %v4620_v39 = vld [vmem:[#allocation5 + $0x7c] sm:$0xf] }
  0x24   :  { %439 = vmatpush.bf16.msra.mxu2 %v3785_v27  ;;  %v3773_v36 = vor.u32 %v4625_v34, %v3772_v33  ;;  %v3752_v37 = vld [vmem:[#allocation5 + $0x78] sm:$0xf]  ;;  %v4621_v38 = vld [vmem:[#allocation5 + $0x80] sm:$0xf0]  ;;  %v3754_v41 = vld [vmem:[#allocation5 + $0x84] sm:$0xf0] }
  0x25   :  { %v4872_v3 = vpop.eup %4871  ;;  %v3753_v40 = vor.u32 %v4621_v38, %v3752_v37  ;;  %v3760_v42 = vld [vmem:[#allocation5 + $0x80] sm:$0xf]  ;;  %v4622_v43 = vld [vmem:[#allocation5 + $0x88] sm:$0xf0]  ;;  %v3757_v44 = vor.u32 %v4620_v39, %v3754_v41  ;;  %v4617_v48 = vld [vmem:[#allocation5 + $0x64] sm:$0xf] }
  0x26   :  { %v149_v4 = vmul.f32 128.0, %v4872_v3  ;;  %vm153_vm0 = vweird.f32 %v4872_v3  ;;  %v3761_v45 = vor.u32 %v4622_v43, %v3760_v42  ;;  %v3740_v46 = vld [vmem:[#allocation5 + $0x60] sm:$0xf]  ;;  %v4618_v47 = vld [vmem:[#allocation5 + $0x68] sm:$0xf0]  ;;  %s5241_s30 = smov 512  }
  0x27   :  { %142 = vadd.xlane.f32.xlu0 %v135_v1  ;;  %402 = vmatpush.bf16.msra.mxu0 %v3765_v31  ;;  %v3741_v49 = vor.u32 %v4618_v47, %v3740_v46  ;;  %v3742_v50 = vld [vmem:[#allocation5 + $0x6c] sm:$0xf0]  ;;  %v3748_v51 = vld [vmem:[#allocation5 + $0x68] sm:$0xf]  ;;  %v4619_v52 = vld [vmem:[#allocation5 + $0x70] sm:$0xf0] }
  0x28   :  { %v150_v6 = vsub.f32 1.0, %v149_v4  ;;  %146 = vadd.xlane.f32.xlu2 %v5346_v7  ;;  %421 = vmatpush.bf16.msra.mxu1 %v3769_v35  ;;  %v3745_v53 = vor.u32 %v4617_v48, %v3742_v50  ;;  %v3749_v54 = vor.u32 %v4619_v52, %v3748_v51  ;;  %v3728_v55 = vld [vmem:[#allocation5 + $0x48] sm:$0xf]  ;;  %v4615_v56 = vld [vmem:[#allocation5 + $0x50] sm:$0xf0]  ;;  %s5242_s15 = smov 32  }
  0x29   :  { %440 = vmatpush.bf16.msra.mxu2 %v3773_v36  ;;  %v4614_v57 = vld [vmem:[#allocation5 + $0x4c] sm:$0xf]  ;;  %v3729_v58 = vor.u32 %v4615_v56, %v3728_v55  ;;  %v3730_v59 = vld [vmem:[#allocation5 + $0x54] sm:$0xf0]  ;;  %v3736_v60 = vld [vmem:[#allocation5 + $0x50] sm:$0xf] }
  0x2a   :  { %v151_v8 = vmul.f32 %v4872_v3, %v150_v6  ;;  %v4616_v61 = vld [vmem:[#allocation5 + $0x58] sm:$0xf0]  ;;  %v3733_v62 = vor.u32 %v4614_v57, %v3730_v59  ;;  %v4611_v2 = vld [vmem:[#allocation5 + $0x34] sm:$0xf]  ;;  %v3718_v4 = vld [vmem:[#allocation5 + $0x3c] sm:$0xf0] }
  0x2b   :  { %403 = vmatpush.bf16.msra.mxu0 %v3753_v40  ;;  %v3737_v63 = vor.u32 %v4616_v61, %v3736_v60  ;;  %v3724_v6 = vld [vmem:[#allocation5 + $0x38] sm:$0xf]  ;;  %v3712_v19 = vld [vmem:[#allocation5 + $0x20] sm:$0xf]  ;;  %v4610_v20 = vld [vmem:[#allocation5 + $0x28] sm:$0xf0] }
  0x2c   :  { %v152_v9 = vadd.f32 %v4872_v3, %v151_v8  ;;  %422 = vmatpush.bf16.msra.mxu1 %v3757_v44  ;;  %v4613_v8 = vld [vmem:[#allocation5 + $0x40] sm:$0xf0]  ;;  %v3713_v22 = vor.u32 %v4610_v20, %v3712_v19  ;;  %v3692_v23 = vld [vmem:[#allocation5] sm:$0xf]  ;;  %v4606_v24 = vld [vmem:[#allocation5 + $0x8] sm:$0xf0] }
  0x2d   :  { %441 = vmatpush.bf16.msra.mxu2 %v3761_v45  ;;  %v4605_v25 = vld [vmem:[#allocation5 + $0x4] sm:$0xf]  ;;  %v3693_v27 = vor.u32 %v4606_v24, %v3692_v23  ;;  %v3694_v28 = vld [vmem:[#allocation5 + $0xc] sm:$0xf0]  ;;  %v3700_v29 = vld [vmem:[#allocation5 + $0x8] sm:$0xf] }
  0x2e   :  { %v5349_v10 = vsel %vm153_vm0, %v4872_v3, %v152_v9  ;;  %v3721_v9 = vor.u32 %v4611_v2, %v3718_v4  ;;  %v4607_v30 = vld [vmem:[#allocation5 + $0x10] sm:$0xf0]  ;;  %v3697_v32 = vor.u32 %v4605_v25, %v3694_v28 }
  0x2f   :  { %404 = vmatpush.bf16.msra.mxu0 %v3741_v49  ;;  %v3701_v33 = vor.u32 %v4607_v30, %v3700_v29  ;;  %v5391_v29 = vld [vmem:[%s5963_s7] sm:$0xff] }
  0x30   :  { %423 = vmatpush.bf16.msra.mxu1 %v3745_v53 }
  0x31   :  { %442 = vmatpush.bf16.msra.mxu2 %v3749_v54 }
  0x33   :  { %405 = vmatpush.bf16.msra.mxu0 %v3729_v58  ;;  %v4867_v58 = vld [vmem:[%s5958_s2] ss:$0 sm:$0xff] }
  0x34   :  { %424 = vmatpush.bf16.msra.mxu1 %v3733_v62  ;;  %v4868_v62 = vld [vmem:[%s5958_s2 + $0x1] ss:$0 sm:$0xff] }
  0x35   :  { %443 = vmatpush.bf16.msra.mxu2 %v3737_v63 }
  0x38   :  { %425 = vmatpush.bf16.msra.mxu1 %v3721_v9 }
  0x92   :  { %v141_v11 = vpop.xlane.xlu0 %140 }
  0x93   :  { %v155_v12 = vmul.f32 %v5349_v10, %v141_v11  ;;  %v3725_v11 = vor.u32 %v4613_v8, %v3724_v6  ;;  %v145_v36 = vpop.xlane.xlu2 %144 }
  0x94   :  { %v157_v38 = vmul.f32 %v5349_v10, %v145_v36 }
  0x95   :  { %v5352_v13 = vsub.f32 %v134_v0, %v155_v12  ;;  %v3716_v0 = vld [vmem:[#allocation5 + $0x30] sm:$0xf]  ;;  %444 = vmatpush.bf16.msra.mxu2 %v3725_v11  ;;  %v3704_v12 = vld [vmem:[#allocation5 + $0x18] sm:$0xf] }
  0x96   :  { %v5365_v41 = vsub.f32 %v5340_v5, %v157_v38 }
  0x97   :  { %v163_v14 = vmul.f32 %v5352_v13, %v5352_v13 }
  0x98   :  { %v165_v43 = vmul.f32 %v5365_v41, %v5365_v41 }
  0x99   :  { %167 = vadd.xlane.f32.xlu1 %v163_v14  ;;  %v4609_v14 = vld [vmem:[#allocation5 + $0x20] sm:$0xf0]  ;;  %445 = vmatpush.bf16.msra.mxu2 %v3713_v22 }
  0x9a   :  { %v143_v15 = vpop.xlane.xlu0 %142  ;;  %171 = vadd.xlane.f32.xlu0 %v165_v43 }
  0x9b   :  { %v156_v16 = vmul.f32 %v5349_v10, %v143_v15  ;;  %v4608_v15 = vld [vmem:[#allocation5 + $0x1c] sm:$0xf]  ;;  %v147_v46 = vpop.xlane.xlu2 %146 }
  0x9c   :  { %v158_v47 = vmul.f32 %v5349_v10, %v147_v46 }
  0x9d   :  { %v5357_v17 = vsub.f32 %v135_v1, %v156_v16  ;;  %v4612_v1 = vld [vmem:[#allocation5 + $0x38] sm:$0xf0]  ;;  %v3705_v16 = vor.u32 %v4609_v14, %v3704_v12  ;;  %446 = vmatpush.bf16.msra.mxu2 %v3701_v33 }
  0x9e   :  { %v3717_v3 = vor.u32 %v4612_v1, %v3716_v0  ;;  %v162_v50 = vsub.f32 %v5346_v7, %v158_v47 }
  0x9f   :  { %v164_v18 = vmul.f32 %v5357_v17, %v5357_v17 }
  0xa0   :  { %406 = vmatpush.bf16.msra.mxu0 %v3717_v3  ;;  %v166_v5 = vmul.f32 %v162_v50, %v162_v50 }
  0xa1   :  { %169 = vadd.xlane.f32.xlu1 %v164_v18  ;;  %v3706_v18 = vld [vmem:[#allocation5 + $0x24] sm:$0xf0] }
  0xa2   :  { %v3709_v21 = vor.u32 %v4608_v15, %v3706_v18 }
  0xa4   :  { %407 = vmatpush.bf16.msra.mxu0 %v3705_v16  ;;  %426 = vmatpush.bf16.msra.mxu1 %v3709_v21 }
  0xa8   :  { %408 = vmatpush.bf16.msra.mxu0 %v3693_v27  ;;  %427 = vmatpush.bf16.msra.mxu1 %v3697_v32 }
  0xa9   :  { %173 = vadd.xlane.f32.xlu1 %v166_v5 }
 0x10c   :  { %v168_v26 = vpop.xlane.xlu1 %167 }
 0x10d   :  { %v175_v31 = vmul.f32 %v168_v26, %v5349_v10  ;;  %v172_v3 = vpop.xlane.xlu0 %171 }
 0x10e   :  { %v177_v4 = vmul.f32 %v172_v3, %v5349_v10 }
 0x10f   :  { %v179_v34 = vadd.f32 1e-12, %v175_v31 }
 0x110   :  { %v181_v8 = vadd.f32 1e-12, %v177_v4 }
 0x111   :  { %4873 = vrsqrt.f32 %v179_v34  ;;  %vm189_vm2 = vweird.f32 %v179_v34 }
 0x112   :  { %vm209_vm9 = vweird.f32 %v181_v8 }
 0x114   :  { %v170_v35 = vpop.xlane.xlu1 %169 }
 0x115   :  { %v176_v37 = vmul.f32 %v170_v35, %v5349_v10 }
 0x117   :  { %v4874_v39 = vpop.eup %4873  ;;  %v180_v40 = vadd.f32 1e-12, %v176_v37 }
 0x118   :  { %v184_v42 = vmul.f32 %v4874_v39, %v179_v34  ;;  %vm190_vm1 = vweird.f32 %v4874_v39  ;;  %v463_v34 = vperm.slane %v5391_v29, 1 }
 0x119   :  { %4875 = vrsqrt.f32 %v180_v40  ;;  %vm191_vm3 = vmor %vm189_vm2, %vm190_vm1  ;;  %vm199_vm5 = vweird.f32 %v180_v40 }
 0x11a   :  { %v185_v44 = vmul.f32 %v4874_v39, %v184_v42  ;;  %v468_v42 = vperm.slane %v5391_v29, 2 }
 0x11c   :  { %v186_v45 = vmul.f32 0.5, %v185_v44  ;;  %v174_v2 = vpop.xlane.xlu1 %173  ;;  %v458_v44 = vperm.slane %v5391_v29, 0 }
 0x11e   :  { %v187_v48 = vsub.f32 1.5, %v186_v45 }
 0x11f   :  { %v4876_v49 = vpop.eup %4875 }
 0x120   :  { %v188_v51 = vmul.f32 %v4874_v39, %v187_v48  ;;  %v194_v52 = vmul.f32 %v4876_v49, %v180_v40  ;;  %vm200_vm4 = vweird.f32 %v4876_v49 }
 0x121   :  { %vm201_vm6 = vmor %vm199_vm5, %vm200_vm4 }
 0x122   :  { %v195_v53 = vmul.f32 %v4876_v49, %v194_v52  ;;  %v192_v54 = vsel %vm191_vm3, %v4874_v39, %v188_v51 }
 0x123   :  { %v223_v57 = vmul.f32 %v192_v54, %v5352_v13 }
 0x124   :  { %v196_v55 = vmul.f32 0.5, %v195_v53 }
 0x125   :  { %v228_v61 = vmul.f32 %v4867_v58, %v223_v57 }
 0x126   :  { %v197_v56 = vsub.f32 1.5, %v196_v55 }
 0x127   :  { %v5379_v0 = vadd.f32 %v4868_v62, %v228_v61 }
 0x128   :  { %v198_v59 = vmul.f32 %v4876_v49, %v197_v56 }
 0x12a   :  { %v202_v7 = vsel %vm201_vm6, %v4876_v49, %v198_v59 }
 0x12b   :  { %v224_v60 = vmul.f32 %v202_v7, %v5357_v17  ;;  %v178_v17 = vmul.f32 %v174_v2, %v5349_v10  ;;  %v5408_v7 = vld [vmem:[#allocation2] sm:$0xff] }
 0x12d   :  { %v229_v63 = vmul.f32 %v4867_v58, %v224_v60  ;;  %v182_v6 = vadd.f32 1e-12, %v178_v17  ;;  %v5413_v17 = vld [vmem:[#allocation2 + $0x8] sm:$0xff] }
 0x12f   :  { %v5381_v1 = vadd.f32 %v4868_v62, %v229_v63  ;;  %4877 = vrsqrt.f32 %v182_v6  ;;  %vm219_vm7 = vweird.f32 %v182_v6 }
 0x130   :  { %4879 = vrsqrt.f32 %v181_v8 }
 0x131   :  { %v239_v13 = vpack.c.bf16 %v5381_v1, %v5379_v0 }
 0x133   :  { %409 = vmatmul.bf16.vlgmr.msra.gmra.mxu0 %v239_v13  ;;  %428 = vmatmul.bf16.vlgmr.msra.gmra.mxu1 %v239_v13 }
 0x134   :  { %447 = vmatmul.bf16.vlgmr.msra.gmra.mxu2 %v239_v13 }
 0x135   :  { %v4878_v9 = vpop.eup %4877 }
 0x136   :  { %v4880_v11 = vpop.eup %4879  ;;  %v214_v12 = vmul.f32 %v4878_v9, %v182_v6  ;;  %vm220_vm8 = vweird.f32 %v4878_v9 }
 0x137   :  { %v204_v14 = vmul.f32 %v4880_v11, %v181_v8  ;;  %vm210_vm10 = vweird.f32 %v4880_v11  ;;  %vm221_vm11 = vmor %vm219_vm7, %vm220_vm8 }
 0x138   :  { %v215_v15 = vmul.f32 %v4878_v9, %v214_v12  ;;  %vm211_vm12 = vmor %vm209_vm9, %vm210_vm10 }
 0x139   :  { %v205_v16 = vmul.f32 %v4880_v11, %v204_v14 }
 0x13a   :  { %v216_v18 = vmul.f32 0.5, %v215_v15 }
 0x13b   :  { %v206_v19 = vmul.f32 0.5, %v205_v16 }
 0x13c   :  { %v217_v20 = vsub.f32 1.5, %v216_v18 }
 0x13d   :  { %v207_v21 = vsub.f32 1.5, %v206_v19 }
 0x13e   :  { %v218_v22 = vmul.f32 %v4878_v9, %v217_v20 }
 0x13f   :  { %v208_v23 = vmul.f32 %v4880_v11, %v207_v21 }
 0x140   :  { %v222_v24 = vsel %vm221_vm11, %v4878_v9, %v218_v22 }
 0x141   :  { %v226_v26 = vmul.f32 %v222_v24, %v162_v50  ;;  %v212_v27 = vsel %vm211_vm12, %v4880_v11, %v208_v23 }
 0x142   :  { %v225_v28 = vmul.f32 %v212_v27, %v5365_v41 }
 0x143   :  { %v231_v31 = vmul.f32 %v4867_v58, %v226_v26 }
 0x144   :  { %v230_v32 = vmul.f32 %v4867_v58, %v225_v28 }
 0x145   :  { %v5393_v33 = vadd.f32 %v4868_v62, %v231_v31 }
 0x146   :  { %v5396_v35 = vadd.f32 %v4868_v62, %v230_v32 }
 0x148   :  { %v240_v37 = vpack.c.bf16 %v5393_v33, %v5396_v35 }
 0x14a   :  { %433 = vmatmul.bf16.gmra.mxu1 %v240_v37  ;;  %414 = vmatmul.bf16.gmra.mxu0 %v240_v37 }
 0x14b   :  { %452 = vmatmul.bf16.gmra.mxu2 %v240_v37 }
 0x1b0   :  { %v429_v25 = vpop.f32.mrf.mxu1  ;;  %v410_v30 = vpop.f32.mrf.mxu0 }
 0x1b1   :  { %v464_v39 = vadd.f32 %v463_v34, %v429_v25  ;;  %v459_v50 = vadd.f32 %v458_v44, %v410_v30 }
 0x1b7   :  { %v448_v36 = vpop.f32.mrf.mxu2 }
 0x1b8   :  { %v431_v38 = vpop.f32.mrf.mxu1  ;;  %v412_v43 = vpop.f32.mrf.mxu0  ;;  %v469_v48 = vadd.f32 %v468_v42, %v448_v36 }
 0x1b9   :  { %v465_v40 = vadd.f32 %v463_v34, %v431_v38  ;;  %v460_v46 = vadd.f32 %v458_v44, %v412_v43  ;;  %v621_v43 = vld [vmem:[#allocation2 + $0x10] sm:$0xff] }
 0x1bb   :  { %v476_v41 = vpack.c.bf16 %v465_v40, %v464_v39  ;;  %v475_v52 = vpack.c.bf16 %v460_v46, %v459_v50 }
 0x1bd   :  { %v483_v45 = vsel %vm478_vm13, %v476_v41, 0 }
 0x1be   :  { %492 = vmatpush.bf16.xpose.msra.mxu3 %v483_v45 }
 0x1bf   :  { %v450_v47 = vpop.f32.mrf.mxu2 }
 0x1c0   :  { %v470_v49 = vadd.f32 %v468_v42, %v450_v47 }
 0x1c2   :  { %v5403_v51 = vpack.c.bf16 %v470_v49, %v469_v48 }
 0x1c5   :  { %3786 = vmatmul.msk.bf16.vlgmr.msra.gmra.mxu3 %vm478_vm13, %v475_v52 }
 0x1c6   :  { %533 = vmatpush.bf16.msrb.mxu3 %v5403_v51 }
 0x1c7   :  { %v434_v5 = vpop.f32.mrf.mxu1  ;;  %v415_v54 = vpop.f32.mrf.mxu0 }
 0x1c8   :  { %v466_v53 = vadd.f32 %v463_v34, %v434_v5  ;;  %v461_v60 = vadd.f32 %v458_v44, %v415_v54  ;;  %v622_v5 = vld [vmem:[#allocation2 + $0x18] sm:$0xff] }
 0x1ce   :  { %v453_v13 = vpop.f32.mrf.mxu2 }
 0x1cf   :  { %v436_v55 = vpop.f32.mrf.mxu1  ;;  %v417_v59 = vpop.f32.mrf.mxu0  ;;  %v471_v4 = vadd.f32 %v468_v42, %v453_v13 }
 0x1d0   :  { %v467_v56 = vadd.f32 %v463_v34, %v436_v55  ;;  %v462_v61 = vadd.f32 %v458_v44, %v417_v59 }
 0x1d2   :  { %v624_v57 = vpack.c.bf16 %v467_v56, %v466_v53  ;;  %v623_v63 = vpack.c.bf16 %v462_v61, %v461_v60 }
 0x1d4   :  { %v630_v58 = vsel %vm478_vm13, %v624_v57, 0 }
 0x1d5   :  { %639 = vmatpush.bf16.xpose.msrb.mxu1 %v630_v58 }
 0x1d6   :  { %v455_v8 = vpop.f32.mrf.mxu2 }
 0x1d7   :  { %v472_v11 = vadd.f32 %v468_v42, %v455_v8 }
 0x1d9   :  { %v5417_v14 = vpack.c.bf16 %v472_v11, %v471_v4 }
 0x1dc   :  { %3790 = vmatmul.msk.bf16.vlgmr.msrb.gmra.mxu1 %vm478_vm13, %v623_v63 }
 0x1dd   :  { %679 = vmatpush.bf16.msra.mxu1 %v5417_v14 }
 0x248   :  { %v494_v62 = vpop.f32.mrf.mxu3 }
 0x249   :  { %v495_v2 = vadd.f32 %v494_v62, %v5408_v7 }
 0x24b   :  { %v500_v3 = vsel %vm499_vm14, %v495_v2, -inf }
 0x24c   :  { %501 = vmax.xlane.f32.xlu2 %v500_v3 }
 0x250   :  { %v496_v6 = vpop.f32.mrf.mxu3 }
 0x251   :  { %v497_v9 = vadd.f32 %v496_v6, %v5413_v17 }
 0x253   :  { %v503_v12 = vsel %vm499_vm14, %v497_v9, -inf }
 0x254   :  { %504 = vmax.xlane.f32.xlu0 %v503_v12 }
 0x259   :  { %v641_v58 = vpop.f32.mrf.mxu1 }
 0x25a   :  { %v642_v59 = vadd.f32 %v641_v58, %v621_v43  ;;  %v4635_v58 = vld [vmem:[#allocation7 + $0x30] sm:$0xff] }
 0x25c   :  { %v646_v60 = vsel %vm499_vm14, %v642_v59, -inf }
 0x268   :  { %544 = vrot.lane.b32.xlu0 %v476_v41, %s5235_s22 }
 0x270   :  { %687 = vrot.lane.b32.xlu0 %v623_v63, %s5235_s22 }
 0x2bf   :  { %v502_v15 = vpop.xlane.xlu2 %501 }
 0x2c0   :  { %v506_v16 = vsub.f32 %v495_v2, %v502_v15 }
 0x2c2   :  { %v508_v18 = vmul.f32 1.442695, %v506_v16 }
 0x2c4   :  { %4881 = vpow2.f32 %v508_v18 }
 0x2c7   :  { %v505_v19 = vpop.xlane.xlu0 %504 }
 0x2c8   :  { %v507_v20 = vsub.f32 %v497_v9, %v505_v19  ;;  %v643_v19 = vpop.f32.mrf.mxu1 }
 0x2ca   :  { %v4882_v21 = vpop.eup %4881  ;;  %v510_v22 = vmul.f32 1.442695, %v507_v20 }
 0x2cb   :  { %v512_v23 = vsel %vm499_vm14, %v4882_v21, 0.0 }
 0x2cc   :  { %4883 = vpow2.f32 %v510_v22  ;;  %513 = vadd.xlane.f32.xlu1 %v512_v23 }
 0x2d2   :  { %v4884_v24 = vpop.eup %4883 }
 0x2d3   :  { %v515_v25 = vsel %vm499_vm14, %v4884_v24, 0.0 }
 0x2d4   :  { %516 = vadd.xlane.f32.xlu2 %v515_v25 }
 0x2da   :  { %v545_v26 = vpop.permute.xlu0 %544 }
 0x2db   :  { %v550_v27 = vsel %vm478_vm13, %v545_v26, 0 }
 0x2dc   :  { %559 = vmatpush.bf16.xpose.msra.mxu3 %v550_v27 }
 0x2e2   :  { %v688_v40 = vpop.permute.xlu0 %687 }
 0x2e5   :  { %541 = vrot.lane.b32.xlu1 %v475_v52, %s5235_s22 }
 0x2ec   :  { %690 = vrot.lane.b32.xlu2 %v624_v57, %s5235_s22 }
 0x33f   :  { %v514_v28 = vpop.xlane.xlu1 %513 }
 0x340   :  { %4885 = vrcp.f32 %v514_v28 }
 0x346   :  { %v4886_v31 = vpop.eup %4885 }
 0x347   :  { %v517_v30 = vpop.xlane.xlu2 %516  ;;  %v520_v34 = vmul.f32 %v4886_v31, %v4882_v21  ;;  %v644_v21 = vadd.f32 %v643_v19, %v622_v5 }
 0x348   :  { %4887 = vrcp.f32 %v517_v30 }
 0x34e   :  { %v4888_v32 = vpop.eup %4887 }
 0x34f   :  { %v521_v36 = vmul.f32 %v4888_v32, %v4884_v24  ;;  %v691_v37 = vpop.permute.xlu2 %690  ;;  %v649_v24 = vsel %vm499_vm14, %v644_v21, -inf }
 0x350   :  { %v696_v38 = vsel %vm478_vm13, %v691_v37, 0 }
 0x351   :  { %705 = vmatpush.bf16.xpose.msrb.mxu2 %v696_v38  ;;  %v522_v39 = vpack.c.bf16 %v521_v36, %v520_v34 }
 0x353   :  { %3787 = vmatmul.msk.bf16.vlgmr.msrb.gmra.mxu3 %vm499_vm14, %v522_v39 }
 0x357   :  { %v542_v41 = vpop.permute.xlu1 %541 }
 0x358   :  { %3792 = vmatmul.msk.bf16.vlgmr.msrb.gmra.mxu2 %vm478_vm13, %v688_v40 }
 0x363   :  { %3788 = vmatmul.msk.bf16.vlgmr.msra.gmra.mxu3 %vm478_vm13, %v542_v41 }
 0x3d6   :  { %v5431_v42 = vpop.f32.mrf.mxu3 }
 0x3db   :  { %v707_v44 = vpop.f32.mrf.mxu2 }
 0x3dc   :  { %v708_v45 = vadd.f32 %v707_v44, %v621_v43 }
 0x3de   :  { %v5433_v46 = vpop.f32.mrf.mxu3  ;;  %v712_v47 = vsel %vm499_vm14, %v708_v45, -inf }
 0x3df   :  { %713 = vmax.xlane.f32.xlu0 %v712_v47 }
 0x3e3   :  { %v709_v52 = vpop.f32.mrf.mxu2 }
 0x3e4   :  { %v710_v53 = vadd.f32 %v709_v52, %v622_v5 }
 0x3e6   :  { %v561_v48 = vpop.f32.mrf.mxu3  ;;  %v715_v57 = vsel %vm499_vm14, %v710_v53, -inf }
 0x3e7   :  { %v562_v49 = vadd.f32 %v561_v48, %v5408_v7 }
 0x3e9   :  { %v566_v50 = vsel %vm499_vm14, %v562_v49, -inf }
 0x3ea   :  { %567 = vmax.xlane.f32.xlu2 %v566_v50 }
 0x3ee   :  { %v563_v54 = vpop.f32.mrf.mxu3 }
 0x3ef   :  { %v564_v55 = vadd.f32 %v563_v54, %v5413_v17 }
 0x3f1   :  { %v569_v56 = vsel %vm499_vm14, %v564_v55, -inf }
 0x3f2   :  { %570 = vmax.xlane.f32.xlu1 %v569_v56  ;;  %716 = vmax.xlane.f32.xlu2 %v715_v57  ;;  %v4636_v56 = vld [vmem:[#allocation7 + $0x38] sm:$0xff] }
 0x3f3   :  { %833 = vmatpush.bf16.msrb.mxu0 %v4636_v56  ;;  %v3940_v56 = vld [vmem:[#allocation8 + $0xe0] sm:$0xf] }
 0x3f7   :  { %834 = vmatpush.bf16.msrb.mxu0 %v4635_v58  ;;  %v4665_v58 = vld [vmem:[#allocation8 + $0xe4] sm:$0xf] }
 0x3fa   :  { %647 = vmax.xlane.f32.xlu1 %v646_v60 }
 0x40a   :  { %590 = vrot.lane.b32.xlu2 %v5403_v51, %s5235_s22 }
 0x452   :  { %v714_v7 = vpop.xlane.xlu0 %713 }
 0x453   :  { %v718_v63 = vsub.f32 %v708_v45, %v714_v7 }
 0x455   :  { %v720_v2 = vmul.f32 1.442695, %v718_v63 }
 0x45d   :  { %v568_v61 = vpop.xlane.xlu2 %567 }
 0x45e   :  { %v572_v62 = vsub.f32 %v562_v49, %v568_v61 }
 0x460   :  { %v574_v13 = vmul.f32 1.442695, %v572_v62  ;;  %v4634_v62 = vld [vmem:[#allocation7 + $0x28] sm:$0xff] }
 0x461   :  { %835 = vmatpush.bf16.msrb.mxu0 %v4634_v62 }
 0x462   :  { %4889 = vpow2.f32 %v574_v13  ;;  %v4633_v13 = vld [vmem:[#allocation7 + $0x20] sm:$0xff] }
 0x463   :  { %4891 = vpow2.f32 %v720_v2 }
 0x465   :  { %v571_v3 = vpop.xlane.xlu1 %570  ;;  %v717_v17 = vpop.xlane.xlu2 %716  ;;  %836 = vmatpush.bf16.msrb.mxu0 %v4633_v13  ;;  %v4666_v13 = vld [vmem:[#allocation8 + $0xec] sm:$0xf] }
 0x466   :  { %v573_v4 = vsub.f32 %v564_v55, %v571_v3  ;;  %v719_v15 = vsub.f32 %v710_v53, %v717_v17  ;;  %v4632_v17 = vld [vmem:[#allocation7 + $0x18] sm:$0xff] }
 0x468   :  { %v4890_v6 = vpop.eup %4889  ;;  %v576_v8 = vmul.f32 1.442695, %v573_v4  ;;  %v722_v20 = vmul.f32 1.442695, %v719_v15  ;;  %v4631_v4 = vld [vmem:[#allocation7 + $0x10] sm:$0xff] }
 0x469   :  { %v578_v9 = vsel %vm499_vm14, %v4890_v6, 0.0  ;;  %v4892_v12 = vpop.eup %4891  ;;  %837 = vmatpush.bf16.msrb.mxu0 %v4632_v17  ;;  %v3924_v17 = vld [vmem:[#allocation8 + $0xc0] sm:$0xf] }
 0x46a   :  { %4893 = vpow2.f32 %v576_v8  ;;  %579 = vadd.xlane.f32.xlu1 %v578_v9  ;;  %v724_v18 = vsel %vm499_vm14, %v4892_v12, 0.0  ;;  %v4630_v8 = vld [vmem:[#allocation7 + $0x8] sm:$0xff] }
 0x46b   :  { %4895 = vpow2.f32 %v722_v20 }
 0x46d   :  { %v591_v11 = vpop.permute.xlu2 %590  ;;  %v648_v22 = vpop.xlane.xlu1 %647  ;;  %838 = vmatpush.bf16.msrb.mxu0 %v4631_v4  ;;  %v4663_v4 = vld [vmem:[#allocation8 + $0xcc] sm:$0xf0] }
 0x46e   :  { %603 = vmatpush.bf16.msrb.mxu3 %v591_v11  ;;  %v652_v23 = vsub.f32 %v642_v59, %v648_v22 }
 0x470   :  { %v4894_v51 = vpop.eup %4893  ;;  %v654_v25 = vmul.f32 1.442695, %v652_v23 }
 0x471   :  { %v581_v16 = vsel %vm499_vm14, %v4894_v51, 0.0  ;;  %v4896_v26 = vpop.eup %4895  ;;  %839 = vmatpush.bf16.msrb.mxu0 %v4630_v8  ;;  %v3925_v8 = vor.u32 %v4663_v4, %v3924_v17  ;;  %v3870_v17 = vld [vmem:[#allocation8 + $0x58] sm:$0xf0] }
 0x472   :  { %582 = vadd.xlane.f32.xlu0 %v581_v16  ;;  %725 = vadd.xlane.f32.xlu1 %v724_v18  ;;  %4897 = vpow2.f32 %v654_v25  ;;  %v727_v27 = vsel %vm499_vm14, %v4896_v26, 0.0 }
 0x478   :  { %v4898_v28 = vpop.eup %4897 }
 0x479   :  { %v658_v30 = vsel %vm499_vm14, %v4898_v28, 0.0 }
 0x47a   :  { %650 = vmax.xlane.f32.xlu0 %v649_v24 }
 0x482   :  { %728 = vadd.xlane.f32.xlu0 %v727_v27 }
 0x48a   :  { %659 = vadd.xlane.f32.xlu0 %v658_v30  ;;  %v784_v30 = vperm.slane %v5391_v29, 3 }
 0x48b   :  { %736 = vrot.lane.b32.xlu1 %v5417_v14, %s5235_s22 }
 0x4dd   :  { %v580_v31 = vpop.xlane.xlu1 %579 }
 0x4de   :  { %4899 = vrcp.f32 %v580_v31 }
 0x4e4   :  { %v4900_v34 = vpop.eup %4899 }
 0x4e5   :  { %v583_v32 = vpop.xlane.xlu0 %582  ;;  %v586_v38 = vmul.f32 %v4900_v34, %v4890_v6  ;;  %v726_v44 = vpop.xlane.xlu1 %725 }
 0x4e6   :  { %4901 = vrcp.f32 %v583_v32 }
 0x4ec   :  { %v4902_v36 = vpop.eup %4901 }
 0x4ed   :  { %v651_v37 = vpop.xlane.xlu0 %650  ;;  %v587_v39 = vmul.f32 %v4902_v36, %v4894_v51 }
 0x4ee   :  { %v653_v40 = vsub.f32 %v644_v21, %v651_v37 }
 0x4ef   :  { %v588_v41 = vpack.c.bf16 %v587_v39, %v586_v38 }
 0x4f0   :  { %v656_v43 = vmul.f32 1.442695, %v653_v40 }
 0x4f1   :  { %3789 = vmatmul.msk.bf16.vlgmr.msrb.gmra.mxu3 %vm499_vm14, %v588_v41 }
 0x4f2   :  { %4903 = vpow2.f32 %v656_v43 }
 0x4f3   :  { %4905 = vrcp.f32 %v726_v44 }
 0x4f5   :  { %v729_v45 = vpop.xlane.xlu0 %728 }
 0x4f6   :  { %4907 = vrcp.f32 %v729_v45 }
 0x4f8   :  { %v4904_v14 = vpop.eup %4903 }
 0x4f9   :  { %v661_v47 = vsel %vm499_vm14, %v4904_v14, 0.0  ;;  %v4906_v48 = vpop.eup %4905 }
 0x4fa   :  { %662 = vadd.xlane.f32.xlu2 %v661_v47  ;;  %v732_v50 = vmul.f32 %v4906_v48, %v4892_v12  ;;  %v4629_v12 = vld [vmem:[#allocation7] sm:$0xff] }
 0x4fb   :  { %840 = vmatpush.bf16.msrb.mxu0 %v4629_v12  ;;  %v4664_v12 = vld [vmem:[#allocation8 + $0xd4] sm:$0xf0] }
 0x4fc   :  { %v4908_v49 = vpop.eup %4907 }
 0x4fd   :  { %v733_v52 = vmul.f32 %v4908_v49, %v4896_v26  ;;  %v737_v5 = vpop.permute.xlu1 %736  ;;  %v660_v54 = vpop.xlane.xlu0 %659 }
 0x4fe   :  { %749 = vmatpush.bf16.msra.mxu3 %v737_v5  ;;  %4909 = vrcp.f32 %v660_v54 }
 0x4ff   :  { %v734_v53 = vpack.c.bf16 %v733_v52, %v732_v50 }
 0x501   :  { %3793 = vmatmul.msk.bf16.vlgmr.msra.gmra.mxu3 %vm499_vm14, %v734_v53 }
 0x504   :  { %v4910_v57 = vpop.eup %4909 }
 0x505   :  { %v666_v60 = vmul.f32 %v4910_v57, %v4898_v28  ;;  %v4667_v57 = vld [vmem:[#allocation8 + $0xec] sm:$0xf0] }
 0x56d   :  { %v663_v55 = vpop.xlane.xlu2 %662 }
 0x56e   :  { %4911 = vrcp.f32 %v663_v55 }
 0x574   :  { %v4912_v59 = vpop.eup %4911  ;;  %v605_v61 = vpop.f32.mrf.mxu3 }
 0x575   :  { %v667_v7 = vmul.f32 %v4912_v59, %v4904_v14  ;;  %v3941_v59 = vor.u32 %v4667_v57, %v3940_v56  ;;  %v3886_v56 = vld [vmem:[#allocation8 + $0x78] sm:$0xf0] }
 0x577   :  { %v668_v63 = vpack.c.bf16 %v667_v7, %v666_v60  ;;  %v3942_v60 = vld [vmem:[#allocation8 + $0xf0] sm:$0xf0]  ;;  %v3948_v7 = vld [vmem:[#allocation8 + $0xe8] sm:$0xf]  ;;  %1150 = vmatpush.bf16.msrb.mxu1 %v3941_v59  ;;  %v4647_v59 = vld [vmem:[#allocation8 + $0x4c] sm:$0xf0] }
 0x578   :  { %v3945_v62 = vor.u32 %v4665_v58, %v3942_v60  ;;  %v3860_v58 = vld [vmem:[#allocation8 + $0x40] sm:$0xf]  ;;  %v4645_v60 = vld [vmem:[#allocation8 + $0x44] sm:$0xf] }
 0x579   :  { %3791 = vmatmul.msk.bf16.vlgmr.msra.gmra.mxu1 %vm499_vm14, %v668_v63 }
 0x57a   :  { %1169 = vmatpush.bf16.msra.mxu2 %v3945_v62  ;;  %v3868_v62 = vld [vmem:[#allocation8 + $0x48] sm:$0xf] }
 0x57b   :  { %1151 = vmatpush.bf16.msrb.mxu1 %v3925_v8  ;;  %v4643_v8 = vld [vmem:[#allocation8 + $0x2c] sm:$0xf0] }
 0x57c   :  { %v607_v2 = vpop.f32.mrf.mxu3 }
 0x57d   :  { %v4847_v3 = vpack.i.bf16 %v607_v2, %v605_v61  ;;  %v4668_v61 = vld [vmem:[#allocation8 + $0xf4] sm:$0xf0]  ;;  %v3950_v2 = vld [vmem:[#allocation8 + $0xf8] sm:$0xf0] }
 0x57e   :  { %v3949_v63 = vor.u32 %v4668_v61, %v3948_v7  ;;  %v3861_v7 = vor.u32 %v4647_v59, %v3860_v58  ;;  %v3862_v61 = vld [vmem:[#allocation8 + $0x50] sm:$0xf0] }
 0x57f   :  { %4848 = vrot.lane.b32.xlu0 %v4847_v3, %s5235_s22  ;;  %v3953_v3 = vor.u32 %v4666_v13, %v3950_v2  ;;  %v3865_v13 = vor.u32 %v4645_v60, %v3862_v61  ;;  %v936_v61 = vperm.slane %v5391_v29, 5 }
 0x580   :  { %1188 = vmatpush.bf16.msrb.mxu3 %v3949_v63  ;;  %v4648_v63 = vld [vmem:[#allocation8 + $0x54] sm:$0xf0] }
 0x581   :  { %1207 = vmatpush.bf16.msra.mxu0 %v3953_v3  ;;  %v3869_v2 = vor.u32 %v4648_v63, %v3868_v62  ;;  %v4646_v3 = vld [vmem:[#allocation8 + $0x4c] sm:$0xf] }
 0x582   :  { %v3873_v4 = vor.u32 %v4646_v3, %v3870_v17 }
 0x584   :  { %v751_v6 = vpop.f32.mrf.mxu3 }
 0x58c   :  { %v753_v9 = vpop.f32.mrf.mxu3 }
 0x58d   :  { %v4852_v11 = vpack.i.bf16 %v753_v9, %v751_v6  ;;  %v4661_v6 = vld [vmem:[#allocation8 + $0xc4] sm:$0xf]  ;;  %v3926_v9 = vld [vmem:[#allocation8 + $0xd0] sm:$0xf0] }
 0x58f   :  { %4853 = vrot.lane.b32.xlu1 %v4852_v11, %s5235_s22  ;;  %v3932_v11 = vld [vmem:[#allocation8 + $0xc8] sm:$0xf] }
 0x5f1   :  { %v4849_v51 = vpop.permute.xlu0 %4848 }
 0x5f2   :  { %v4851_v15 = vunpack.i.h.bf16 %v4849_v51  ;;  %v4850_v16 = vunpack.i.l.bf16 %v4849_v51  ;;  %v3929_v51 = vor.u32 %v4661_v6, %v3926_v9  ;;  %v3844_v6 = vld [vmem:[#allocation8 + $0x20] sm:$0xf]  ;;  %v4641_v9 = vld [vmem:[#allocation8 + $0x24] sm:$0xf] }
 0x5f4   :  { %v618_v18 = vsel %vm478_vm13, %v5431_v42, %v4850_v16  ;;  %v619_v19 = vsel %vm478_vm13, %v5433_v46, %v4851_v15  ;;  %v3933_v15 = vor.u32 %v4664_v12, %v3932_v11  ;;  %v4662_v16 = vld [vmem:[#allocation8 + $0xcc] sm:$0xf]  ;;  %1170 = vmatpush.bf16.msra.mxu2 %v3929_v51  ;;  %v3845_v11 = vor.u32 %v4643_v8, %v3844_v6  ;;  %v3846_v12 = vld [vmem:[#allocation8 + $0x30] sm:$0xf0]  ;;  %v3852_v51 = vld [vmem:[#allocation8 + $0x28] sm:$0xf] }
 0x5f5   :  { %v766_v20 = vpack.c.bf16 %v619_v19, %v618_v18  ;;  %v3934_v18 = vld [vmem:[#allocation8 + $0xd8] sm:$0xf0] }
 0x5f6   :  { %v681_v21 = vpop.f32.mrf.mxu1  ;;  %v3937_v19 = vor.u32 %v4662_v16, %v3934_v18  ;;  %1189 = vmatpush.bf16.msrb.mxu3 %v3933_v15  ;;  %v4644_v15 = vld [vmem:[#allocation8 + $0x34] sm:$0xf0]  ;;  %v3849_v16 = vor.u32 %v4641_v9, %v3846_v12 }
 0x5f7   :  { %841 = vmatmul.bf16.vlgmr.msrb.gmra.mxu0 %v766_v20  ;;  %v3908_v20 = vld [vmem:[#allocation8 + $0xa0] sm:$0xf]  ;;  %v3853_v18 = vor.u32 %v4644_v15, %v3852_v51 }
 0x5f8   :  { %1208 = vmatpush.bf16.msra.mxu0 %v3937_v19  ;;  %v4642_v19 = vld [vmem:[#allocation8 + $0x2c] sm:$0xf] }
 0x5fe   :  { %v683_v25 = vpop.f32.mrf.mxu1 }
 0x601   :  { %v4854_v22 = vpop.permute.xlu1 %4853 }
 0x602   :  { %v4856_v23 = vunpack.i.h.bf16 %v4854_v22  ;;  %v4855_v24 = vunpack.i.l.bf16 %v4854_v22  ;;  %v4657_v22 = vld [vmem:[#allocation8 + $0xa4] sm:$0xf] }
 0x604   :  { %v764_v26 = vsel %vm478_vm13, %v681_v21, %v4855_v24  ;;  %v765_v27 = vsel %vm478_vm13, %v683_v25, %v4856_v23  ;;  %v4659_v21 = vld [vmem:[#allocation8 + $0xac] sm:$0xf0]  ;;  %v3910_v24 = vld [vmem:[#allocation8 + $0xb0] sm:$0xf0]  ;;  %v3916_v25 = vld [vmem:[#allocation8 + $0xa8] sm:$0xf] }
 0x605   :  { %v767_v28 = vpack.c.bf16 %v765_v27, %v764_v26  ;;  %v3909_v23 = vor.u32 %v4659_v21, %v3908_v20  ;;  %v4660_v26 = vld [vmem:[#allocation8 + $0xb4] sm:$0xf0]  ;;  %v3913_v27 = vor.u32 %v4657_v22, %v3910_v24  ;;  %v3854_v20 = vld [vmem:[#allocation8 + $0x38] sm:$0xf0]  ;;  %v3828_v24 = vld [vmem:[#allocation8] sm:$0xf] }
 0x606   :  { %v3857_v22 = vor.u32 %v4642_v19, %v3854_v20 }
 0x607   :  { %846 = vmatmul.bf16.gmra.mxu0 %v767_v28  ;;  %v3917_v28 = vor.u32 %v4660_v26, %v3916_v25  ;;  %1152 = vmatpush.bf16.msrb.mxu1 %v3909_v23  ;;  %v4639_v25 = vld [vmem:[#allocation8 + $0xc] sm:$0xf0]  ;;  %v4637_v26 = vld [vmem:[#allocation8 + $0x4] sm:$0xf] }
 0x608   :  { %1171 = vmatpush.bf16.msra.mxu2 %v3913_v27  ;;  %v3829_v27 = vor.u32 %v4639_v25, %v3828_v24 }
 0x609   :  { %1190 = vmatpush.bf16.msrb.mxu3 %v3917_v28  ;;  %v3830_v28 = vld [vmem:[#allocation8 + $0x10] sm:$0xf0] }
 0x674   :  { %v842_v31 = vpop.f32.mrf.mxu0 }
 0x675   :  { %v843_v42 = vadd.f32 %v842_v31, %v784_v30  ;;  %v3918_v31 = vld [vmem:[#allocation8 + $0xb8] sm:$0xf0] }
 0x677   :  { %v852_v32 = vadd.f32 %v843_v42, %v5379_v0 }
 0x679   :  { %856 = vadd.xlane.f32.xlu0 %v852_v32 }
 0x67c   :  { %v844_v46 = vpop.f32.mrf.mxu0 }
 0x67d   :  { %v845_v34 = vadd.f32 %v844_v46, %v784_v30  ;;  %v4655_v46 = vld [vmem:[#allocation8 + $0x8c] sm:$0xf0] }
 0x67f   :  { %v853_v36 = vadd.f32 %v845_v34, %v5381_v1  ;;  %v4653_v34 = vld [vmem:[#allocation8 + $0x84] sm:$0xf] }
 0x681   :  { %858 = vadd.xlane.f32.xlu1 %v853_v36 }
 0x684   :  { %v847_v37 = vpop.f32.mrf.mxu0 }
 0x685   :  { %v848_v38 = vadd.f32 %v847_v37, %v784_v30  ;;  %v3894_v37 = vld [vmem:[#allocation8 + $0x90] sm:$0xf0] }
 0x687   :  { %v854_v39 = vadd.f32 %v848_v38, %v5396_v35  ;;  %v3900_v38 = vld [vmem:[#allocation8 + $0x88] sm:$0xf] }
 0x689   :  { %860 = vadd.xlane.f32.xlu2 %v854_v39 }
 0x68c   :  { %v849_v40 = vpop.f32.mrf.mxu0 }
 0x68d   :  { %v850_v41 = vadd.f32 %v849_v40, %v784_v30  ;;  %v4658_v30 = vld [vmem:[#allocation8 + $0xac] sm:$0xf]  ;;  %v3897_v40 = vor.u32 %v4653_v34, %v3894_v37 }
 0x68e   :  { %v3921_v42 = vor.u32 %v4658_v30, %v3918_v31  ;;  %v3836_v30 = vld [vmem:[#allocation8 + $0x8] sm:$0xf]  ;;  %v4640_v31 = vld [vmem:[#allocation8 + $0x14] sm:$0xf0]  ;;  %v4638_v34 = vld [vmem:[#allocation8 + $0xc] sm:$0xf] }
 0x68f   :  { %v855_v43 = vadd.f32 %v850_v41, %v5393_v33  ;;  %1172 = vmatpush.bf16.msra.mxu2 %v3897_v40 }
 0x690   :  { %1209 = vmatpush.bf16.msra.mxu0 %v3921_v42 }
 0x691   :  { %862 = vadd.xlane.f32.xlu2 %v855_v43 }
 0x6ec   :  { %v857_v44 = vpop.xlane.xlu0 %856 }
 0x6ed   :  { %v864_v45 = vmul.f32 %v857_v44, %v5349_v10  ;;  %v3902_v44 = vld [vmem:[#allocation8 + $0x98] sm:$0xf0] }
 0x6ef   :  { %v5470_v0 = vsub.f32 %v852_v32, %v864_v45  ;;  %v3892_v32 = vld [vmem:[#allocation8 + $0x80] sm:$0xf] }
 0x6f1   :  { %v872_v14 = vmul.f32 %v5470_v0, %v5470_v0 }
 0x6f3   :  { %876 = vadd.xlane.f32.xlu2 %v872_v14  ;;  %v3876_v14 = vld [vmem:[#allocation8 + $0x60] sm:$0xf] }
 0x6f4   :  { %v859_v1 = vpop.xlane.xlu1 %858 }
 0x6f5   :  { %v865_v47 = vmul.f32 %v859_v1, %v5349_v10  ;;  %v4651_v1 = vld [vmem:[#allocation8 + $0x6c] sm:$0xf0] }
 0x6f7   :  { %v5475_v48 = vsub.f32 %v853_v36, %v865_v47  ;;  %v3893_v36 = vor.u32 %v4655_v46, %v3892_v32  ;;  %v4649_v47 = vld [vmem:[#allocation8 + $0x64] sm:$0xf]  ;;  %v3833_v32 = vor.u32 %v4637_v26, %v3830_v28  ;;  %v3837_v46 = vor.u32 %v4640_v31, %v3836_v30  ;;  %v4700_v30 = vld [vmem:[#allocation10 + $0xf8] sm:$0xff]  ;;  %v4675_v31 = vld [vmem:[#allocation10 + $0x30] sm:$0xff] }
 0x6f9   :  { %v873_v35 = vmul.f32 %v5475_v48, %v5475_v48  ;;  %1153 = vmatpush.bf16.msrb.mxu1 %v3893_v36  ;;  %v3838_v36 = vld [vmem:[#allocation8 + $0x18] sm:$0xf0] }
 0x6fa   :  { %v3841_v37 = vor.u32 %v4638_v34, %v3838_v36  ;;  %v4698_v34 = vld [vmem:[#allocation10 + $0xe8] sm:$0xff]  ;;  %v4683_v36 = vld [vmem:[#allocation10 + $0x70] sm:$0xff] }
 0x6fb   :  { %878 = vadd.xlane.f32.xlu2 %v873_v35  ;;  %v3877_v35 = vor.u32 %v4651_v1, %v3876_v14 }
 0x6fc   :  { %v861_v33 = vpop.xlane.xlu2 %860 }
 0x6fd   :  { %v866_v49 = vmul.f32 %v861_v33, %v5349_v10  ;;  %v3878_v33 = vld [vmem:[#allocation8 + $0x70] sm:$0xf0]  ;;  %1154 = vmatpush.bf16.msrb.mxu1 %v3877_v35 }
 0x6ff   :  { %v5480_v50 = vsub.f32 %v854_v39, %v866_v49  ;;  %v4656_v39 = vld [vmem:[#allocation8 + $0x94] sm:$0xf0]  ;;  %v3884_v49 = vld [vmem:[#allocation8 + $0x68] sm:$0xf] }
 0x700   :  { %v3901_v41 = vor.u32 %v4656_v39, %v3900_v38 }
 0x701   :  { %v874_v52 = vmul.f32 %v5480_v50, %v5480_v50  ;;  %1155 = vmatpush.bf16.msrb.mxu1 %v3861_v7 }
 0x702   :  { %1191 = vmatpush.bf16.msrb.mxu3 %v3901_v41 }
 0x703   :  { %880 = vadd.xlane.f32.xlu0 %v874_v52  ;;  %v4652_v52 = vld [vmem:[#allocation8 + $0x74] sm:$0xf0] }
 0x704   :  { %v863_v5 = vpop.xlane.xlu2 %862 }
 0x705   :  { %v867_v53 = vmul.f32 %v863_v5, %v5349_v10  ;;  %v3881_v5 = vor.u32 %v4649_v47, %v3878_v33  ;;  %1156 = vmatpush.bf16.msrb.mxu1 %v3845_v11 }
 0x707   :  { %v5485_v54 = vsub.f32 %v855_v43, %v867_v53  ;;  %v4654_v43 = vld [vmem:[#allocation8 + $0x8c] sm:$0xf]  ;;  %v3885_v53 = vor.u32 %v4652_v52, %v3884_v49  ;;  %1173 = vmatpush.bf16.msra.mxu2 %v3881_v5 }
 0x708   :  { %v3905_v45 = vor.u32 %v4654_v43, %v3902_v44 }
 0x709   :  { %v875_v55 = vmul.f32 %v5485_v54, %v5485_v54  ;;  %1192 = vmatpush.bf16.msrb.mxu3 %v3885_v53  ;;  %1157 = vmatpush.bf16.msrb.mxu1 %v3829_v27 }
 0x70a   :  { %1210 = vmatpush.bf16.msra.mxu0 %v3905_v45 }
 0x70b   :  { %882 = vadd.xlane.f32.xlu1 %v875_v55  ;;  %v4650_v55 = vld [vmem:[#allocation8 + $0x6c] sm:$0xf]  ;;  %1174 = vmatpush.bf16.msra.mxu2 %v3865_v13 }
 0x70c   :  { %v3889_v57 = vor.u32 %v4650_v55, %v3886_v56 }
 0x70d   :  { %1193 = vmatpush.bf16.msrb.mxu3 %v3869_v2 }
 0x70e   :  { %1211 = vmatpush.bf16.msra.mxu0 %v3889_v57 }
 0x70f   :  { %1175 = vmatpush.bf16.msra.mxu2 %v3849_v16 }
 0x711   :  { %1194 = vmatpush.bf16.msrb.mxu3 %v3853_v18 }
 0x712   :  { %1212 = vmatpush.bf16.msra.mxu0 %v3873_v4  ;;  %v941_v4 = vperm.slane %v5391_v29, 6 }
 0x713   :  { %1176 = vmatpush.bf16.msra.mxu2 %v3833_v32  ;;  %v4692_v32 = vld [vmem:[#allocation10 + $0xb8] sm:$0xff] }
 0x715   :  { %1195 = vmatpush.bf16.msrb.mxu3 %v3837_v46  ;;  %v4674_v46 = vld [vmem:[#allocation10 + $0x28] sm:$0xff] }
 0x716   :  { %1213 = vmatpush.bf16.msra.mxu0 %v3857_v22 }
 0x719   :  { %1673 = vmatpush.bf16.msra.mxu3 %v4692_v32 }
 0x71a   :  { %1214 = vmatpush.bf16.msra.mxu0 %v3841_v37  ;;  %v4691_v37 = vld [vmem:[#allocation10 + $0xb0] sm:$0xff] }
 0x71d   :  { %1674 = vmatpush.bf16.msra.mxu3 %v4691_v37 }
 0x71e   :  { %1692 = vmatpush.bf16.msrb.mxu0 %v4700_v30 }
 0x766   :  { %v877_v21 = vpop.xlane.xlu2 %876 }
 0x767   :  { %v884_v23 = vmul.f32 %v877_v21, %v5349_v10 }
 0x769   :  { %v888_v42 = vadd.f32 1e-12, %v884_v23 }
 0x76b   :  { %4913 = vrsqrt.f32 %v888_v42  ;;  %vm898_vm0 = vweird.f32 %v888_v42 }
 0x76e   :  { %v879_v38 = vpop.xlane.xlu2 %878 }
 0x76f   :  { %v885_v39 = vmul.f32 %v879_v38, %v5349_v10  ;;  %v4673_v38 = vld [vmem:[#allocation10 + $0x20] sm:$0xff] }
 0x771   :  { %v4914_v40 = vpop.eup %4913  ;;  %v889_v41 = vadd.f32 1e-12, %v885_v39  ;;  %v4697_v39 = vld [vmem:[#allocation10 + $0xe0] sm:$0xff] }
 0x772   :  { %v893_v43 = vmul.f32 %v4914_v40, %v888_v42  ;;  %vm899_vm15 = vweird.f32 %v4914_v40  ;;  %v4699_v42 = vld [vmem:[#allocation10 + $0xf0] sm:$0xff] }
 0x773   :  { %4915 = vrsqrt.f32 %v889_v41  ;;  %vm900_vm1 = vmor %vm898_vm0, %vm899_vm15  ;;  %vm908_vm3 = vweird.f32 %v889_v41  ;;  %1693 = vmatpush.bf16.msrb.mxu0 %v4699_v42 }
 0x774   :  { %v894_v44 = vmul.f32 %v4914_v40, %v893_v43  ;;  %v4672_v43 = vld [vmem:[#allocation10 + $0x18] sm:$0xff] }
 0x776   :  { %v895_v45 = vmul.f32 0.5, %v894_v44  ;;  %v881_v14 = vpop.xlane.xlu0 %880  ;;  %v4696_v44 = vld [vmem:[#allocation10 + $0xd8] sm:$0xff] }
 0x777   :  { %v886_v1 = vmul.f32 %v881_v14, %v5349_v10  ;;  %1694 = vmatpush.bf16.msrb.mxu0 %v4698_v34  ;;  %v4689_v14 = vld [vmem:[#allocation10 + $0xa0] sm:$0xff] }
 0x778   :  { %v896_v47 = vsub.f32 1.5, %v895_v45  ;;  %v4681_v45 = vld [vmem:[#allocation10 + $0x60] sm:$0xff] }
 0x779   :  { %v4916_v35 = vpop.eup %4915  ;;  %v890_v33 = vadd.f32 1e-12, %v886_v1  ;;  %v4671_v1 = vld [vmem:[#allocation10 + $0x10] sm:$0xff] }
 0x77a   :  { %v897_v49 = vmul.f32 %v4914_v40, %v896_v47  ;;  %v903_v52 = vmul.f32 %v4916_v35, %v889_v41  ;;  %vm909_vm2 = vweird.f32 %v4916_v35  ;;  %v4690_v41 = vld [vmem:[#allocation10 + $0xa8] sm:$0xff]  ;;  %v4695_v47 = vld [vmem:[#allocation10 + $0xd0] sm:$0xff] }
 0x77b   :  { %4917 = vrsqrt.f32 %v890_v33  ;;  %vm910_vm4 = vmor %vm908_vm3, %vm909_vm2  ;;  %vm918_vm6 = vweird.f32 %v890_v33  ;;  %1695 = vmatpush.bf16.msrb.mxu0 %v4697_v39  ;;  %1675 = vmatpush.bf16.msra.mxu3 %v4690_v41 }
 0x77c   :  { %v904_v5 = vmul.f32 %v4916_v35, %v903_v52  ;;  %v901_v53 = vsel %vm900_vm1, %v4914_v40, %v897_v49  ;;  %v4682_v40 = vld [vmem:[#allocation10 + $0x68] sm:$0xff]  ;;  %v980_v49 = vld [vmem:[%s5964_s8] ss:$2 sm:$0xf] }
 0x77d   :  { %v932_v60 = vmul.f32 %v901_v53, %v5470_v0  ;;  %v4670_v52 = vld [vmem:[#allocation10 + $0x8] sm:$0xff]  ;;  %v4679_v53 = vld [vmem:[#allocation10 + $0x50] sm:$0xff] }
 0x77e   :  { %v905_v55 = vmul.f32 0.5, %v904_v5  ;;  %v883_v56 = vpop.xlane.xlu1 %882  ;;  %v4694_v5 = vld [vmem:[#allocation10 + $0xc8] sm:$0xff] }
 0x77f   :  { %v887_v57 = vmul.f32 %v883_v56, %v5349_v10  ;;  %v937_v17 = vmul.f32 %v936_v61, %v932_v60  ;;  %1696 = vmatpush.bf16.msrb.mxu0 %v4696_v44  ;;  %1676 = vmatpush.bf16.msra.mxu3 %v4689_v14  ;;  %v5514_v56 = vperm.slane %v980_v49, 0 }
 0x780   :  { %v906_v58 = vsub.f32 1.5, %v905_v55  ;;  %v4687_v55 = vld [vmem:[#allocation10 + $0x90] sm:$0xff] }
 0x781   :  { %v4918_v59 = vpop.eup %4917  ;;  %v891_v7 = vadd.f32 1e-12, %v887_v57  ;;  %v5497_v0 = vadd.f32 %v941_v4, %v937_v17  ;;  %v5516_v57 = vperm.slane %v980_v49, 3  ;;  %v4677_v17 = vld [vmem:[#allocation10 + $0x40] sm:$0xff] }
 0x782   :  { %v907_v62 = vmul.f32 %v4916_v35, %v906_v58  ;;  %v913_v63 = vmul.f32 %v4918_v59, %v890_v33  ;;  %vm919_vm5 = vweird.f32 %v4918_v59  ;;  %v4688_v33 = vld [vmem:[#allocation10 + $0x98] sm:$0xff]  ;;  %v4669_v58 = vld [vmem:[#allocation10] sm:$0xff] }
 0x783   :  { %4919 = vrsqrt.f32 %v891_v7  ;;  %vm920_vm7 = vmor %vm918_vm6, %vm919_vm5  ;;  %vm928_vm9 = vweird.f32 %v891_v7  ;;  %1697 = vmatpush.bf16.msrb.mxu0 %v4695_v47  ;;  %1677 = vmatpush.bf16.msra.mxu3 %v4688_v33 }
 0x784   :  { %v911_v13 = vsel %vm910_vm4, %v4916_v35, %v907_v62  ;;  %v914_v2 = vmul.f32 %v4918_v59, %v913_v63  ;;  %v4680_v35 = vld [vmem:[#allocation10 + $0x58] sm:$0xff] }
 0x785   :  { %v933_v3 = vmul.f32 %v911_v13, %v5475_v48 }
 0x786   :  { %v915_v6 = vmul.f32 0.5, %v914_v2 }
 0x787   :  { %v938_v8 = vmul.f32 %v936_v61, %v933_v3  ;;  %1698 = vmatpush.bf16.msrb.mxu0 %v4694_v5  ;;  %1678 = vmatpush.bf16.msra.mxu3 %v4687_v55  ;;  %v5520_v3 = vperm.slane %v980_v49, 1 }
 0x788   :  { %v916_v9 = vsub.f32 1.5, %v915_v6 }
 0x789   :  { %v4920_v11 = vpop.eup %4919  ;;  %v5499_v12 = vadd.f32 %v941_v4, %v938_v8  ;;  %v5522_v8 = vperm.slane %v980_v49, 2 }
 0x78a   :  { %v917_v51 = vmul.f32 %v4918_v59, %v916_v9  ;;  %v923_v15 = vmul.f32 %v4920_v11, %v891_v7  ;;  %vm929_vm8 = vweird.f32 %v4920_v11  ;;  %v4678_v7 = vld [vmem:[#allocation10 + $0x48] sm:$0xff] }
 0x78b   :  { %v946_v16 = vpack.c.bf16 %v5499_v12, %v5497_v0  ;;  %vm930_vm10 = vmor %vm928_vm9, %vm929_vm8 }
 0x78c   :  { %v924_v18 = vmul.f32 %v4920_v11, %v923_v15  ;;  %v921_v29 = vsel %vm920_vm7, %v4918_v59, %v917_v51  ;;  %v4693_v59 = vld [vmem:[#allocation10 + $0xc0] sm:$0xff] }
 0x78d   :  { %1158 = vmatmul.bf16.vlgmr.msrb.gmra.mxu1 %v946_v16  ;;  %1177 = vmatmul.bf16.vlgmr.msra.gmra.mxu2 %v946_v16  ;;  %v934_v20 = vmul.f32 %v921_v29, %v5480_v50  ;;  %v4676_v50 = vld [vmem:[#allocation10 + $0x38] sm:$0xff] }
 0x78e   :  { %v925_v48 = vmul.f32 0.5, %v924_v18  ;;  %1196 = vmatmul.bf16.vlgmr.msrb.gmra.mxu3 %v946_v16  ;;  %1215 = vmatmul.bf16.vlgmr.msra.gmra.mxu0 %v946_v16 }
 0x78f   :  { %v939_v24 = vmul.f32 %v936_v61, %v934_v20  ;;  %1635 = vmatpush.bf16.msra.mxu1 %v4676_v50  ;;  %1699 = vmatpush.bf16.msrb.mxu0 %v4693_v59 }
 0x790   :  { %v926_v19 = vsub.f32 1.5, %v925_v48 }
 0x791   :  { %v5505_v26 = vadd.f32 %v941_v4, %v939_v24 }
 0x792   :  { %v927_v21 = vmul.f32 %v4920_v11, %v926_v19 }
 0x793   :  { %1636 = vmatpush.bf16.msra.mxu1 %v4675_v31 }
 0x794   :  { %v931_v22 = vsel %vm930_vm10, %v4920_v11, %v927_v21 }
 0x795   :  { %v935_v23 = vmul.f32 %v931_v22, %v5485_v54  ;;  %v4684_v54 = vld [vmem:[#allocation10 + $0x78] sm:$0xff] }
 0x796   :  { %1654 = vmatpush.bf16.msrb.mxu2 %v4684_v54 }
 0x797   :  { %v940_v25 = vmul.f32 %v936_v61, %v935_v23  ;;  %1637 = vmatpush.bf16.msra.mxu1 %v4674_v46  ;;  %v4686_v61 = vld [vmem:[#allocation10 + $0x88] sm:$0xff] }
 0x798   :  { %1679 = vmatpush.bf16.msra.mxu3 %v4686_v61 }
 0x799   :  { %v5507_v27 = vadd.f32 %v941_v4, %v940_v25  ;;  %v4685_v4 = vld [vmem:[#allocation10 + $0x80] sm:$0xff] }
 0x79a   :  { %1655 = vmatpush.bf16.msrb.mxu2 %v4683_v36 }
 0x79b   :  { %v947_v28 = vpack.c.bf16 %v5507_v27, %v5505_v26  ;;  %1638 = vmatpush.bf16.msra.mxu1 %v4673_v38 }
 0x79c   :  { %1680 = vmatpush.bf16.msra.mxu3 %v4685_v4 }
 0x79d   :  { %1163 = vmatmul.bf16.gmra.mxu1 %v947_v28  ;;  %1182 = vmatmul.bf16.gmra.mxu2 %v947_v28 }
 0x79e   :  { %1201 = vmatmul.bf16.gmra.mxu3 %v947_v28  ;;  %1220 = vmatmul.bf16.gmra.mxu0 %v947_v28 }
 0x79f   :  { %1656 = vmatpush.bf16.msrb.mxu2 %v4682_v40  ;;  %1639 = vmatpush.bf16.msra.mxu1 %v4672_v43 }
 0x7a3   :  { %1657 = vmatpush.bf16.msrb.mxu2 %v4681_v45  ;;  %1640 = vmatpush.bf16.msra.mxu1 %v4671_v1 }
 0x7a7   :  { %1658 = vmatpush.bf16.msrb.mxu2 %v4680_v35  ;;  %1641 = vmatpush.bf16.msra.mxu1 %v4670_v52 }
 0x7ab   :  { %1659 = vmatpush.bf16.msrb.mxu2 %v4679_v53  ;;  %1642 = vmatpush.bf16.msra.mxu1 %v4669_v58 }
 0x7af   :  { %1660 = vmatpush.bf16.msrb.mxu2 %v4678_v7 }
 0x7b3   :  { %1661 = vmatpush.bf16.msrb.mxu2 %v4677_v17 }
 0x80a   :  { %v1159_v60 = vpop.f32.mrf.mxu1 }
 0x80b   :  { %v1160_v62 = vadd.f32 %v1159_v60, %v5514_v56  ;;  %v1216_v63 = vpop.f32.mrf.mxu0 }
 0x80c   :  { %v1217_v13 = vadd.f32 %v1216_v63, %v5516_v57 }
 0x80d   :  { %v1242_v2 = vmul.f32 0.044715, %v1160_v62  ;;  %v1226_v5 = vmul.f32 0.5, %v1160_v62 }
 0x80e   :  { %v1245_v6 = vmul.f32 0.044715, %v1217_v13  ;;  %v1229_v53 = vmul.f32 0.5, %v1217_v13 }
 0x80f   :  { %v1258_v9 = vmul.f32 %v1242_v2, %v1160_v62 }
 0x810   :  { %v1261_v11 = vmul.f32 %v1245_v6, %v1217_v13  ;;  %v1178_v51 = vpop.f32.mrf.mxu2 }
 0x811   :  { %v1274_v15 = vmul.f32 %v1258_v9, %v1160_v62  ;;  %v1179_v16 = vadd.f32 %v1178_v51, %v5520_v3  ;;  %v1197_v18 = vpop.f32.mrf.mxu3 }
 0x812   :  { %v1277_v29 = vmul.f32 %v1261_v11, %v1217_v13  ;;  %v1198_v48 = vadd.f32 %v1197_v18, %v5522_v8  ;;  %v1161_v19 = vpop.f32.mrf.mxu1 }
 0x813   :  { %v1290_v20 = vadd.f32 %v1274_v15, %v1160_v62  ;;  %v1243_v21 = vmul.f32 0.044715, %v1179_v16  ;;  %v1162_v22 = vadd.f32 %v1161_v19, %v5514_v56  ;;  %v1218_v23 = vpop.f32.mrf.mxu0  ;;  %v5537_v9 = vmul.f32 0.5, %v1179_v16 }
 0x814   :  { %v1293_v24 = vadd.f32 %v1277_v29, %v1217_v13  ;;  %v1244_v25 = vmul.f32 0.044715, %v1198_v48  ;;  %v1219_v28 = vadd.f32 %v1218_v23, %v5516_v57  ;;  %v5539_v11 = vmul.f32 0.5, %v1198_v48 }
 0x815   :  { %v1306_v50 = vmul.f32 0.7978846, %v1290_v20  ;;  %v1259_v30 = vmul.f32 %v1243_v21, %v1179_v16  ;;  %v1246_v31 = vmul.f32 0.044715, %v1162_v22  ;;  %v1230_v15 = vmul.f32 0.5, %v1162_v22 }
 0x816   :  { %v1309_v42 = vmul.f32 0.7978846, %v1293_v24  ;;  %v1260_v54 = vmul.f32 %v1244_v25, %v1198_v48  ;;  %v1249_v32 = vmul.f32 0.044715, %v1219_v28  ;;  %v1233_v20 = vmul.f32 0.5, %v1219_v28 }
 0x817   :  { %v1275_v46 = vmul.f32 %v1259_v30, %v1179_v16  ;;  %v1262_v34 = vmul.f32 %v1246_v31, %v1162_v22  ;;  %4921 = vtanh.f32 %v1306_v50 }
 0x818   :  { %v1276_v36 = vmul.f32 %v1260_v54, %v1198_v48  ;;  %v1265_v37 = vmul.f32 %v1249_v32, %v1219_v28  ;;  %v1180_v38 = vpop.f32.mrf.mxu2  ;;  %4923 = vtanh.f32 %v1309_v42 }
 0x819   :  { %v1291_v39 = vadd.f32 %v1275_v46, %v1179_v16  ;;  %v1278_v40 = vmul.f32 %v1262_v34, %v1162_v22  ;;  %v1181_v41 = vadd.f32 %v1180_v38, %v5520_v3  ;;  %v1199_v43 = vpop.f32.mrf.mxu3 }
 0x81a   :  { %v1292_v44 = vadd.f32 %v1276_v36, %v1198_v48  ;;  %v1281_v45 = vmul.f32 %v1265_v37, %v1219_v28  ;;  %v1200_v14 = vadd.f32 %v1199_v43, %v5522_v8  ;;  %v1164_v1 = vpop.f32.mrf.mxu1 }
 0x81b   :  { %v1247_v47 = vmul.f32 0.044715, %v1181_v41  ;;  %v5531_v35 = vadd.f32 %v1164_v1, %v5514_v56  ;;  %v1221_v33 = vpop.f32.mrf.mxu0  ;;  %v1294_v49 = vadd.f32 %v1278_v40, %v1162_v22  ;;  %v1307_v59 = vmul.f32 0.7978846, %v1291_v39 }
 0x81c   :  { %v1248_v52 = vmul.f32 0.044715, %v1200_v14  ;;  %v1297_v55 = vadd.f32 %v1281_v45, %v1219_v28  ;;  %v5534_v7 = vadd.f32 %v1221_v33, %v5516_v57  ;;  %v1308_v63 = vmul.f32 0.7978846, %v1292_v44 }
 0x81d   :  { %v4922_v58 = vpop.eup %4921  ;;  %v1263_v60 = vmul.f32 %v1247_v47, %v1181_v41  ;;  %v1310_v61 = vmul.f32 0.7978846, %v1294_v49  ;;  %v1250_v17 = vmul.f32 0.044715, %v5531_v35  ;;  %v1231_v24 = vmul.f32 0.5, %v1181_v41 }
 0x81e   :  { %v1264_v2 = vmul.f32 %v1248_v52, %v1200_v14  ;;  %v1313_v4 = vmul.f32 0.7978846, %v1297_v55  ;;  %v4924_v62 = vpop.eup %4923  ;;  %v1338_v18 = vadd.f32 1.0, %v4922_v58  ;;  %v1253_v29 = vmul.f32 0.044715, %v5534_v7 }
 0x81f   :  { %v1279_v6 = vmul.f32 %v1263_v60, %v1181_v41  ;;  %4925 = vtanh.f32 %v1310_v61  ;;  %v1266_v16 = vmul.f32 %v1250_v17, %v5531_v35  ;;  %v1341_v30 = vadd.f32 1.0, %v4924_v62 }
 0x820   :  { %v1280_v13 = vmul.f32 %v1264_v2, %v1200_v14  ;;  %v1183_v51 = vpop.f32.mrf.mxu2  ;;  %4927 = vtanh.f32 %v1313_v4  ;;  %v1232_v31 = vmul.f32 0.5, %v1200_v14  ;;  %v1354_v54 = vmul.f32 %v1338_v18, %v1226_v5 }
 0x821   :  { %v1202_v19 = vpop.f32.mrf.mxu3  ;;  %v1295_v21 = vadd.f32 %v1279_v6, %v1181_v41  ;;  %4929 = vtanh.f32 %v1307_v59  ;;  %v1282_v32 = vmul.f32 %v1266_v16, %v5531_v35  ;;  %v5551_v34 = vadd.f32 %v1183_v51, %v5520_v3 }
 0x822   :  { %v1166_v23 = vpop.f32.mrf.mxu1  ;;  %v1296_v25 = vadd.f32 %v1280_v13, %v1200_v14  ;;  %4931 = vtanh.f32 %v1308_v63  ;;  %v5556_v38 = vadd.f32 %v1202_v19, %v5522_v8  ;;  %v1357_v43 = vmul.f32 %v1341_v30, %v1229_v53 }
 0x823   :  { %v5544_v48 = vadd.f32 %v1166_v23, %v5514_v56  ;;  %v1223_v50 = vpop.f32.mrf.mxu0  ;;  %v1311_v22 = vmul.f32 0.7978846, %v1295_v21  ;;  %v1269_v56 = vmul.f32 %v1253_v29, %v5534_v7  ;;  %v1251_v5 = vmul.f32 0.044715, %v5551_v34 }
 0x824   :  { %v5547_v42 = vadd.f32 %v1223_v50, %v5516_v57  ;;  %v1312_v28 = vmul.f32 0.7978846, %v1296_v25  ;;  %v1298_v57 = vadd.f32 %v1282_v32, %v5531_v35  ;;  %v1252_v60 = vmul.f32 0.044715, %v5556_v38 }
 0x825   :  { %v4926_v46 = vpop.eup %4925  ;;  %4933 = vtanh.f32 %v1311_v22  ;;  %v1254_v36 = vmul.f32 0.044715, %v5544_v48  ;;  %v1285_v52 = vmul.f32 %v1269_v56, %v5534_v7 }
 0x826   :  { %v4928_v37 = vpop.eup %4927  ;;  %v1342_v39 = vadd.f32 1.0, %v4926_v46  ;;  %4935 = vtanh.f32 %v1312_v28  ;;  %v1257_v45 = vmul.f32 0.044715, %v5547_v42  ;;  %v1314_v49 = vmul.f32 0.7978846, %v1298_v57 }
 0x827   :  { %v4930_v40 = vpop.eup %4929  ;;  %v1345_v41 = vadd.f32 1.0, %v4928_v37  ;;  %v1270_v44 = vmul.f32 %v1254_v36, %v5544_v48 }
 0x828   :  { %v4932_v14 = vpop.eup %4931  ;;  %v1185_v1 = vpop.f32.mrf.mxu2  ;;  %v1358_v47 = vmul.f32 %v1342_v39, %v1230_v15  ;;  %v1339_v33 = vadd.f32 1.0, %v4930_v40  ;;  %4937 = vtanh.f32 %v1314_v49  ;;  %v1273_v62 = vmul.f32 %v1257_v45, %v5547_v42 }
 0x829   :  { %v5564_v55 = vadd.f32 %v1185_v1, %v5520_v3  ;;  %v1204_v58 = vpop.f32.mrf.mxu3  ;;  %v1361_v59 = vmul.f32 %v1345_v41, %v1233_v20  ;;  %v1286_v53 = vmul.f32 %v1270_v44, %v5544_v48  ;;  %v1340_v63 = vadd.f32 1.0, %v4932_v14 }
 0x82a   :  { %v1370_v61 = vpack.c.bf16 %v1358_v47, %v1354_v54  ;;  %v5569_v17 = vadd.f32 %v1204_v58, %v5522_v8  ;;  %v1355_v51 = vmul.f32 %v1339_v33, %v5537_v9  ;;  %v1301_v15 = vadd.f32 %v1285_v52, %v5534_v7 }
 0x82b   :  { %v4934_v2 = vpop.eup %4933  ;;  %v1373_v4 = vpack.c.bf16 %v1361_v59, %v1357_v43  ;;  %v1302_v6 = vadd.f32 %v1286_v53, %v5544_v48  ;;  %v1255_v18 = vmul.f32 0.044715, %v5564_v55  ;;  %v1289_v8 = vmul.f32 %v1273_v62, %v5547_v42 }
 0x82c   :  { %v4936_v3 = vpop.eup %4935  ;;  %1643 = vmatmul.bf16.vlgmr.msra.gmra.mxu1 %v1370_v61  ;;  %v1343_v13 = vadd.f32 1.0, %v4934_v2  ;;  %v1267_v20 = vmul.f32 %v1251_v5, %v5551_v34  ;;  %v1356_v23 = vmul.f32 %v1340_v63, %v5539_v11  ;;  %v1317_v25 = vmul.f32 0.7978846, %v1301_v15 }
 0x82d   :  { %1700 = vmatmul.bf16.vlgmr.msrb.gmra.mxu0 %v1373_v4  ;;  %v1344_v29 = vadd.f32 1.0, %v4936_v3  ;;  %v1318_v19 = vmul.f32 0.7978846, %v1302_v6  ;;  %v1271_v16 = vmul.f32 %v1255_v18, %v5564_v55  ;;  %v1305_v9 = vadd.f32 %v1289_v8, %v5547_v42 }
 0x82e   :  { %v1359_v21 = vmul.f32 %v1343_v13, %v1231_v24  ;;  %v1283_v30 = vmul.f32 %v1267_v20, %v5551_v34  ;;  %v4938_v22 = vpop.eup %4937  ;;  %v1256_v36 = vmul.f32 0.044715, %v5569_v17  ;;  %v1234_v43 = vmul.f32 0.5, %v5531_v35 }
 0x82f   :  { %v1360_v50 = vmul.f32 %v1344_v29, %v1232_v31  ;;  %4939 = vtanh.f32 %v1318_v19  ;;  %v1287_v28 = vmul.f32 %v1271_v16, %v5564_v55  ;;  %v1321_v46 = vmul.f32 0.7978846, %v1305_v9 }
 0x830   :  { %v1371_v54 = vpack.c.bf16 %v1359_v21, %v1355_v51  ;;  %4941 = vtanh.f32 %v1317_v25  ;;  %v1299_v24 = vadd.f32 %v1283_v30, %v5551_v34  ;;  %v1268_v31 = vmul.f32 %v1252_v60, %v5556_v38 }
 0x831   :  { %v1372_v32 = vpack.c.bf16 %v1360_v50, %v1356_v23  ;;  %v1303_v11 = vadd.f32 %v1287_v28, %v5564_v55  ;;  %v1346_v56 = vadd.f32 1.0, %v4938_v22  ;;  %4943 = vtanh.f32 %v1321_v46  ;;  %v5603_v50 = vld [vmem:[%s5963_s7] sm:$0xff] }
 0x832   :  { %1662 = vmatmul.bf16.vlgmr.msrb.gmra.mxu2 %v1371_v54  ;;  %v1315_v37 = vmul.f32 0.7978846, %v1299_v24  ;;  %v1272_v57 = vmul.f32 %v1256_v36, %v5569_v17  ;;  %v1284_v40 = vmul.f32 %v1268_v31, %v5556_v38  ;;  %v1238_v44 = vmul.f32 0.5, %v5544_v48 }
 0x833   :  { %1681 = vmatmul.bf16.vlgmr.msra.gmra.mxu3 %v1372_v32  ;;  %v1319_v39 = vmul.f32 0.7978846, %v1303_v11  ;;  %v1362_v33 = vmul.f32 %v1346_v56, %v1234_v43  ;;  %v1237_v53 = vmul.f32 0.5, %v5534_v7  ;;  %v1241_v35 = vmul.f32 0.5, %v5547_v42 }
 0x834   :  { %4945 = vtanh.f32 %v1315_v37  ;;  %v1288_v1 = vmul.f32 %v1272_v57, %v5569_v17  ;;  %v1300_v47 = vadd.f32 %v1284_v40, %v5556_v38  ;;  %v1235_v3 = vmul.f32 0.5, %v5551_v34 }
 0x835   :  { %v4940_v41 = vpop.eup %4939  ;;  %4947 = vtanh.f32 %v1319_v39  ;;  %v1239_v13 = vmul.f32 0.5, %v5564_v55  ;;  %v1236_v20 = vmul.f32 0.5, %v5556_v38  ;;  %v1240_v21 = vmul.f32 0.5, %v5569_v17 }
 0x836   :  { %v4942_v45 = vpop.eup %4941  ;;  %v1350_v14 = vadd.f32 1.0, %v4940_v41  ;;  %v1304_v5 = vadd.f32 %v1288_v1, %v5569_v17  ;;  %v1316_v58 = vmul.f32 0.7978846, %v1300_v47  ;;  %v1442_v9 = vperm.slane %v5603_v50, 4 }
 0x837   :  { %v1349_v52 = vadd.f32 1.0, %v4942_v45  ;;  %v4944_v59 = vpop.eup %4943 }
 0x838   :  { %v1366_v49 = vmul.f32 %v1350_v14, %v1238_v44  ;;  %v1353_v60 = vadd.f32 1.0, %v4944_v59  ;;  %v1320_v61 = vmul.f32 0.7978846, %v1304_v5  ;;  %4949 = vtanh.f32 %v1316_v58 }
 0x839   :  { %v1365_v4 = vmul.f32 %v1349_v52, %v1237_v53 }
 0x83a   :  { %v1374_v48 = vpack.c.bf16 %v1366_v49, %v1362_v33  ;;  %v4946_v63 = vpop.eup %4945  ;;  %v1369_v6 = vmul.f32 %v1353_v60, %v1241_v35  ;;  %4951 = vtanh.f32 %v1320_v61 }
 0x83b   :  { %v4948_v2 = vpop.eup %4947  ;;  %v1347_v62 = vadd.f32 1.0, %v4946_v63 }
 0x83c   :  { %1648 = vmatmul.bf16.gmra.mxu1 %v1374_v48  ;;  %v1351_v51 = vadd.f32 1.0, %v4948_v2  ;;  %v1377_v15 = vpack.c.bf16 %v1369_v6, %v1365_v4 }
 0x83d   :  { %v1363_v7 = vmul.f32 %v1347_v62, %v1235_v3 }
 0x83e   :  { %v1367_v18 = vmul.f32 %v1351_v51, %v1239_v13  ;;  %v4950_v42 = vpop.eup %4949  ;;  %1705 = vmatmul.bf16.gmra.mxu0 %v1377_v15 }
 0x83f   :  { %v1348_v19 = vadd.f32 1.0, %v4950_v42 }
 0x840   :  { %v1375_v29 = vpack.c.bf16 %v1367_v18, %v1363_v7  ;;  %v4952_v8 = vpop.eup %4951 }
 0x841   :  { %v1352_v23 = vadd.f32 1.0, %v4952_v8  ;;  %v1364_v25 = vmul.f32 %v1348_v19, %v1236_v20  ;;  %v4723_v19 = vld [vmem:[#allocation5 + $0x170] sm:$0xf0]  ;;  %v4722_v8 = vld [vmem:[#allocation5 + $0x16c] sm:$0xf] }
 0x842   :  { %1667 = vmatmul.bf16.gmra.mxu2 %v1375_v29  ;;  %v4170_v29 = vld [vmem:[#allocation5 + $0x168] sm:$0xf] }
 0x843   :  { %v1368_v16 = vmul.f32 %v1352_v23, %v1240_v21  ;;  %v4171_v20 = vor.u32 %v4723_v19, %v4170_v29  ;;  %v4172_v21 = vld [vmem:[#allocation5 + $0x174] sm:$0xf0]  ;;  %v4178_v23 = vld [vmem:[#allocation5 + $0x170] sm:$0xf] }
 0x844   :  { %v4098_v19 = vld [vmem:[#allocation5 + $0xd8] sm:$0xf] }
 0x845   :  { %v1376_v34 = vpack.c.bf16 %v1368_v16, %v1364_v25  ;;  %v4724_v25 = vld [vmem:[#allocation5 + $0x178] sm:$0xf0]  ;;  %v4175_v16 = vor.u32 %v4722_v8, %v4172_v21  ;;  %1971 = vmatpush.bf16.msrb.mxu1 %v4171_v20  ;;  %v4705_v8 = vld [vmem:[#allocation5 + $0xe0] sm:$0xf0] }
 0x846   :  { %v4704_v20 = vld [vmem:[#allocation5 + $0xdc] sm:$0xf] }
 0x847   :  { %1686 = vmatmul.bf16.gmra.mxu3 %v1376_v34  ;;  %v4179_v34 = vor.u32 %v4724_v25, %v4178_v23  ;;  %1990 = vmatpush.bf16.msra.mxu2 %v4175_v16  ;;  %v4099_v25 = vor.u32 %v4705_v8, %v4098_v19  ;;  %v4100_v16 = vld [vmem:[#allocation5 + $0xe4] sm:$0xf0] }
 0x849   :  { %2009 = vmatpush.bf16.msrb.mxu3 %v4179_v34  ;;  %v4106_v34 = vld [vmem:[#allocation5 + $0xe0] sm:$0xf] }
 0x8a9   :  { %v1644_v55 = vpop.f32.mrf.mxu1 }
 0x8aa   :  { %v1645_v30 = vadd.f32 %v1644_v55, %v1442_v9  ;;  %v1701_v38 = vpop.f32.mrf.mxu0  ;;  %v4158_v55 = vld [vmem:[#allocation5 + $0x150] sm:$0xf] }
 0x8b1   :  { %v1646_v32 = vpop.f32.mrf.mxu1 }
 0x8b2   :  { %v1647_v24 = vadd.f32 %v1646_v32, %v1442_v9  ;;  %v1703_v39 = vpop.f32.mrf.mxu0 }
 0x8b5   :  { %v1663_v22 = vpop.f32.mrf.mxu2 }
 0x8b6   :  { %v1664_v54 = vadd.f32 %v1663_v22, %v1645_v30  ;;  %v1682_v28 = vpop.f32.mrf.mxu3  ;;  %v4719_v30 = vld [vmem:[#allocation5 + $0x154] sm:$0xf] }
 0x8b8   :  { %v1683_v17 = vadd.f32 %v1682_v28, %v1664_v54  ;;  %v4160_v54 = vld [vmem:[#allocation5 + $0x15c] sm:$0xf0]  ;;  %v4166_v28 = vld [vmem:[#allocation5 + $0x158] sm:$0xf] }
 0x8b9   :  { %v1649_v57 = vpop.f32.mrf.mxu1  ;;  %v4163_v32 = vor.u32 %v4719_v30, %v4160_v54  ;;  %v4706_v30 = vld [vmem:[#allocation5 + $0xe8] sm:$0xf0] }
 0x8ba   :  { %v1702_v46 = vadd.f32 %v1701_v38, %v1683_v17  ;;  %v1650_v44 = vadd.f32 %v1649_v57, %v1442_v9  ;;  %v4721_v38 = vld [vmem:[#allocation5 + $0x160] sm:$0xf0] }
 0x8bb   :  { %v1706_v14 = vpop.f32.mrf.mxu0  ;;  %v4167_v17 = vor.u32 %v4721_v38, %v4166_v28  ;;  %1991 = vmatpush.bf16.msra.mxu2 %v4163_v32  ;;  %v4086_v28 = vld [vmem:[#allocation5 + $0xc0] sm:$0xf]  ;;  %v4702_v38 = vld [vmem:[#allocation5 + $0xc8] sm:$0xf0]  ;;  %v4701_v32 = vld [vmem:[#allocation5 + $0xc4] sm:$0xf] }
 0x8bc   :  { %v1711_v11 = vadd.f32 %v1702_v46, %v5497_v0  ;;  %v4146_v46 = vld [vmem:[#allocation5 + $0x138] sm:$0xf] }
 0x8bd   :  { %v1665_v36 = vpop.f32.mrf.mxu2  ;;  %2010 = vmatpush.bf16.msrb.mxu3 %v4167_v17  ;;  %v4087_v17 = vor.u32 %v4702_v38, %v4086_v28 }
 0x8be   :  { %v1666_v31 = vadd.f32 %v1665_v36, %v1647_v24  ;;  %1715 = vadd.xlane.f32.xlu2 %v1711_v11  ;;  %v1684_v56 = vpop.f32.mrf.mxu3  ;;  %v4717_v24 = vld [vmem:[#allocation5 + $0x140] sm:$0xf0] }
 0x8bf   :  { %v4147_v36 = vor.u32 %v4717_v24, %v4146_v46  ;;  %v4088_v46 = vld [vmem:[#allocation5 + $0xcc] sm:$0xf0]  ;;  %v4094_v24 = vld [vmem:[#allocation5 + $0xc8] sm:$0xf] }
 0x8c0   :  { %v1685_v37 = vadd.f32 %v1684_v56, %v1666_v31  ;;  %v4148_v31 = vld [vmem:[#allocation5 + $0x144] sm:$0xf0]  ;;  %v4154_v56 = vld [vmem:[#allocation5 + $0x140] sm:$0xf] }
 0x8c1   :  { %v1651_v1 = vpop.f32.mrf.mxu1 }
 0x8c2   :  { %v1704_v40 = vadd.f32 %v1703_v39, %v1685_v37  ;;  %v1652_v0 = vadd.f32 %v1651_v1, %v1442_v9  ;;  %v4720_v9 = vld [vmem:[#allocation5 + $0x158] sm:$0xf0]  ;;  %v4718_v37 = vld [vmem:[#allocation5 + $0x148] sm:$0xf0]  ;;  %v4715_v1 = vld [vmem:[#allocation5 + $0x130] sm:$0xf0] }
 0x8c3   :  { %v1708_v35 = vpop.f32.mrf.mxu0  ;;  %v4159_v22 = vor.u32 %v4720_v9, %v4158_v55  ;;  %v4155_v57 = vor.u32 %v4718_v37, %v4154_v56  ;;  %v4103_v9 = vor.u32 %v4704_v20, %v4100_v16 }
 0x8c4   :  { %v1712_v41 = vadd.f32 %v1704_v40, %v5499_v12  ;;  %v4134_v40 = vld [vmem:[#allocation5 + $0x120] sm:$0xf] }
 0x8c5   :  { %v1668_v43 = vpop.f32.mrf.mxu2  ;;  %1972 = vmatpush.bf16.msrb.mxu1 %v4159_v22  ;;  %2011 = vmatpush.bf16.msrb.mxu3 %v4155_v57  ;;  %v4107_v22 = vor.u32 %v4706_v30, %v4106_v34 }
 0x8c6   :  { %1717 = vadd.xlane.f32.xlu0 %v1712_v41  ;;  %v1669_v45 = vadd.f32 %v1668_v43, %v1650_v44  ;;  %v4713_v43 = vld [vmem:[#allocation5 + $0x124] sm:$0xf] }
 0x8c9   :  { %1973 = vmatpush.bf16.msrb.mxu1 %v4147_v36 }
 0x8ca   :  { %v1687_v47 = vpop.f32.mrf.mxu3 }
 0x8cb   :  { %v1688_v33 = vadd.f32 %v1687_v47, %v1669_v45  ;;  %v4136_v45 = vld [vmem:[#allocation5 + $0x12c] sm:$0xf0] }
 0x8cd   :  { %v1670_v49 = vpop.f32.mrf.mxu2  ;;  %v1707_v52 = vadd.f32 %v1706_v14, %v1688_v33  ;;  %v4142_v14 = vld [vmem:[#allocation5 + $0x128] sm:$0xf]  ;;  %v4139_v33 = vor.u32 %v4713_v43, %v4136_v45 }
 0x8ce   :  { %v1671_v5 = vadd.f32 %v1670_v49, %v1652_v0  ;;  %v4143_v49 = vor.u32 %v4715_v1, %v4142_v14 }
 0x8cf   :  { %v1713_v58 = vadd.f32 %v1707_v52, %v5505_v26  ;;  %v4122_v52 = vld [vmem:[#allocation5 + $0x108] sm:$0xf] }
 0x8d0   :  { %2012 = vmatpush.bf16.msrb.mxu3 %v4143_v49  ;;  %v1795_v49 = vperm.slane %v5603_v50, 7 }
 0x8d1   :  { %1719 = vadd.xlane.f32.xlu1 %v1713_v58 }
 0x8d2   :  { %v1689_v59 = vpop.f32.mrf.mxu3 }
 0x8d3   :  { %v1690_v53 = vadd.f32 %v1689_v59, %v1671_v5  ;;  %v4711_v5 = vld [vmem:[#allocation5 + $0x110] sm:$0xf0] }
 0x8d5   :  { %v1709_v48 = vadd.f32 %v1708_v35, %v1690_v53  ;;  %v4123_v53 = vor.u32 %v4711_v5, %v4122_v52  ;;  %v4124_v35 = vld [vmem:[#allocation5 + $0x114] sm:$0xf0] }
 0x8d7   :  { %v1714_v12 = vadd.f32 %v1709_v48, %v5507_v27  ;;  %v4130_v48 = vld [vmem:[#allocation5 + $0x110] sm:$0xf] }
 0x8d9   :  { %1721 = vadd.xlane.f32.xlu2 %v1714_v12 }
 0x931   :  { %v1716_v60 = vpop.xlane.xlu2 %1715 }
 0x932   :  { %v1723_v61 = vmul.f32 %v1716_v60, %v5349_v10  ;;  %v4712_v60 = vld [vmem:[#allocation5 + $0x118] sm:$0xf0] }
 0x934   :  { %v5611_v63 = vsub.f32 %v1711_v11, %v1723_v61  ;;  %v4716_v11 = vld [vmem:[#allocation5 + $0x13c] sm:$0xf]  ;;  %v4131_v61 = vor.u32 %v4712_v60, %v4130_v48 }
 0x935   :  { %v4151_v39 = vor.u32 %v4716_v11, %v4148_v31  ;;  %v4703_v11 = vld [vmem:[#allocation5 + $0xd0] sm:$0xf0]  ;;  %v4091_v31 = vor.u32 %v4701_v32, %v4088_v46 }
 0x936   :  { %v1731_v2 = vmul.f32 %v5611_v63, %v5611_v63  ;;  %2013 = vmatpush.bf16.msrb.mxu3 %v4131_v61  ;;  %v4095_v56 = vor.u32 %v4703_v11, %v4094_v24 }
 0x937   :  { %1992 = vmatpush.bf16.msra.mxu2 %v4151_v39 }
 0x938   :  { %1735 = vadd.xlane.f32.xlu0 %v1731_v2  ;;  %v4110_v2 = vld [vmem:[#allocation5 + $0xf0] sm:$0xf] }
 0x939   :  { %v1718_v4 = vpop.xlane.xlu0 %1717 }
 0x93a   :  { %v1724_v26 = vmul.f32 %v1718_v4, %v5349_v10  ;;  %v4708_v4 = vld [vmem:[#allocation5 + $0xf8] sm:$0xf0] }
 0x93b   :  { %1993 = vmatpush.bf16.msra.mxu2 %v4139_v33 }
 0x93c   :  { %v5616_v6 = vsub.f32 %v1712_v41, %v1724_v26  ;;  %v4714_v41 = vld [vmem:[#allocation5 + $0x128] sm:$0xf0]  ;;  %v4707_v26 = vld [vmem:[#allocation5 + $0xf4] sm:$0xf] }
 0x93d   :  { %v4135_v44 = vor.u32 %v4714_v41, %v4134_v40 }
 0x93e   :  { %v1732_v62 = vmul.f32 %v5616_v6, %v5616_v6 }
 0x93f   :  { %1974 = vmatpush.bf16.msrb.mxu1 %v4135_v44 }
 0x940   :  { %1737 = vadd.xlane.f32.xlu1 %v1732_v62  ;;  %v4111_v62 = vor.u32 %v4708_v4, %v4110_v2 }
 0x943   :  { %1975 = vmatpush.bf16.msrb.mxu1 %v4123_v53 }
 0x944   :  { %v1720_v27 = vpop.xlane.xlu1 %1719 }
 0x945   :  { %v1725_v3 = vmul.f32 %v1720_v27, %v5349_v10  ;;  %v4112_v27 = vld [vmem:[#allocation5 + $0xfc] sm:$0xf0] }
 0x947   :  { %v5621_v13 = vsub.f32 %v1713_v58, %v1725_v3  ;;  %v4710_v58 = vld [vmem:[#allocation5 + $0x10c] sm:$0xf]  ;;  %v4118_v3 = vld [vmem:[#allocation5 + $0xf8] sm:$0xf]  ;;  %1976 = vmatpush.bf16.msrb.mxu1 %v4111_v62 }
 0x949   :  { %v1733_v51 = vmul.f32 %v5621_v13, %v5621_v13 }
 0x94b   :  { %1739 = vadd.xlane.f32.xlu2 %v1733_v51  ;;  %v4709_v51 = vld [vmem:[#allocation5 + $0x100] sm:$0xf0]  ;;  %1977 = vmatpush.bf16.msrb.mxu1 %v4099_v25 }
 0x94c   :  { %v1722_v15 = vpop.xlane.xlu2 %1721 }
 0x94d   :  { %v1726_v7 = vmul.f32 %v1722_v15, %v5349_v10 }
 0x94f   :  { %v5626_v18 = vsub.f32 %v1714_v12, %v1726_v7  ;;  %v4127_v12 = vor.u32 %v4710_v58, %v4124_v35  ;;  %v4115_v7 = vor.u32 %v4707_v26, %v4112_v27  ;;  %1978 = vmatpush.bf16.msrb.mxu1 %v4087_v17  ;;  %v4869_v35 = vld [vmem:[%s5963_s7 + $0x8] ss:$0 sm:$0xff] }
 0x951   :  { %v1734_v42 = vmul.f32 %v5626_v18, %v5626_v18  ;;  %1994 = vmatpush.bf16.msra.mxu2 %v4127_v12 }
 0x953   :  { %1741 = vadd.xlane.f32.xlu0 %v1734_v42  ;;  %v4119_v42 = vor.u32 %v4709_v51, %v4118_v3 }
 0x955   :  { %1995 = vmatpush.bf16.msra.mxu2 %v4115_v7  ;;  %2014 = vmatpush.bf16.msrb.mxu3 %v4119_v42 }
 0x959   :  { %1996 = vmatpush.bf16.msra.mxu2 %v4103_v9  ;;  %2015 = vmatpush.bf16.msrb.mxu3 %v4107_v22 }
 0x95d   :  { %1997 = vmatpush.bf16.msra.mxu2 %v4091_v31  ;;  %2016 = vmatpush.bf16.msrb.mxu3 %v4095_v56 }
 0x9ab   :  { %v1736_v47 = vpop.xlane.xlu0 %1735 }
 0x9ac   :  { %v1743_v0 = vmul.f32 %v1736_v47, %v5349_v10 }
 0x9ae   :  { %v5631_v59 = vadd.f32 1e-12, %v1743_v0 }
 0x9b0   :  { %4953 = vrsqrt.f32 %v5631_v59  ;;  %vm1757_vm12 = vweird.f32 %v5631_v59 }
 0x9b3   :  { %v1738_v15 = vpop.xlane.xlu1 %1737 }
 0x9b4   :  { %v1744_v29 = vmul.f32 %v1738_v15, %v5349_v10 }
 0x9b6   :  { %v4954_v21 = vpop.eup %4953  ;;  %v1748_v23 = vadd.f32 1e-12, %v1744_v29 }
 0x9b7   :  { %v1752_v55 = vmul.f32 %v4954_v21, %v5631_v59  ;;  %vm1758_vm11 = vweird.f32 %v4954_v21 }
 0x9b8   :  { %4955 = vrsqrt.f32 %v1748_v23  ;;  %vm1759_vm15 = vmor %vm1757_vm12, %vm1758_vm11  ;;  %vm1767_vm1 = vweird.f32 %v1748_v23 }
 0x9b9   :  { %v1753_v54 = vmul.f32 %v4954_v21, %v1752_v55 }
 0x9bb   :  { %v1754_v36 = vmul.f32 0.5, %v1753_v54 }
 0x9bd   :  { %v1755_v37 = vsub.f32 1.5, %v1754_v36 }
 0x9be   :  { %v4956_v39 = vpop.eup %4955  ;;  %v1740_v41 = vpop.xlane.xlu2 %1739 }
 0x9bf   :  { %v1756_v57 = vmul.f32 %v4954_v21, %v1755_v37  ;;  %v1762_v40 = vmul.f32 %v4956_v39, %v1748_v23  ;;  %v1745_v44 = vmul.f32 %v1740_v41, %v5349_v10  ;;  %vm1768_vm0 = vweird.f32 %v4956_v39 }
 0x9c0   :  { %vm1769_vm2 = vmor %vm1767_vm1, %vm1768_vm0 }
 0x9c1   :  { %v1763_v43 = vmul.f32 %v4956_v39, %v1762_v40  ;;  %v1760_v45 = vsel %vm1759_vm15, %v4954_v21, %v1756_v57  ;;  %v1749_v1 = vadd.f32 1e-12, %v1745_v44 }
 0x9c2   :  { %v1791_v33 = vmul.f32 %v1760_v45, %v5611_v63 }
 0x9c3   :  { %v1764_v14 = vmul.f32 0.5, %v1763_v43  ;;  %4957 = vrsqrt.f32 %v1749_v1  ;;  %vm1777_vm4 = vweird.f32 %v1749_v1 }
 0x9c4   :  { %v1796_v53 = vmul.f32 %v1795_v49, %v1791_v33 }
 0x9c5   :  { %v1765_v47 = vsub.f32 1.5, %v1764_v14 }
 0x9c6   :  { %v1742_v52 = vpop.xlane.xlu0 %1741  ;;  %v5645_v61 = vadd.f32 %v4869_v35, %v1796_v53 }
 0x9c7   :  { %v1766_v0 = vmul.f32 %v4956_v39, %v1765_v47  ;;  %v1746_v58 = vmul.f32 %v1742_v52, %v5349_v10 }
 0x9c9   :  { %v1770_v5 = vsel %vm1769_vm2, %v4956_v39, %v1766_v0  ;;  %v4958_v48 = vpop.eup %4957  ;;  %v1750_v12 = vadd.f32 1e-12, %v1746_v58 }
 0x9ca   :  { %v1792_v59 = vmul.f32 %v1770_v5, %v5616_v6  ;;  %v1772_v60 = vmul.f32 %v4958_v48, %v1749_v1  ;;  %vm1778_vm3 = vweird.f32 %v4958_v48 }
 0x9cb   :  { %4959 = vrsqrt.f32 %v1750_v12  ;;  %vm1779_vm5 = vmor %vm1777_vm4, %vm1778_vm3  ;;  %vm1787_vm7 = vweird.f32 %v1750_v12 }
 0x9cc   :  { %v1797_v63 = vmul.f32 %v1795_v49, %v1792_v59  ;;  %v1773_v50 = vmul.f32 %v4958_v48, %v1772_v60 }
 0x9ce   :  { %v5647_v2 = vadd.f32 %v4869_v35, %v1797_v63  ;;  %v1774_v4 = vmul.f32 0.5, %v1773_v50 }
 0x9d0   :  { %v1808_v26 = vpack.c.bf16 %v5647_v2, %v5645_v61  ;;  %v1775_v6 = vsub.f32 1.5, %v1774_v4 }
 0x9d1   :  { %v4960_v62 = vpop.eup %4959 }
 0x9d2   :  { %1979 = vmatmul.bf16.vlgmr.msrb.gmra.mxu1 %v1808_v26  ;;  %1998 = vmatmul.bf16.vlgmr.msra.gmra.mxu2 %v1808_v26  ;;  %v1776_v27 = vmul.f32 %v4958_v48, %v1775_v6  ;;  %v1782_v3 = vmul.f32 %v4960_v62, %v1750_v12  ;;  %vm1788_vm6 = vweird.f32 %v4960_v62 }
 0x9d3   :  { %2017 = vmatmul.bf16.vlgmr.msrb.gmra.mxu3 %v1808_v26  ;;  %vm1789_vm8 = vmor %vm1787_vm7, %vm1788_vm6  ;;  %v5042_v26 = vld [vmem:[#allocation2] sm:$0xff] }
 0x9d4   :  { %v1783_v51 = vmul.f32 %v4960_v62, %v1782_v3  ;;  %v1780_v15 = vsel %vm1779_vm5, %v4958_v48, %v1776_v27  ;;  %v5043_v3 = vld [vmem:[#allocation2 + $0x8] sm:$0xff] }
 0x9d5   :  { %v1793_v29 = vmul.f32 %v1780_v15, %v5621_v13  ;;  %v5662_v13 = vld [vmem:[%s5963_s7 + $0x10] sm:$0xff] }
 0x9d6   :  { %v1784_v7 = vmul.f32 0.5, %v1783_v51  ;;  %v2033_v38 = vperm.slane %v5662_v13, 1  ;;  %v2038_v17 = vperm.slane %v5662_v13, 2 }
 0x9d7   :  { %v1798_v21 = vmul.f32 %v1795_v49, %v1793_v29 }
 0x9d8   :  { %v1785_v42 = vsub.f32 1.5, %v1784_v7 }
 0x9d9   :  { %v5653_v25 = vadd.f32 %v4869_v35, %v1798_v21 }
 0x9da   :  { %v1786_v19 = vmul.f32 %v4960_v62, %v1785_v42 }
 0x9dc   :  { %v1790_v8 = vsel %vm1789_vm8, %v4960_v62, %v1786_v19 }
 0x9dd   :  { %v1794_v20 = vmul.f32 %v1790_v8, %v5626_v18  ;;  %v2028_v18 = vperm.slane %v5662_v13, 0  ;;  %v5044_v8 = vld [vmem:[#allocation2 + $0x10] sm:$0xff] }
 0x9df   :  { %v1799_v23 = vmul.f32 %v1795_v49, %v1794_v20 }
 0x9e1   :  { %v5655_v16 = vadd.f32 %v4869_v35, %v1799_v23 }
 0x9e3   :  { %v1809_v34 = vpack.c.bf16 %v5655_v16, %v5653_v25 }
 0x9e5   :  { %1984 = vmatmul.bf16.gmra.mxu1 %v1809_v34  ;;  %2003 = vmatmul.bf16.gmra.mxu2 %v1809_v34 }
 0x9e6   :  { %2022 = vmatmul.bf16.gmra.mxu3 %v1809_v34 }
 0xa4f   :  { %v1980_v55 = vpop.f32.mrf.mxu1 }
 0xa50   :  { %v2029_v54 = vadd.f32 %v2028_v18, %v1980_v55 }
 0xa55   :  { %v1999_v9 = vpop.f32.mrf.mxu2 }
 0xa56   :  { %v2018_v30 = vpop.f32.mrf.mxu3  ;;  %v2034_v24 = vadd.f32 %v2033_v38, %v1999_v9 }
 0xa57   :  { %v1982_v22 = vpop.f32.mrf.mxu1  ;;  %v2039_v31 = vadd.f32 %v2038_v17, %v2018_v30 }
 0xa58   :  { %v2030_v28 = vadd.f32 %v2028_v18, %v1982_v22 }
 0xa5a   :  { %v2043_v32 = vpack.c.bf16 %v2030_v28, %v2029_v54 }
 0xa5c   :  { %2107 = vrot.lane.b32.xlu2 %v2043_v32, %s5235_s22 }
 0xa5d   :  { %v2001_v46 = vpop.f32.mrf.mxu2 }
 0xa5e   :  { %v2035_v11 = vadd.f32 %v2033_v38, %v2001_v46  ;;  %v2020_v36 = vpop.f32.mrf.mxu3 }
 0xa5f   :  { %v2040_v56 = vadd.f32 %v2038_v17, %v2020_v36 }
 0xa60   :  { %v2044_v37 = vpack.c.bf16 %v2035_v11, %v2034_v24 }
 0xa61   :  { %v5668_v39 = vpack.c.bf16 %v2040_v56, %v2039_v31 }
 0xa62   :  { %2110 = vrot.lane.b32.xlu1 %v2044_v37, %s5235_s22  ;;  %v2050_v57 = vsel %vm478_vm13, %v2044_v37, 0  ;;  %v1985_v40 = vpop.f32.mrf.mxu1 }
 0xa63   :  { %2099 = vmatpush.bf16.msra.mxu1 %v5668_v39  ;;  %2059 = vmatpush.bf16.xpose.msra.mxu0 %v2050_v57  ;;  %v2031_v45 = vadd.f32 %v2028_v18, %v1985_v40 }
 0xa68   :  { %v2004_v41 = vpop.f32.mrf.mxu2 }
 0xa69   :  { %v2023_v43 = vpop.f32.mrf.mxu3  ;;  %v2036_v33 = vadd.f32 %v2033_v38, %v2004_v41 }
 0xa6a   :  { %4180 = vmatmul.msk.bf16.vlgmr.msra.gmra.mxu0 %vm478_vm13, %v2043_v32  ;;  %v1987_v44 = vpop.f32.mrf.mxu1  ;;  %v2041_v52 = vadd.f32 %v2038_v17, %v2023_v43 }
 0xa6b   :  { %v2032_v14 = vadd.f32 %v2028_v18, %v1987_v44  ;;  %v5045_v18 = vld [vmem:[#allocation2 + $0x18] sm:$0xff] }
 0xa6d   :  { %v2186_v1 = vpack.c.bf16 %v2032_v14, %v2031_v45 }
 0xa6f   :  { %2250 = vrot.lane.b32.xlu1 %v2186_v1, %s5235_s22 }
 0xa70   :  { %v2006_v47 = vpop.f32.mrf.mxu2 }
 0xa71   :  { %v2037_v49 = vadd.f32 %v2033_v38, %v2006_v47  ;;  %v2025_v0 = vpop.f32.mrf.mxu3 }
 0xa72   :  { %v2042_v5 = vadd.f32 %v2038_v17, %v2025_v0 }
 0xa73   :  { %v2187_v58 = vpack.c.bf16 %v2037_v49, %v2036_v33 }
 0xa74   :  { %v5675_v59 = vpack.c.bf16 %v2042_v5, %v2041_v52 }
 0xa75   :  { %2253 = vrot.lane.b32.xlu0 %v2187_v58, %s5235_s22  ;;  %v2193_v53 = vsel %vm478_vm13, %v2187_v58, 0 }
 0xa76   :  { %2242 = vmatpush.bf16.msrb.mxu1 %v5675_v59  ;;  %2202 = vmatpush.bf16.xpose.msrb.mxu0 %v2193_v53 }
 0xa7d   :  { %4184 = vmatmul.msk.bf16.vlgmr.msrb.gmra.mxu0 %vm478_vm13, %v2186_v1 }
 0xab6   :  { %v2108_v12 = vpop.permute.xlu2 %2107 }
 0xad4   :  { %v2111_v35 = vpop.permute.xlu1 %2110 }
 0xad5   :  { %v2116_v48 = vsel %vm478_vm13, %v2111_v35, 0 }
 0xad6   :  { %2125 = vmatpush.bf16.xpose.msrb.mxu2 %v2116_v48 }
 0xadd   :  { %4182 = vmatmul.msk.bf16.vlgmr.msrb.gmra.mxu2 %vm478_vm13, %v2108_v12 }
 0xae1   :  { %v2251_v50 = vpop.permute.xlu1 %2250 }
 0xae7   :  { %v2254_v60 = vpop.permute.xlu0 %2253  ;;  %v2061_v7 = vpop.f32.mrf.mxu0 }
 0xae8   :  { %v2259_v63 = vsel %vm478_vm13, %v2254_v60, 0  ;;  %v2062_v42 = vadd.f32 %v5042_v26, %v2061_v7 }
 0xae9   :  { %2268 = vmatpush.bf16.xpose.msra.mxu2 %v2259_v63 }
 0xaea   :  { %v2066_v29 = vsel %vm499_vm14, %v2062_v42, -inf }
 0xaef   :  { %v2063_v21 = vpop.f32.mrf.mxu0 }
 0xaf0   :  { %4186 = vmatmul.msk.bf16.vlgmr.msra.gmra.mxu2 %vm478_vm13, %v2251_v50  ;;  %v2064_v34 = vadd.f32 %v5043_v3, %v2063_v21 }
 0xaf2   :  { %v2069_v22 = vsel %vm499_vm14, %v2064_v34, -inf }
 0xafa   :  { %v2204_v54 = vpop.f32.mrf.mxu0 }
 0xafb   :  { %v2205_v28 = vadd.f32 %v5044_v8, %v2204_v54 }
 0xafd   :  { %v2209_v38 = vsel %vm499_vm14, %v2205_v28, -inf }
 0xb02   :  { %v2206_v40 = vpop.f32.mrf.mxu0 }
 0xb60   :  { %v2127_v4 = vpop.f32.mrf.mxu2 }
 0xb61   :  { %v2128_v6 = vadd.f32 %v5042_v26, %v2127_v4 }
 0xb63   :  { %v2132_v62 = vsel %vm499_vm14, %v2128_v6, -inf }
 0xb64   :  { %2133 = vmax.xlane.f32.xlu0 %v2132_v62 }
 0xb68   :  { %v2129_v27 = vpop.f32.mrf.mxu2 }
 0xb69   :  { %v2130_v51 = vadd.f32 %v5043_v3, %v2129_v27 }
 0xb6b   :  { %v2135_v15 = vsel %vm499_vm14, %v2130_v51, -inf }
 0xb6c   :  { %2136 = vmax.xlane.f32.xlu2 %v2135_v15 }
 0xb73   :  { %v2270_v19 = vpop.f32.mrf.mxu2 }
 0xb74   :  { %2067 = vmax.xlane.f32.xlu2 %v2066_v29  ;;  %v2271_v20 = vadd.f32 %v5044_v8, %v2270_v19 }
 0xb76   :  { %v2275_v23 = vsel %vm499_vm14, %v2271_v20, -inf }
 0xb77   :  { %2276 = vmax.xlane.f32.xlu1 %v2275_v23 }
 0xb7b   :  { %v2272_v55 = vpop.f32.mrf.mxu2 }
 0xb7c   :  { %v2273_v9 = vadd.f32 %v5045_v18, %v2272_v55 }
 0xb7e   :  { %v2278_v30 = vsel %vm499_vm14, %v2273_v9, -inf }
 0xb7f   :  { %2279 = vmax.xlane.f32.xlu0 %v2278_v30  ;;  %2070 = vmax.xlane.f32.xlu1 %v2069_v22 }
 0xb87   :  { %2210 = vmax.xlane.f32.xlu0 %v2209_v38 }
 0xb98   :  { %2156 = vrot.lane.b32.xlu1 %v5668_v39, %s5235_s22  ;;  %v2207_v39 = vadd.f32 %v5045_v18, %v2206_v40 }
 0xb9a   :  { %v2212_v14 = vsel %vm499_vm14, %v2207_v39, -inf }
 0xbd7   :  { %v2134_v32 = vpop.xlane.xlu0 %2133 }
 0xbd8   :  { %v2138_v17 = vsub.f32 %v2128_v6, %v2134_v32 }
 0xbda   :  { %v2140_v46 = vmul.f32 1.442695, %v2138_v17 }
 0xbdc   :  { %4961 = vpow2.f32 %v2140_v46 }
 0xbdf   :  { %v2137_v24 = vpop.xlane.xlu2 %2136 }
 0xbe0   :  { %v2139_v11 = vsub.f32 %v2130_v51, %v2137_v24 }
 0xbe2   :  { %v4962_v36 = vpop.eup %4961  ;;  %v2142_v31 = vmul.f32 1.442695, %v2139_v11 }
 0xbe3   :  { %v2144_v56 = vsel %vm499_vm14, %v4962_v36, 0.0 }
 0xbe4   :  { %4963 = vpow2.f32 %v2142_v31  ;;  %2145 = vadd.xlane.f32.xlu0 %v2144_v56 }
 0xbe7   :  { %v2068_v45 = vpop.xlane.xlu2 %2067 }
 0xbe8   :  { %v2072_v52 = vsub.f32 %v2062_v42, %v2068_v45 }
 0xbea   :  { %v4964_v37 = vpop.eup %4963  ;;  %v2277_v41 = vpop.xlane.xlu1 %2276  ;;  %v2074_v35 = vmul.f32 1.442695, %v2072_v52  ;;  %v4728_v52 = vld [vmem:[#allocation7 + $0x58] sm:$0xff] }
 0xbeb   :  { %v2147_v57 = vsel %vm499_vm14, %v4964_v37, 0.0  ;;  %v2281_v43 = vsub.f32 %v2271_v20, %v2277_v41 }
 0xbec   :  { %2148 = vadd.xlane.f32.xlu2 %v2147_v57 }
 0xbed   :  { %v2283_v44 = vmul.f32 1.442695, %v2281_v43 }
 0xbef   :  { %4965 = vpow2.f32 %v2283_v44 }
 0xbf2   :  { %v2280_v1 = vpop.xlane.xlu0 %2279  ;;  %v2071_v47 = vpop.xlane.xlu1 %2070 }
 0xbf3   :  { %v2282_v33 = vsub.f32 %v2273_v9, %v2280_v1  ;;  %v2073_v49 = vsub.f32 %v2064_v34, %v2071_v47  ;;  %v4731_v1 = vld [vmem:[#allocation7 + $0x70] sm:$0xff] }
 0xbf4   :  { %2213 = vmax.xlane.f32.xlu2 %v2212_v14  ;;  %v4732_v14 = vld [vmem:[#allocation7 + $0x78] sm:$0xff] }
 0xbf5   :  { %v4966_v0 = vpop.eup %4965  ;;  %v2285_v5 = vmul.f32 1.442695, %v2282_v33  ;;  %v2076_v58 = vmul.f32 1.442695, %v2073_v49  ;;  %2397 = vmatpush.bf16.msra.mxu0 %v4732_v14  ;;  %v4730_v49 = vld [vmem:[#allocation7 + $0x68] sm:$0xff] }
 0xbf6   :  { %v2287_v53 = vsel %vm499_vm14, %v4966_v0, 0.0  ;;  %v4337_v14 = vld [vmem:[#allocation8 + $0x1f0] sm:$0xf0] }
 0xbf7   :  { %4967 = vpow2.f32 %v2285_v5  ;;  %2288 = vadd.xlane.f32.xlu0 %v2287_v53  ;;  %v4727_v5 = vld [vmem:[#allocation7 + $0x50] sm:$0xff] }
 0xbf8   :  { %4969 = vpow2.f32 %v2076_v58 }
 0xbf9   :  { %4971 = vpow2.f32 %v2074_v35  ;;  %2398 = vmatpush.bf16.msra.mxu0 %v4731_v1  ;;  %v4343_v1 = vld [vmem:[#allocation8 + $0x1e8] sm:$0xf] }
 0xbfa   :  { %v2211_v48 = vpop.xlane.xlu0 %2210 }
 0xbfb   :  { %v2215_v60 = vsub.f32 %v2205_v28, %v2211_v48  ;;  %v4726_v48 = vld [vmem:[#allocation7 + $0x48] sm:$0xff] }
 0xbfd   :  { %v4968_v12 = vpop.eup %4967  ;;  %v2217_v26 = vmul.f32 1.442695, %v2215_v60  ;;  %2399 = vmatpush.bf16.msra.mxu0 %v4730_v49 }
 0xbfe   :  { %v4970_v63 = vpop.eup %4969  ;;  %v2290_v50 = vsel %vm499_vm14, %v4968_v12, 0.0 }
 0xbff   :  { %v2081_v4 = vsel %vm499_vm14, %v4970_v63, 0.0  ;;  %2291 = vadd.xlane.f32.xlu2 %v2290_v50  ;;  %v4972_v6 = vpop.eup %4971  ;;  %4973 = vpow2.f32 %v2217_v26 }
 0xc00   :  { %2082 = vadd.xlane.f32.xlu1 %v2081_v4  ;;  %v2078_v62 = vsel %vm499_vm14, %v4972_v6, 0.0 }
 0xc05   :  { %v4974_v3 = vpop.eup %4973 }
 0xc06   :  { %v2221_v51 = vsel %vm499_vm14, %v4974_v3, 0.0 }
 0xc07   :  { %2079 = vadd.xlane.f32.xlu2 %v2078_v62 }
 0xc0a   :  { %v2157_v27 = vpop.permute.xlu1 %2156 }
 0xc0b   :  { %2169 = vmatpush.bf16.msra.mxu3 %v2157_v27  ;;  %2299 = vrot.lane.b32.xlu0 %v5675_v59, %s5235_s22 }
 0xc0f   :  { %2222 = vadd.xlane.f32.xlu2 %v2221_v51 }
 0xc57   :  { %v2146_v15 = vpop.xlane.xlu0 %2145 }
 0xc58   :  { %4975 = vrcp.f32 %v2146_v15 }
 0xc5e   :  { %v4976_v42 = vpop.eup %4975 }
 0xc5f   :  { %v2149_v7 = vpop.xlane.xlu2 %2148  ;;  %v2152_v19 = vmul.f32 %v4976_v42, %v4962_v36 }
 0xc60   :  { %4977 = vrcp.f32 %v2149_v7 }
 0xc66   :  { %v4978_v29 = vpop.eup %4977 }
 0xc67   :  { %v2153_v8 = vmul.f32 %v4978_v29, %v4964_v37  ;;  %v2214_v20 = vpop.xlane.xlu2 %2213 }
 0xc68   :  { %v2216_v21 = vsub.f32 %v2207_v39, %v2214_v20  ;;  %v2348_v20 = vperm.slane %v5662_v13, 3 }
 0xc69   :  { %v2154_v23 = vpack.c.bf16 %v2153_v8, %v2152_v19 }
 0xc6a   :  { %v2219_v34 = vmul.f32 1.442695, %v2216_v21  ;;  %v2289_v59 = vpop.xlane.xlu0 %2288 }
 0xc6b   :  { %4183 = vmatmul.msk.bf16.vlgmr.msra.gmra.mxu3 %vm499_vm14, %v2154_v23 }
 0xc6c   :  { %4979 = vpow2.f32 %v2219_v34 }
 0xc72   :  { %v4980_v55 = vpop.eup %4979  ;;  %v2292_v9 = vpop.xlane.xlu2 %2291 }
 0xc73   :  { %v2224_v18 = vsel %vm499_vm14, %v4980_v55, 0.0  ;;  %4981 = vrcp.f32 %v2292_v9  ;;  %v2083_v30 = vpop.xlane.xlu1 %2082 }
 0xc74   :  { %2225 = vadd.xlane.f32.xlu2 %v2224_v18  ;;  %4983 = vrcp.f32 %v2289_v59 }
 0xc75   :  { %4985 = vrcp.f32 %v2083_v30 }
 0xc79   :  { %v4982_v22 = vpop.eup %4981 }
 0xc7a   :  { %v4984_v54 = vpop.eup %4983  ;;  %v2080_v28 = vpop.xlane.xlu2 %2079  ;;  %v2296_v38 = vmul.f32 %v4982_v22, %v4968_v12  ;;  %v4725_v12 = vld [vmem:[#allocation7 + $0x40] sm:$0xff] }
 0xc7b   :  { %4987 = vrcp.f32 %v2080_v28  ;;  %v2295_v32 = vmul.f32 %v4984_v54, %v4966_v0  ;;  %v4986_v46 = vpop.eup %4985  ;;  %v4729_v0 = vld [vmem:[#allocation7 + $0x60] sm:$0xff] }
 0xc7c   :  { %v2087_v36 = vmul.f32 %v4986_v46, %v4970_v63  ;;  %2400 = vmatpush.bf16.msra.mxu0 %v4729_v0  ;;  %v4762_v0 = vld [vmem:[#allocation8 + $0x1ec] sm:$0xf] }
 0xc7d   :  { %v2300_v17 = vpop.permute.xlu0 %2299  ;;  %v2297_v24 = vpack.c.bf16 %v2296_v38, %v2295_v32 }
 0xc7e   :  { %2312 = vmatpush.bf16.msrb.mxu3 %v2300_v17 }
 0xc80   :  { %2401 = vmatpush.bf16.msra.mxu0 %v4728_v52  ;;  %v4345_v52 = vld [vmem:[#allocation8 + $0x1f8] sm:$0xf0] }
 0xc81   :  { %v4988_v11 = vpop.eup %4987  ;;  %4187 = vmatmul.msk.bf16.vlgmr.msrb.gmra.mxu3 %vm499_vm14, %v2297_v24 }
 0xc82   :  { %v2086_v31 = vmul.f32 %v4988_v11, %v4972_v6  ;;  %v2223_v37 = vpop.xlane.xlu2 %2222 }
 0xc83   :  { %4989 = vrcp.f32 %v2223_v37 }
 0xc84   :  { %v2088_v56 = vpack.c.bf16 %v2087_v36, %v2086_v31  ;;  %2402 = vmatpush.bf16.msra.mxu0 %v4727_v5  ;;  %v4348_v5 = vor.u32 %v4762_v0, %v4345_v52  ;;  %v4257_v0 = vld [vmem:[#allocation8 + $0x150] sm:$0xf0]  ;;  %v4263_v52 = vld [vmem:[#allocation8 + $0x148] sm:$0xf] }
 0xc86   :  { %4181 = vmatmul.msk.bf16.vlgmr.msra.gmra.mxu1 %vm499_vm14, %v2088_v56 }
 0xc88   :  { %2403 = vmatpush.bf16.msra.mxu0 %v4726_v48 }
 0xc89   :  { %v4990_v40 = vpop.eup %4989 }
 0xc8a   :  { %v2229_v39 = vmul.f32 %v4990_v40, %v4974_v3 }
 0xc8c   :  { %2404 = vmatpush.bf16.msra.mxu0 %v4725_v12  ;;  %v4321_v12 = vld [vmem:[#allocation8 + $0x1d0] sm:$0xf0] }
 0xc90   :  { %2773 = vmatpush.bf16.msrb.mxu0 %v4348_v5  ;;  %v4744_v5 = vld [vmem:[#allocation8 + $0x154] sm:$0xf0] }
 0xce7   :  { %v2226_v57 = vpop.xlane.xlu2 %2225 }
 0xce8   :  { %4991 = vrcp.f32 %v2226_v57 }
 0xcee   :  { %v4992_v41 = vpop.eup %4991  ;;  %v2171_v43 = vpop.f32.mrf.mxu3 }
 0xcef   :  { %v2230_v44 = vmul.f32 %v4992_v41, %v4980_v55 }
 0xcf1   :  { %v2231_v45 = vpack.c.bf16 %v2230_v44, %v2229_v39  ;;  %v4763_v39 = vld [vmem:[#allocation8 + $0x1ec] sm:$0xf0]  ;;  %v4761_v44 = vld [vmem:[#allocation8 + $0x1e4] sm:$0xf] }
 0xcf3   :  { %4185 = vmatmul.msk.bf16.vlgmr.msrb.gmra.mxu1 %vm499_vm14, %v2231_v45 }
 0xcf6   :  { %v2173_v47 = vpop.f32.mrf.mxu3 }
 0xcf7   :  { %v4857_v33 = vpack.i.bf16 %v2173_v47, %v2171_v43  ;;  %v4335_v43 = vld [vmem:[#allocation8 + $0x1e0] sm:$0xf]  ;;  %v4764_v47 = vld [vmem:[#allocation8 + $0x1f4] sm:$0xf0] }
 0xcf8   :  { %v4336_v45 = vor.u32 %v4763_v39, %v4335_v43  ;;  %v4344_v49 = vor.u32 %v4764_v47, %v4343_v1  ;;  %v4748_v43 = vld [vmem:[#allocation8 + $0x174] sm:$0xf0]  ;;  %v4746_v39 = vld [vmem:[#allocation8 + $0x16c] sm:$0xf]  ;;  %v4255_v1 = vld [vmem:[#allocation8 + $0x140] sm:$0xf] }
 0xcf9   :  { %4858 = vrot.lane.b32.xlu0 %v4857_v33, %s5235_s22  ;;  %v4340_v33 = vor.u32 %v4761_v44, %v4337_v14  ;;  %v4281_v44 = vld [vmem:[#allocation8 + $0x178] sm:$0xf0]  ;;  %v4743_v47 = vld [vmem:[#allocation8 + $0x14c] sm:$0xf0] }
 0xcfa   :  { %2716 = vmatpush.bf16.msra.mxu1 %v4336_v45  ;;  %2754 = vmatpush.bf16.msra.mxu3 %v4344_v49  ;;  %v4284_v14 = vor.u32 %v4746_v39, %v4281_v44  ;;  %v4256_v49 = vor.u32 %v4743_v47, %v4255_v1  ;;  %v2500_v1 = vperm.slane %v5662_v13, 5 }
 0xcfb   :  { %2735 = vmatpush.bf16.msrb.mxu2 %v4340_v33  ;;  %v4741_v33 = vld [vmem:[#allocation8 + $0x144] sm:$0xf] }
 0xd03   :  { %v2101_v60 = vpop.f32.mrf.mxu1 }
 0xd04   :  { %v2314_v58 = vpop.f32.mrf.mxu3 }
 0xd0b   :  { %v2103_v63 = vpop.f32.mrf.mxu1 }
 0xd0c   :  { %v2316_v53 = vpop.f32.mrf.mxu3 }
 0xd0d   :  { %v4862_v35 = vpack.i.bf16 %v2316_v53, %v2314_v58  ;;  %v4319_v58 = vld [vmem:[#allocation8 + $0x1c0] sm:$0xf]  ;;  %v4759_v53 = vld [vmem:[#allocation8 + $0x1cc] sm:$0xf0] }
 0xd0e   :  { %v4320_v48 = vor.u32 %v4759_v53, %v4319_v58  ;;  %v4260_v53 = vor.u32 %v4741_v33, %v4257_v0 }
 0xd0f   :  { %4863 = vrot.lane.b32.xlu2 %v4862_v35, %s5235_s22  ;;  %v4757_v35 = vld [vmem:[#allocation8 + $0x1c4] sm:$0xf] }
 0xd10   :  { %2717 = vmatpush.bf16.msra.mxu1 %v4320_v48  ;;  %v4742_v48 = vld [vmem:[#allocation8 + $0x14c] sm:$0xf] }
 0xd69   :  { %v4864_v51 = vpop.permute.xlu2 %4863 }
 0xd6a   :  { %v4866_v7 = vunpack.i.h.bf16 %v4864_v51  ;;  %v4865_v42 = vunpack.i.l.bf16 %v4864_v51  ;;  %v4753_v51 = vld [vmem:[#allocation8 + $0x1a4] sm:$0xf] }
 0xd6b   :  { %v4859_v50 = vpop.permute.xlu0 %4858 }
 0xd6c   :  { %v4861_v4 = vunpack.i.h.bf16 %v4859_v50  ;;  %v4860_v26 = vunpack.i.l.bf16 %v4859_v50  ;;  %v4324_v50 = vor.u32 %v4757_v35, %v4321_v12  ;;  %v4264_v35 = vor.u32 %v4744_v5, %v4263_v52  ;;  %v4265_v12 = vld [vmem:[#allocation8 + $0x158] sm:$0xf0] }
 0xd6d   :  { %v2505_v5 = vperm.slane %v5662_v13, 6 }
 0xd6e   :  { %v2185_v6 = vsel %vm478_vm13, %v2103_v63, %v4861_v4  ;;  %v2184_v62 = vsel %vm478_vm13, %v2101_v60, %v4860_v26  ;;  %v4327_v60 = vld [vmem:[#allocation8 + $0x1c8] sm:$0xf]  ;;  %v4760_v63 = vld [vmem:[#allocation8 + $0x1d4] sm:$0xf0]  ;;  %v4758_v26 = vld [vmem:[#allocation8 + $0x1cc] sm:$0xf]  ;;  %2736 = vmatpush.bf16.msrb.mxu2 %v4324_v50 }
 0xd6f   :  { %v2329_v27 = vpack.c.bf16 %v2185_v6, %v2184_v62  ;;  %v4328_v4 = vor.u32 %v4760_v63, %v4327_v60  ;;  %v4329_v6 = vld [vmem:[#allocation8 + $0x1d8] sm:$0xf0]  ;;  %v4268_v63 = vor.u32 %v4742_v48, %v4265_v12  ;;  %v4239_v50 = vld [vmem:[#allocation8 + $0x120] sm:$0xf] }
 0xd70   :  { %v2244_v3 = vpop.f32.mrf.mxu1  ;;  %v4332_v62 = vor.u32 %v4758_v26, %v4329_v6  ;;  %v4737_v26 = vld [vmem:[#allocation8 + $0x124] sm:$0xf] }
 0xd71   :  { %2405 = vmatmul.bf16.vlgmr.msra.gmra.mxu0 %v2329_v27  ;;  %v2327_v19 = vsel %vm478_vm13, %v2244_v3, %v4865_v42  ;;  %2755 = vmatpush.bf16.msra.mxu3 %v4328_v4  ;;  %v4303_v27 = vld [vmem:[#allocation8 + $0x1a0] sm:$0xf]  ;;  %v4755_v3 = vld [vmem:[#allocation8 + $0x1ac] sm:$0xf0]  ;;  %v4311_v42 = vld [vmem:[#allocation8 + $0x1a8] sm:$0xf] }
 0xd72   :  { %2774 = vmatpush.bf16.msrb.mxu0 %v4332_v62  ;;  %v4739_v4 = vld [vmem:[#allocation8 + $0x12c] sm:$0xf0] }
 0xd78   :  { %v2246_v15 = vpop.f32.mrf.mxu1 }
 0xd79   :  { %v2328_v29 = vsel %vm478_vm13, %v2246_v15, %v4866_v7  ;;  %v4304_v15 = vor.u32 %v4755_v3, %v4303_v27  ;;  %v4305_v7 = vld [vmem:[#allocation8 + $0x1b0] sm:$0xf0]  ;;  %v4240_v27 = vor.u32 %v4739_v4, %v4239_v50 }
 0xd7a   :  { %v2330_v8 = vpack.c.bf16 %v2328_v29, %v2327_v19  ;;  %v4756_v29 = vld [vmem:[#allocation8 + $0x1b4] sm:$0xf0]  ;;  %v4308_v19 = vor.u32 %v4753_v51, %v4305_v7  ;;  %v4241_v3 = vld [vmem:[#allocation8 + $0x130] sm:$0xf0]  ;;  %v4247_v51 = vld [vmem:[#allocation8 + $0x128] sm:$0xf] }
 0xd7b   :  { %2718 = vmatpush.bf16.msra.mxu1 %v4304_v15  ;;  %v4244_v7 = vor.u32 %v4737_v26, %v4241_v3 }
 0xd7c   :  { %2737 = vmatpush.bf16.msrb.mxu2 %v4308_v19  ;;  %v4249_v19 = vld [vmem:[#allocation8 + $0x138] sm:$0xf0] }
 0xd81   :  { %2410 = vmatmul.bf16.gmra.mxu0 %v2330_v8  ;;  %v4312_v8 = vor.u32 %v4756_v29, %v4311_v42  ;;  %v4740_v42 = vld [vmem:[#allocation8 + $0x134] sm:$0xf0]  ;;  %v4738_v29 = vld [vmem:[#allocation8 + $0x12c] sm:$0xf] }
 0xd83   :  { %2756 = vmatpush.bf16.msra.mxu3 %v4312_v8  ;;  %v4248_v8 = vor.u32 %v4740_v42, %v4247_v51 }
 0xdee   :  { %v2406_v21 = vpop.f32.mrf.mxu0 }
 0xdef   :  { %v2407_v23 = vadd.f32 %v2406_v21, %v2348_v20  ;;  %v4313_v21 = vld [vmem:[#allocation8 + $0x1b8] sm:$0xf0] }
 0xdf1   :  { %v2416_v34 = vadd.f32 %v2407_v23, %v5645_v61 }
 0xdf3   :  { %2420 = vadd.xlane.f32.xlu0 %v2416_v34 }
 0xdf6   :  { %v2408_v55 = vpop.f32.mrf.mxu0 }
 0xdf7   :  { %v2409_v59 = vadd.f32 %v2408_v55, %v2348_v20  ;;  %v4751_v55 = vld [vmem:[#allocation8 + $0x18c] sm:$0xf0] }
 0xdf9   :  { %v2417_v18 = vadd.f32 %v2409_v59, %v5647_v2  ;;  %v4749_v59 = vld [vmem:[#allocation8 + $0x184] sm:$0xf] }
 0xdfb   :  { %2422 = vadd.xlane.f32.xlu2 %v2417_v18 }
 0xdfe   :  { %v2411_v9 = vpop.f32.mrf.mxu0 }
 0xdff   :  { %v2412_v30 = vadd.f32 %v2411_v9, %v2348_v20  ;;  %v4289_v9 = vld [vmem:[#allocation8 + $0x190] sm:$0xf0] }
 0xe01   :  { %v2418_v22 = vadd.f32 %v2412_v30, %v5653_v25  ;;  %v4295_v30 = vld [vmem:[#allocation8 + $0x188] sm:$0xf] }
 0xe03   :  { %2424 = vadd.xlane.f32.xlu1 %v2418_v22 }
 0xe06   :  { %v2413_v54 = vpop.f32.mrf.mxu0 }
 0xe07   :  { %v2414_v28 = vadd.f32 %v2413_v54, %v2348_v20  ;;  %v4754_v20 = vld [vmem:[#allocation8 + $0x1ac] sm:$0xf] }
 0xe08   :  { %v4316_v23 = vor.u32 %v4754_v20, %v4313_v21  ;;  %v4252_v20 = vor.u32 %v4738_v29, %v4249_v19 }
 0xe09   :  { %v2419_v38 = vadd.f32 %v2414_v28, %v5655_v16  ;;  %v4292_v28 = vor.u32 %v4749_v59, %v4289_v9  ;;  %v4231_v9 = vld [vmem:[#allocation8 + $0x108] sm:$0xf] }
 0xe0a   :  { %2775 = vmatpush.bf16.msrb.mxu0 %v4316_v23  ;;  %v4223_v23 = vld [vmem:[#allocation8 + $0x100] sm:$0xf] }
 0xe0b   :  { %2426 = vadd.xlane.f32.xlu1 %v2419_v38  ;;  %2738 = vmatpush.bf16.msrb.mxu2 %v4292_v28 }
 0xe66   :  { %v2421_v32 = vpop.xlane.xlu0 %2420 }
 0xe67   :  { %v2428_v17 = vmul.f32 %v2421_v32, %v5349_v10  ;;  %v4750_v32 = vld [vmem:[#allocation8 + $0x18c] sm:$0xf] }
 0xe69   :  { %v5721_v61 = vsub.f32 %v2416_v34, %v2428_v17  ;;  %v4287_v34 = vld [vmem:[#allocation8 + $0x180] sm:$0xf]  ;;  %v4297_v17 = vld [vmem:[#allocation8 + $0x198] sm:$0xf0] }
 0xe6b   :  { %v2436_v46 = vmul.f32 %v5721_v61, %v5721_v61 }
 0xe6d   :  { %2440 = vadd.xlane.f32.xlu1 %v2436_v46 }
 0xe6e   :  { %v2423_v2 = vpop.xlane.xlu2 %2422 }
 0xe6f   :  { %v2429_v24 = vmul.f32 %v2423_v2, %v5349_v10  ;;  %v4300_v2 = vor.u32 %v4750_v32, %v4297_v17  ;;  %v4734_v32 = vld [vmem:[#allocation8 + $0x10c] sm:$0xf]  ;;  %v4233_v17 = vld [vmem:[#allocation8 + $0x118] sm:$0xf0] }
 0xe71   :  { %v5726_v11 = vsub.f32 %v2417_v18, %v2429_v24  ;;  %v4288_v18 = vor.u32 %v4751_v55, %v4287_v34  ;;  %v4271_v24 = vld [vmem:[#allocation8 + $0x160] sm:$0xf]  ;;  %2776 = vmatpush.bf16.msrb.mxu0 %v4300_v2  ;;  %v4735_v34 = vld [vmem:[#allocation8 + $0x10c] sm:$0xf0]  ;;  %v4733_v55 = vld [vmem:[#allocation8 + $0x104] sm:$0xf]  ;;  %v4236_v2 = vor.u32 %v4734_v32, %v4233_v17 }
 0xe72   :  { %v4224_v59 = vor.u32 %v4735_v34, %v4223_v23  ;;  %v4795_v23 = vld [vmem:[#allocation10 + $0x1f0] sm:$0xff]  ;;  %v4788_v34 = vld [vmem:[#allocation10 + $0x1b8] sm:$0xff] }
 0xe73   :  { %v2437_v25 = vmul.f32 %v5726_v11, %v5726_v11  ;;  %2719 = vmatpush.bf16.msra.mxu1 %v4288_v18  ;;  %v4225_v18 = vld [vmem:[#allocation8 + $0x110] sm:$0xf0] }
 0xe74   :  { %v4228_v28 = vor.u32 %v4733_v55, %v4225_v18  ;;  %v4770_v55 = vld [vmem:[#allocation10 + $0x128] sm:$0xff]  ;;  %v4779_v18 = vld [vmem:[#allocation10 + $0x170] sm:$0xff] }
 0xe75   :  { %2442 = vadd.xlane.f32.xlu0 %v2437_v25  ;;  %v4747_v25 = vld [vmem:[#allocation8 + $0x16c] sm:$0xf0]  ;;  %2777 = vmatpush.bf16.msrb.mxu0 %v4284_v14 }
 0xe76   :  { %v2425_v16 = vpop.xlane.xlu1 %2424 }
 0xe77   :  { %v2430_v36 = vmul.f32 %v2425_v16, %v5349_v10  ;;  %v4745_v16 = vld [vmem:[#allocation8 + $0x164] sm:$0xf] }
 0xe79   :  { %v5731_v31 = vsub.f32 %v2418_v22, %v2430_v36  ;;  %v4752_v22 = vld [vmem:[#allocation8 + $0x194] sm:$0xf0]  ;;  %2778 = vmatpush.bf16.msrb.mxu0 %v4268_v63 }
 0xe7b   :  { %v2438_v56 = vmul.f32 %v5731_v31, %v5731_v31 }
 0xe7d   :  { %2444 = vadd.xlane.f32.xlu1 %v2438_v56  ;;  %v4272_v56 = vor.u32 %v4747_v25, %v4271_v24  ;;  %2779 = vmatpush.bf16.msrb.mxu0 %v4252_v20  ;;  %v4796_v20 = vld [vmem:[#allocation10 + $0x1f8] sm:$0xff] }
 0xe7e   :  { %v2427_v37 = vpop.xlane.xlu1 %2426 }
 0xe7f   :  { %v2431_v57 = vmul.f32 %v2427_v37, %v5349_v10  ;;  %v4273_v37 = vld [vmem:[#allocation8 + $0x170] sm:$0xf0]  ;;  %2720 = vmatpush.bf16.msra.mxu1 %v4272_v56 }
 0xe81   :  { %v5736_v40 = vsub.f32 %v2419_v38, %v2431_v57  ;;  %v4296_v38 = vor.u32 %v4752_v22, %v4295_v30  ;;  %v4279_v57 = vld [vmem:[#allocation8 + $0x168] sm:$0xf]  ;;  %v4736_v30 = vld [vmem:[#allocation8 + $0x114] sm:$0xf0]  ;;  %2780 = vmatpush.bf16.msrb.mxu0 %v4236_v2 }
 0xe82   :  { %v4280_v45 = vor.u32 %v4748_v43, %v4279_v57  ;;  %v4792_v2 = vld [vmem:[#allocation10 + $0x1d8] sm:$0xff] }
 0xe83   :  { %v2439_v41 = vmul.f32 %v5736_v40, %v5736_v40  ;;  %2757 = vmatpush.bf16.msra.mxu3 %v4296_v38  ;;  %2721 = vmatpush.bf16.msra.mxu1 %v4256_v49  ;;  %v4232_v38 = vor.u32 %v4736_v30, %v4231_v9  ;;  %v4787_v9 = vld [vmem:[#allocation10 + $0x1b0] sm:$0xff]  ;;  %v4220_v30 = vld [vmem:[%s5964_s8 + $0x1] ss:$2 sm:$0xf] }
 0xe84   :  { %v5770_v32 = vperm.slane %v4220_v30, 0  ;;  %v5772_v17 = vperm.slane %v4220_v30, 3 }
 0xe85   :  { %2446 = vadd.xlane.f32.xlu0 %v2439_v41  ;;  %v4276_v41 = vor.u32 %v4745_v16, %v4273_v37  ;;  %3259 = vmatpush.bf16.msra.mxu0 %v4796_v20 }
 0xe87   :  { %2739 = vmatpush.bf16.msrb.mxu2 %v4276_v41  ;;  %2758 = vmatpush.bf16.msra.mxu3 %v4280_v45 }
 0xe88   :  { %2722 = vmatpush.bf16.msra.mxu1 %v4240_v27 }
 0xe89   :  { %3260 = vmatpush.bf16.msra.mxu0 %v4795_v23 }
 0xe8b   :  { %2740 = vmatpush.bf16.msrb.mxu2 %v4260_v53  ;;  %2759 = vmatpush.bf16.msra.mxu3 %v4264_v35 }
 0xe8c   :  { %2723 = vmatpush.bf16.msra.mxu1 %v4224_v59  ;;  %v4794_v59 = vld [vmem:[#allocation10 + $0x1e8] sm:$0xff] }
 0xe8d   :  { %3261 = vmatpush.bf16.msra.mxu0 %v4794_v59 }
 0xe8f   :  { %2741 = vmatpush.bf16.msrb.mxu2 %v4244_v7  ;;  %2760 = vmatpush.bf16.msra.mxu3 %v4248_v8 }
 0xe93   :  { %2742 = vmatpush.bf16.msrb.mxu2 %v4228_v28  ;;  %2761 = vmatpush.bf16.msra.mxu3 %v4232_v38  ;;  %v4778_v28 = vld [vmem:[#allocation10 + $0x168] sm:$0xff] }
 0xe94   :  { %v4786_v38 = vld [vmem:[#allocation10 + $0x1a8] sm:$0xff] }
 0xe97   :  { %3240 = vmatpush.bf16.msrb.mxu3 %v4788_v34 }
 0xe9b   :  { %3241 = vmatpush.bf16.msrb.mxu3 %v4787_v9  ;;  %v4773_v9 = vld [vmem:[#allocation10 + $0x140] sm:$0xff] }
 0xe9f   :  { %3242 = vmatpush.bf16.msrb.mxu3 %v4786_v38 }
 0xee0   :  { %v2441_v54 = vpop.xlane.xlu1 %2440 }
 0xee1   :  { %v2448_v46 = vmul.f32 %v2441_v54, %v5349_v10 }
 0xee3   :  { %v5741_v36 = vadd.f32 1e-12, %v2448_v46 }
 0xee5   :  { %4993 = vrsqrt.f32 %v5741_v36  ;;  %vm2462_vm14 = vweird.f32 %v5741_v36 }
 0xee8   :  { %v2443_v58 = vpop.xlane.xlu0 %2442 }
 0xee9   :  { %v2449_v60 = vmul.f32 %v2443_v58, %v5349_v10 }
 0xeeb   :  { %v4994_v6 = vpop.eup %4993  ;;  %v2453_v62 = vadd.f32 1e-12, %v2449_v60 }
 0xeec   :  { %v2457_v15 = vmul.f32 %v4994_v6, %v5741_v36  ;;  %vm2463_vm13 = vweird.f32 %v4994_v6 }
 0xeed   :  { %4995 = vrsqrt.f32 %v2453_v62  ;;  %vm2464_vm9 = vmor %vm2462_vm14, %vm2463_vm13  ;;  %vm2472_vm11 = vweird.f32 %v2453_v62 }
 0xeee   :  { %v2458_v21 = vmul.f32 %v4994_v6, %v2457_v15 }
 0xef0   :  { %v2459_v22 = vmul.f32 0.5, %v2458_v21  ;;  %v2445_v54 = vpop.xlane.xlu1 %2444  ;;  %v4771_v21 = vld [vmem:[#allocation10 + $0x130] sm:$0xff] }
 0xef1   :  { %v2450_v46 = vmul.f32 %v2445_v54, %v5349_v10  ;;  %v4793_v54 = vld [vmem:[#allocation10 + $0x1e0] sm:$0xff] }
 0xef2   :  { %v2460_v24 = vsub.f32 1.5, %v2459_v22  ;;  %v4769_v22 = vld [vmem:[#allocation10 + $0x120] sm:$0xff]  ;;  %3262 = vmatpush.bf16.msra.mxu0 %v4793_v54 }
 0xef3   :  { %v4996_v25 = vpop.eup %4995  ;;  %v2454_v16 = vadd.f32 1e-12, %v2450_v46  ;;  %v4768_v46 = vld [vmem:[#allocation10 + $0x118] sm:$0xff] }
 0xef4   :  { %v2461_v56 = vmul.f32 %v4994_v6, %v2460_v24  ;;  %v2467_v37 = vmul.f32 %v4996_v25, %v2453_v62  ;;  %vm2473_vm10 = vweird.f32 %v4996_v25 }
 0xef5   :  { %4997 = vrsqrt.f32 %v2454_v16  ;;  %vm2474_vm12 = vmor %vm2472_vm11, %vm2473_vm10  ;;  %vm2482_vm0 = vweird.f32 %v2454_v16 }
 0xef6   :  { %v2468_v57 = vmul.f32 %v4996_v25, %v2467_v37  ;;  %v2465_v41 = vsel %vm2464_vm9, %v4994_v6, %v2461_v56  ;;  %3263 = vmatpush.bf16.msra.mxu0 %v4792_v2 }
 0xef7   :  { %v2496_v47 = vmul.f32 %v2465_v41, %v5721_v61  ;;  %v4767_v41 = vld [vmem:[#allocation10 + $0x110] sm:$0xff] }
 0xef8   :  { %v2469_v43 = vmul.f32 0.5, %v2468_v57  ;;  %v2447_v39 = vpop.xlane.xlu0 %2446 }
 0xef9   :  { %v2451_v44 = vmul.f32 %v2447_v39, %v5349_v10  ;;  %v2501_v58 = vmul.f32 %v2500_v1, %v2496_v47  ;;  %v5784_v47 = vperm.slane %v4220_v30, 2 }
 0xefa   :  { %v2470_v45 = vsub.f32 1.5, %v2469_v43  ;;  %v4791_v43 = vld [vmem:[#allocation10 + $0x1d0] sm:$0xff] }
 0xefb   :  { %v4998_v14 = vpop.eup %4997  ;;  %v2455_v33 = vadd.f32 1e-12, %v2451_v44  ;;  %v5753_v63 = vadd.f32 %v2505_v5, %v2501_v58  ;;  %v5781_v44 = vperm.slane %v4220_v30, 1  ;;  %3264 = vmatpush.bf16.msra.mxu0 %v4791_v43  ;;  %v4783_v58 = vld [vmem:[#allocation10 + $0x190] sm:$0xff]  ;;  %v4781_v30 = vld [vmem:[#allocation10 + $0x180] sm:$0xff] }
 0xefc   :  { %v2471_v49 = vmul.f32 %v4996_v25, %v2470_v45  ;;  %v2477_v0 = vmul.f32 %v4998_v14, %v2454_v16  ;;  %vm2483_vm15 = vweird.f32 %v4998_v14  ;;  %v4785_v16 = vld [vmem:[#allocation10 + $0x1a0] sm:$0xff]  ;;  %v4776_v45 = vld [vmem:[#allocation10 + $0x158] sm:$0xff] }
 0xefd   :  { %4999 = vrsqrt.f32 %v2455_v33  ;;  %vm2484_vm1 = vmor %vm2482_vm0, %vm2483_vm15  ;;  %vm2492_vm3 = vweird.f32 %v2455_v33  ;;  %3243 = vmatpush.bf16.msrb.mxu3 %v4785_v16 }
 0xefe   :  { %v2475_v36 = vsel %vm2474_vm12, %v4996_v25, %v2471_v49  ;;  %v2478_v52 = vmul.f32 %v4998_v14, %v2477_v0  ;;  %v4777_v25 = vld [vmem:[#allocation10 + $0x160] sm:$0xff]  ;;  %v4790_v49 = vld [vmem:[#allocation10 + $0x1c8] sm:$0xff] }
 0xeff   :  { %v2497_v53 = vmul.f32 %v2475_v36, %v5726_v11  ;;  %3265 = vmatpush.bf16.msra.mxu0 %v4790_v49 }
 0xf00   :  { %v2479_v35 = vmul.f32 0.5, %v2478_v52 }
 0xf01   :  { %v2502_v48 = vmul.f32 %v2500_v1, %v2497_v53 }
 0xf02   :  { %v2480_v12 = vsub.f32 1.5, %v2479_v35 }
 0xf03   :  { %v5000_v60 = vpop.eup %4999  ;;  %v5755_v61 = vadd.f32 %v2505_v5, %v2502_v48 }
 0xf04   :  { %v2481_v50 = vmul.f32 %v4998_v14, %v2480_v12  ;;  %v2487_v4 = vmul.f32 %v5000_v60, %v2455_v33  ;;  %vm2493_vm2 = vweird.f32 %v5000_v60  ;;  %v4766_v33 = vld [vmem:[#allocation10 + $0x108] sm:$0xff] }
 0xf05   :  { %v2510_v26 = vpack.c.bf16 %v5755_v61, %v5753_v63  ;;  %vm2494_vm4 = vmor %vm2492_vm3, %vm2493_vm2 }
 0xf06   :  { %v2488_v6 = vmul.f32 %v5000_v60, %v2487_v4  ;;  %v2485_v13 = vsel %vm2484_vm1, %v4998_v14, %v2481_v50  ;;  %v4784_v14 = vld [vmem:[#allocation10 + $0x198] sm:$0xff]  ;;  %v4765_v4 = vld [vmem:[#allocation10 + $0x100] sm:$0xff] }
 0xf07   :  { %2724 = vmatmul.bf16.vlgmr.msra.gmra.mxu1 %v2510_v26  ;;  %2743 = vmatmul.bf16.vlgmr.msrb.gmra.mxu2 %v2510_v26  ;;  %v2498_v27 = vmul.f32 %v2485_v13, %v5731_v31  ;;  %v4772_v31 = vld [vmem:[#allocation10 + $0x138] sm:$0xff] }
 0xf08   :  { %v2489_v11 = vmul.f32 0.5, %v2488_v6  ;;  %2762 = vmatmul.bf16.vlgmr.msra.gmra.mxu3 %v2510_v26  ;;  %2781 = vmatmul.bf16.vlgmr.msrb.gmra.mxu0 %v2510_v26  ;;  %v4789_v26 = vld [vmem:[#allocation10 + $0x1c0] sm:$0xff] }
 0xf09   :  { %v2503_v7 = vmul.f32 %v2500_v1, %v2498_v27  ;;  %3202 = vmatpush.bf16.msrb.mxu1 %v4772_v31  ;;  %3244 = vmatpush.bf16.msrb.mxu3 %v4784_v14 }
 0xf0a   :  { %v2490_v62 = vsub.f32 1.5, %v2489_v11  ;;  %3266 = vmatpush.bf16.msra.mxu0 %v4789_v26 }
 0xf0b   :  { %v5761_v29 = vadd.f32 %v2505_v5, %v2503_v7  ;;  %v4782_v7 = vld [vmem:[#allocation10 + $0x188] sm:$0xff] }
 0xf0c   :  { %v2491_v3 = vmul.f32 %v5000_v60, %v2490_v62 }
 0xf0d   :  { %3203 = vmatpush.bf16.msrb.mxu1 %v4771_v21  ;;  %3245 = vmatpush.bf16.msrb.mxu3 %v4783_v58 }
 0xf0e   :  { %v2495_v51 = vsel %vm2494_vm4, %v5000_v60, %v2491_v3 }
 0xf0f   :  { %v2499_v15 = vmul.f32 %v2495_v51, %v5736_v40  ;;  %v4780_v40 = vld [vmem:[#allocation10 + $0x178] sm:$0xff] }
 0xf10   :  { %3221 = vmatpush.bf16.msra.mxu2 %v4780_v40 }
 0xf11   :  { %v2504_v42 = vmul.f32 %v2500_v1, %v2499_v15  ;;  %3204 = vmatpush.bf16.msrb.mxu1 %v4770_v55  ;;  %v4774_v15 = vld [vmem:[#allocation10 + $0x148] sm:$0xff]  ;;  %3246 = vmatpush.bf16.msrb.mxu3 %v4782_v7 }
 0xf13   :  { %v5763_v19 = vadd.f32 %v2505_v5, %v2504_v42  ;;  %v4775_v5 = vld [vmem:[#allocation10 + $0x150] sm:$0xff] }
 0xf14   :  { %3222 = vmatpush.bf16.msra.mxu2 %v4779_v18 }
 0xf15   :  { %v2511_v8 = vpack.c.bf16 %v5763_v19, %v5761_v29  ;;  %3205 = vmatpush.bf16.msrb.mxu1 %v4769_v22  ;;  %3247 = vmatpush.bf16.msrb.mxu3 %v4781_v30 }
 0xf17   :  { %2729 = vmatmul.bf16.gmra.mxu1 %v2511_v8  ;;  %2748 = vmatmul.bf16.gmra.mxu2 %v2511_v8 }
 0xf18   :  { %2767 = vmatmul.bf16.gmra.mxu3 %v2511_v8  ;;  %2786 = vmatmul.bf16.gmra.mxu0 %v2511_v8 }
 0xf19   :  { %3223 = vmatpush.bf16.msra.mxu2 %v4778_v28  ;;  %3206 = vmatpush.bf16.msrb.mxu1 %v4768_v46 }
 0xf1d   :  { %3224 = vmatpush.bf16.msra.mxu2 %v4777_v25  ;;  %3207 = vmatpush.bf16.msrb.mxu1 %v4767_v41 }
 0xf21   :  { %3225 = vmatpush.bf16.msra.mxu2 %v4776_v45  ;;  %3208 = vmatpush.bf16.msrb.mxu1 %v4766_v33 }
 0xf25   :  { %3226 = vmatpush.bf16.msra.mxu2 %v4775_v5  ;;  %3209 = vmatpush.bf16.msrb.mxu1 %v4765_v4 }
 0xf29   :  { %3227 = vmatpush.bf16.msra.mxu2 %v4774_v15 }
 0xf2d   :  { %3228 = vmatpush.bf16.msra.mxu2 %v4773_v9 }
 0xf84   :  { %v2725_v24 = vpop.f32.mrf.mxu1 }
 0xf85   :  { %v5775_v56 = vadd.f32 %v2725_v24, %v5770_v32  ;;  %v2782_v37 = vpop.f32.mrf.mxu0 }
 0xf86   :  { %v5778_v57 = vadd.f32 %v2782_v37, %v5772_v17 }
 0xf87   :  { %v2808_v39 = vmul.f32 0.044715, %v5775_v56  ;;  %v2792_v16 = vmul.f32 0.5, %v5775_v56 }
 0xf88   :  { %v2811_v1 = vmul.f32 0.044715, %v5778_v57  ;;  %v2795_v45 = vmul.f32 0.5, %v5778_v57 }
 0xf89   :  { %v2824_v0 = vmul.f32 %v2808_v39, %v5775_v56 }
 0xf8a   :  { %v2827_v36 = vmul.f32 %v2811_v1, %v5778_v57  ;;  %v2744_v52 = vpop.f32.mrf.mxu2 }
 0xf8b   :  { %v2840_v53 = vmul.f32 %v2824_v0, %v5775_v56  ;;  %v5790_v35 = vadd.f32 %v2744_v52, %v5781_v44  ;;  %v2763_v48 = vpop.f32.mrf.mxu3 }
 0xf8c   :  { %v2843_v12 = vmul.f32 %v2827_v36, %v5778_v57  ;;  %v5794_v60 = vadd.f32 %v2763_v48, %v5784_v47  ;;  %v2727_v50 = vpop.f32.mrf.mxu1 }
 0xf8d   :  { %v2856_v6 = vadd.f32 %v2840_v53, %v5775_v56  ;;  %v2809_v13 = vmul.f32 0.044715, %v5790_v35  ;;  %v5799_v11 = vadd.f32 %v2727_v50, %v5770_v32  ;;  %v2784_v62 = vpop.f32.mrf.mxu0  ;;  %v5828_v5 = vmul.f32 0.5, %v5790_v35 }
 0xf8e   :  { %v2859_v27 = vadd.f32 %v2843_v12, %v5778_v57  ;;  %v2810_v3 = vmul.f32 0.044715, %v5794_v60  ;;  %v5804_v51 = vadd.f32 %v2784_v62, %v5772_v17  ;;  %v5831_v53 = vmul.f32 0.5, %v5794_v60 }
 0xf8f   :  { %v2872_v42 = vmul.f32 0.7978846, %v2856_v6  ;;  %v2825_v8 = vmul.f32 %v2809_v13, %v5790_v35  ;;  %v2812_v31 = vmul.f32 0.044715, %v5799_v11 }
 0xf90   :  { %v2875_v20 = vmul.f32 0.7978846, %v2859_v27  ;;  %v2826_v21 = vmul.f32 %v2810_v3, %v5794_v60  ;;  %v2815_v23 = vmul.f32 0.044715, %v5804_v51  ;;  %v2796_v3 = vmul.f32 0.5, %v5799_v11 }
 0xf91   :  { %5001 = vtanh.f32 %v2872_v42  ;;  %v2841_v40 = vmul.f32 %v2825_v8, %v5790_v35  ;;  %v2828_v34 = vmul.f32 %v2812_v31, %v5799_v11  ;;  %v2799_v15 = vmul.f32 0.5, %v5804_v51 }
 0xf92   :  { %5003 = vtanh.f32 %v2875_v20  ;;  %v2842_v55 = vmul.f32 %v2826_v21, %v5794_v60  ;;  %v2831_v59 = vmul.f32 %v2815_v23, %v5804_v51  ;;  %v2746_v18 = vpop.f32.mrf.mxu2 }
 0xf93   :  { %v2857_v22 = vadd.f32 %v2841_v40, %v5790_v35  ;;  %v2844_v54 = vmul.f32 %v2828_v34, %v5799_v11  ;;  %v2747_v28 = vadd.f32 %v2746_v18, %v5781_v44  ;;  %v2765_v38 = vpop.f32.mrf.mxu3 }
 0xf94   :  { %v2858_v46 = vadd.f32 %v2842_v55, %v5794_v60  ;;  %v2847_v2 = vmul.f32 %v2831_v59, %v5804_v51  ;;  %v2766_v24 = vadd.f32 %v2765_v38, %v5784_v47  ;;  %v2730_v25 = vpop.f32.mrf.mxu1 }
 0xf95   :  { %v2873_v37 = vmul.f32 0.7978846, %v2857_v22  ;;  %v2860_v41 = vadd.f32 %v2844_v54, %v5799_v11  ;;  %v2813_v43 = vmul.f32 0.044715, %v2747_v28  ;;  %v2787_v39 = vpop.f32.mrf.mxu0  ;;  %v5825_v52 = vadd.f32 %v2730_v25, %v5770_v32 }
 0xf96   :  { %v2874_v14 = vmul.f32 0.7978846, %v2858_v46  ;;  %v2863_v1 = vadd.f32 %v2847_v2, %v5804_v51  ;;  %v2814_v33 = vmul.f32 0.044715, %v2766_v24  ;;  %v5835_v26 = vadd.f32 %v2787_v39, %v5772_v17 }
 0xf97   :  { %v5002_v49 = vpop.eup %5001  ;;  %5005 = vtanh.f32 %v2873_v37  ;;  %v2876_v0 = vmul.f32 0.7978846, %v2860_v41  ;;  %v2829_v36 = vmul.f32 %v2813_v43, %v2747_v28  ;;  %v2816_v12 = vmul.f32 0.044715, %v5825_v52 }
 0xf98   :  { %v5004_v56 = vpop.eup %5003  ;;  %5007 = vtanh.f32 %v2874_v14  ;;  %v2879_v58 = vmul.f32 0.7978846, %v2863_v1  ;;  %v2830_v57 = vmul.f32 %v2814_v33, %v2766_v24  ;;  %v2904_v50 = vadd.f32 1.0, %v5002_v49 }
 0xf99   :  { %5009 = vtanh.f32 %v2876_v0  ;;  %v2845_v48 = vmul.f32 %v2829_v36, %v2747_v28  ;;  %v2907_v13 = vadd.f32 1.0, %v5004_v56  ;;  %v2832_v62 = vmul.f32 %v2816_v12, %v5825_v52 }
 0xf9a   :  { %5011 = vtanh.f32 %v2879_v58  ;;  %v2846_v4 = vmul.f32 %v2830_v57, %v2766_v24  ;;  %v2749_v6 = vpop.f32.mrf.mxu2  ;;  %v2797_v7 = vmul.f32 0.5, %v2747_v28  ;;  %v2819_v21 = vmul.f32 0.044715, %v5835_v26 }
 0xf9b   :  { %v2861_v35 = vadd.f32 %v2845_v48, %v2747_v28  ;;  %v5839_v27 = vadd.f32 %v2749_v6, %v5781_v44  ;;  %v2768_v60 = vpop.f32.mrf.mxu3  ;;  %v2798_v59 = vmul.f32 0.5, %v2766_v24  ;;  %v2920_v11 = vmul.f32 %v2904_v50, %v2792_v16 }
 0xf9c   :  { %v2862_v42 = vadd.f32 %v2846_v4, %v2766_v24  ;;  %v2732_v8 = vpop.f32.mrf.mxu1  ;;  %v5845_v23 = vadd.f32 %v2768_v60, %v5784_v47  ;;  %v2848_v51 = vmul.f32 %v2832_v62, %v5825_v52  ;;  %v2923_v54 = vmul.f32 %v2907_v13, %v2795_v45 }
 0xf9d   :  { %v5006_v31 = vpop.eup %5005  ;;  %v2877_v20 = vmul.f32 0.7978846, %v2861_v35  ;;  %v5848_v40 = vadd.f32 %v2732_v8, %v5770_v32  ;;  %v2789_v34 = vpop.f32.mrf.mxu0  ;;  %v2817_v30 = vmul.f32 0.044715, %v5839_v27  ;;  %v2835_v24 = vmul.f32 %v2819_v21, %v5835_v26 }
 0xf9e   :  { %v5008_v55 = vpop.eup %5007  ;;  %v2878_v18 = vmul.f32 0.7978846, %v2862_v42  ;;  %v2905_v38 = vadd.f32 1.0, %v5006_v31  ;;  %v5854_v32 = vadd.f32 %v2789_v34, %v5772_v17  ;;  %v2818_v25 = vmul.f32 0.044715, %v5845_v23 }
 0xf9f   :  { %v5010_v9 = vpop.eup %5009  ;;  %5013 = vtanh.f32 %v2877_v20  ;;  %v2820_v22 = vmul.f32 0.044715, %v5848_v40  ;;  %v2906_v37 = vadd.f32 1.0, %v5008_v55  ;;  %v2864_v45 = vadd.f32 %v2848_v51, %v5825_v52 }
 0xfa0   :  { %v5012_v28 = vpop.eup %5011  ;;  %v2908_v46 = vadd.f32 1.0, %v5010_v9  ;;  %5015 = vtanh.f32 %v2878_v18  ;;  %v2823_v41 = vmul.f32 0.044715, %v5854_v32  ;;  %v2833_v14 = vmul.f32 %v2817_v30, %v5839_v27 }
 0xfa1   :  { %v2911_v2 = vadd.f32 1.0, %v5012_v28  ;;  %v2836_v16 = vmul.f32 %v2820_v22, %v5848_v40  ;;  %v2880_v58 = vmul.f32 0.7978846, %v2864_v45  ;;  %v2834_v48 = vmul.f32 %v2818_v25, %v5845_v23 }
 0xfa2   :  { %v2751_v43 = vpop.f32.mrf.mxu2  ;;  %v2924_v39 = vmul.f32 %v2908_v46, %v2796_v3  ;;  %v2839_v0 = vmul.f32 %v2823_v41, %v5854_v32  ;;  %v2851_v35 = vmul.f32 %v2835_v24, %v5835_v26  ;;  %v2922_v8 = vmul.f32 %v2906_v37, %v5831_v53 }
 0xfa3   :  { %v5863_v1 = vadd.f32 %v2751_v43, %v5781_v44  ;;  %v2770_v17 = vpop.f32.mrf.mxu3  ;;  %v2927_v33 = vmul.f32 %v2911_v2, %v2799_v15  ;;  %v2852_v49 = vmul.f32 %v2836_v16, %v5848_v40  ;;  %5017 = vtanh.f32 %v2880_v58 }
 0xfa4   :  { %v5868_v36 = vadd.f32 %v2770_v17, %v5784_v47  ;;  %v2936_v56 = vpack.c.bf16 %v2924_v39, %v2920_v11  ;;  %v2855_v3 = vmul.f32 %v2839_v0, %v5854_v32  ;;  %v2921_v15 = vmul.f32 %v2905_v38, %v5828_v5 }
 0xfa5   :  { %v5014_v57 = vpop.eup %5013  ;;  %v2821_v12 = vmul.f32 0.044715, %v5863_v1  ;;  %v2939_v50 = vpack.c.bf16 %v2927_v33, %v2923_v54  ;;  %v2868_v44 = vadd.f32 %v2852_v49, %v5848_v40  ;;  %v2867_v31 = vadd.f32 %v2851_v35, %v5835_v26 }
 0xfa6   :  { %v5016_v4 = vpop.eup %5015  ;;  %v2909_v6 = vadd.f32 1.0, %v5014_v57  ;;  %v2822_v13 = vmul.f32 0.044715, %v5868_v36  ;;  %3210 = vmatmul.bf16.vlgmr.msrb.gmra.mxu1 %v2936_v56  ;;  %v2871_v34 = vadd.f32 %v2855_v3, %v5854_v32  ;;  %v2849_v11 = vmul.f32 %v2833_v14, %v5839_v27 }
 0xfa7   :  { %v2910_v47 = vadd.f32 1.0, %v5016_v4  ;;  %v2837_v62 = vmul.f32 %v2821_v12, %v5863_v1  ;;  %3267 = vmatmul.bf16.vlgmr.msra.gmra.mxu0 %v2939_v50  ;;  %v2884_v60 = vmul.f32 0.7978846, %v2868_v44  ;;  %v2883_v18 = vmul.f32 0.7978846, %v2867_v31 }
 0xfa8   :  { %v2925_v42 = vmul.f32 %v2909_v6, %v2797_v7  ;;  %v2838_v20 = vmul.f32 %v2822_v13, %v5868_v36  ;;  %v2887_v30 = vmul.f32 0.7978846, %v2871_v34  ;;  %v2865_v53 = vadd.f32 %v2849_v11, %v5839_v27 }
 0xfa9   :  { %v2926_v21 = vmul.f32 %v2910_v47, %v2798_v59  ;;  %5019 = vtanh.f32 %v2884_v60  ;;  %v2853_v51 = vmul.f32 %v2837_v62, %v5863_v1  ;;  %v5018_v5 = vpop.eup %5017  ;;  %v2850_v59 = vmul.f32 %v2834_v48, %v5845_v23 }
 0xfaa   :  { %v2937_v55 = vpack.c.bf16 %v2925_v42, %v2921_v15  ;;  %5021 = vtanh.f32 %v2883_v18  ;;  %v2854_v22 = vmul.f32 %v2838_v20, %v5868_v36  ;;  %v2912_v54 = vadd.f32 1.0, %v5018_v5 }
 0xfab   :  { %v2938_v9 = vpack.c.bf16 %v2926_v21, %v2922_v8  ;;  %v2869_v7 = vadd.f32 %v2853_v51, %v5863_v1  ;;  %5023 = vtanh.f32 %v2887_v30  ;;  %v2881_v28 = vmul.f32 0.7978846, %v2865_v53 }
 0xfac   :  { %3229 = vmatmul.bf16.vlgmr.msra.gmra.mxu2 %v2937_v55  ;;  %v2866_v46 = vadd.f32 %v2850_v59, %v5845_v23  ;;  %v2800_v24 = vmul.f32 0.5, %v5825_v52  ;;  %v2870_v25 = vadd.f32 %v2854_v22, %v5868_v36  ;;  %v2804_v16 = vmul.f32 0.5, %v5848_v40 }
 0xfad   :  { %3248 = vmatmul.bf16.vlgmr.msrb.gmra.mxu3 %v2938_v9  ;;  %v2885_v38 = vmul.f32 0.7978846, %v2869_v7  ;;  %5025 = vtanh.f32 %v2881_v28  ;;  %v2803_v0 = vmul.f32 0.5, %v5835_v26  ;;  %v2807_v52 = vmul.f32 0.5, %v5854_v32 }
 0xfae   :  { %v2882_v41 = vmul.f32 0.7978846, %v2866_v46  ;;  %v2886_v43 = vmul.f32 0.7978846, %v2870_v25  ;;  %v2928_v45 = vmul.f32 %v2912_v54, %v2800_v24  ;;  %v2801_v4 = vmul.f32 0.5, %v5839_v27 }
 0xfaf   :  { %v5020_v2 = vpop.eup %5019  ;;  %5027 = vtanh.f32 %v2885_v38  ;;  %v2805_v6 = vmul.f32 0.5, %v5863_v1  ;;  %v2802_v47 = vmul.f32 0.5, %v5845_v23  ;;  %v2806_v60 = vmul.f32 0.5, %v5868_v36  ;;  %v5901_v1 = vld [vmem:[%s5963_s7 + $0x10] sm:$0xff] }
 0xfb0   :  { %v2916_v37 = vadd.f32 1.0, %v5020_v2  ;;  %v5022_v39 = vpop.eup %5021  ;;  %5029 = vtanh.f32 %v2882_v41  ;;  %v3009_v23 = vperm.slane %v5901_v1, 4 }
 0xfb1   :  { %v5024_v17 = vpop.eup %5023  ;;  %v2915_v33 = vadd.f32 1.0, %v5022_v39  ;;  %5031 = vtanh.f32 %v2886_v43 }
 0xfb2   :  { %v2932_v14 = vmul.f32 %v2916_v37, %v2804_v16  ;;  %v2919_v56 = vadd.f32 1.0, %v5024_v17 }
 0xfb3   :  { %v5026_v58 = vpop.eup %5025  ;;  %v2931_v40 = vmul.f32 %v2915_v33, %v2803_v0 }
 0xfb4   :  { %v2940_v49 = vpack.c.bf16 %v2932_v14, %v2928_v45  ;;  %v2935_v57 = vmul.f32 %v2919_v56, %v2807_v52  ;;  %v2913_v12 = vadd.f32 1.0, %v5026_v58 }
 0xfb5   :  { %v5028_v48 = vpop.eup %5027 }
 0xfb6   :  { %3215 = vmatmul.bf16.gmra.mxu1 %v2940_v49  ;;  %v5030_v50 = vpop.eup %5029  ;;  %v2943_v44 = vpack.c.bf16 %v2935_v57, %v2931_v40  ;;  %v2917_v13 = vadd.f32 1.0, %v5028_v48  ;;  %v2929_v32 = vmul.f32 %v2913_v12, %v2801_v4 }
 0xfb7   :  { %v5032_v35 = vpop.eup %5031  ;;  %v2914_v26 = vadd.f32 1.0, %v5030_v50 }
 0xfb8   :  { %3272 = vmatmul.bf16.gmra.mxu0 %v2943_v44  ;;  %v2933_v62 = vmul.f32 %v2917_v13, %v2805_v6  ;;  %v2918_v3 = vadd.f32 1.0, %v5032_v35 }
 0xfb9   :  { %v2930_v42 = vmul.f32 %v2914_v26, %v2802_v47  ;;  %v4591_v26 = vld [vmem:[#allocation11 + $0xe0] sm:$0xf] }
 0xfba   :  { %v2941_v15 = vpack.c.bf16 %v2933_v62, %v2929_v32  ;;  %v2934_v8 = vmul.f32 %v2918_v3, %v2806_v60  ;;  %v4827_v32 = vld [vmem:[#allocation11 + $0xec] sm:$0xf0]  ;;  %v4825_v62 = vld [vmem:[#allocation11 + $0xe4] sm:$0xf]  ;;  %v4593_v3 = vld [vmem:[#allocation11 + $0xf0] sm:$0xf0] }
 0xfbb   :  { %v4592_v60 = vor.u32 %v4827_v32, %v4591_v26  ;;  %v4812_v26 = vld [vmem:[#allocation11 + $0x74] sm:$0xf0]  ;;  %v4810_v32 = vld [vmem:[#allocation11 + $0x6c] sm:$0xf] }
 0xfbc   :  { %3234 = vmatmul.bf16.gmra.mxu2 %v2941_v15  ;;  %v2942_v31 = vpack.c.bf16 %v2934_v8, %v2930_v42  ;;  %v4599_v15 = vld [vmem:[#allocation11 + $0xe8] sm:$0xf]  ;;  %v4828_v42 = vld [vmem:[#allocation11 + $0xf4] sm:$0xf0]  ;;  %v4596_v8 = vor.u32 %v4825_v62, %v4593_v3  ;;  %v4537_v62 = vld [vmem:[#allocation11 + $0x78] sm:$0xf0] }
 0xfbd   :  { %3576 = vmatpush.bf16.msra.mxu1 %v4592_v60  ;;  %v4540_v3 = vor.u32 %v4810_v32, %v4537_v62 }
 0xfbe   :  { %3253 = vmatmul.bf16.gmra.mxu3 %v2942_v31  ;;  %v4600_v31 = vor.u32 %v4828_v42, %v4599_v15  ;;  %3595 = vmatpush.bf16.msrb.mxu2 %v4596_v8  ;;  %v4511_v15 = vld [vmem:[#allocation11 + $0x40] sm:$0xf]  ;;  %v4807_v42 = vld [vmem:[#allocation11 + $0x4c] sm:$0xf0]  ;;  %v4805_v8 = vld [vmem:[#allocation11 + $0x44] sm:$0xf] }
 0xfc0   :  { %3614 = vmatpush.bf16.msra.mxu3 %v4600_v31 }
0x1023   :  { %v3211_v27 = vpop.f32.mrf.mxu1 }
0x1024   :  { %v3212_v20 = vadd.f32 %v3211_v27, %v3009_v23  ;;  %v3268_v21 = vpop.f32.mrf.mxu0  ;;  %v4826_v27 = vld [vmem:[#allocation11 + $0xec] sm:$0xf] }
0x102b   :  { %v3213_v18 = vpop.f32.mrf.mxu1 }
0x102c   :  { %v3214_v9 = vadd.f32 %v3213_v18, %v3009_v23  ;;  %v3270_v7 = vpop.f32.mrf.mxu0  ;;  %v4577_v18 = vld [vmem:[#allocation11 + $0xd0] sm:$0xf0] }
0x102f   :  { %v3230_v34 = vpop.f32.mrf.mxu2 }
0x1030   :  { %v3231_v55 = vadd.f32 %v3230_v34, %v3212_v20  ;;  %v3249_v36 = vpop.f32.mrf.mxu3  ;;  %v4823_v34 = vld [vmem:[#allocation11 + $0xcc] sm:$0xf0] }
0x1032   :  { %v3250_v11 = vadd.f32 %v3249_v36, %v3231_v55  ;;  %v4821_v55 = vld [vmem:[#allocation11 + $0xc4] sm:$0xf] }
0x1033   :  { %v3216_v54 = vpop.f32.mrf.mxu1 }
0x1034   :  { %v3269_v51 = vadd.f32 %v3268_v21, %v3250_v11  ;;  %v3217_v46 = vadd.f32 %v3216_v54, %v3009_v23  ;;  %v4575_v21 = vld [vmem:[#allocation11 + $0xc0] sm:$0xf]  ;;  %v4583_v11 = vld [vmem:[#allocation11 + $0xc8] sm:$0xf]  ;;  %v4817_v54 = vld [vmem:[#allocation11 + $0xa4] sm:$0xf] }
0x1035   :  { %v3273_v25 = vpop.f32.mrf.mxu0  ;;  %v4576_v36 = vor.u32 %v4823_v34, %v4575_v21  ;;  %v4808_v21 = vld [vmem:[#allocation11 + $0x54] sm:$0xf0] }
0x1036   :  { %v3278_v30 = vadd.f32 %v3269_v51, %v5753_v63  ;;  %v4824_v51 = vld [vmem:[#allocation11 + $0xd4] sm:$0xf0] }
0x1037   :  { %v3232_v5 = vpop.f32.mrf.mxu2  ;;  %3577 = vmatpush.bf16.msra.mxu1 %v4576_v36 }
0x1038   :  { %v3233_v53 = vadd.f32 %v3232_v5, %v3214_v9  ;;  %3282 = vadd.xlane.f32.xlu1 %v3278_v30  ;;  %v3251_v59 = vpop.f32.mrf.mxu3  ;;  %v4580_v9 = vor.u32 %v4821_v55, %v4577_v18  ;;  %v4822_v5 = vld [vmem:[#allocation11 + $0xcc] sm:$0xf] }
0x1039   :  { %v4806_v18 = vld [vmem:[#allocation11 + $0x4c] sm:$0xf] }
0x103a   :  { %v3252_v22 = vadd.f32 %v3251_v59, %v3233_v53  ;;  %v4585_v53 = vld [vmem:[#allocation11 + $0xd8] sm:$0xf0]  ;;  %3596 = vmatpush.bf16.msrb.mxu2 %v4580_v9  ;;  %v4559_v59 = vld [vmem:[#allocation11 + $0xa0] sm:$0xf] }
0x103b   :  { %v3218_v41 = vpop.f32.mrf.mxu1 }
0x103c   :  { %v3271_v28 = vadd.f32 %v3270_v7, %v3252_v22  ;;  %v3219_v63 = vadd.f32 %v3218_v41, %v3009_v23  ;;  %v4601_v23 = vld [vmem:[#allocation11 + $0xf8] sm:$0xf0]  ;;  %v4588_v7 = vor.u32 %v4822_v5, %v4585_v53  ;;  %v4819_v22 = vld [vmem:[#allocation11 + $0xac] sm:$0xf0]  ;;  %v4495_v5 = vld [vmem:[#allocation11 + $0x20] sm:$0xf] }
0x103d   :  { %v3275_v49 = vpop.f32.mrf.mxu0  ;;  %v4604_v20 = vor.u32 %v4826_v27, %v4601_v23  ;;  %v4512_v27 = vor.u32 %v4807_v42, %v4511_v15  ;;  %v4513_v23 = vld [vmem:[#allocation11 + $0x50] sm:$0xf0]  ;;  %v4803_v53 = vld [vmem:[#allocation11 + $0x2c] sm:$0xf0] }
0x103e   :  { %v3279_v38 = vadd.f32 %v3271_v28, %v5755_v61  ;;  %v4560_v28 = vor.u32 %v4819_v22, %v4559_v59  ;;  %v4516_v55 = vor.u32 %v4805_v8, %v4513_v23  ;;  %v4496_v59 = vor.u32 %v4803_v53, %v4495_v5  ;;  %v4801_v22 = vld [vmem:[#allocation11 + $0x24] sm:$0xf]  ;;  %v4870_v23 = vld [vmem:[%s5963_s7 + $0x18] ss:$0 sm:$0xff] }
0x103f   :  { %v3235_v2 = vpop.f32.mrf.mxu2  ;;  %3633 = vmatpush.bf16.msrb.mxu0 %v4604_v20  ;;  %v4519_v20 = vld [vmem:[#allocation11 + $0x48] sm:$0xf] }
0x1040   :  { %3284 = vadd.xlane.f32.xlu0 %v3279_v38  ;;  %v3236_v24 = vadd.f32 %v3235_v2, %v3217_v46  ;;  %v4567_v46 = vld [vmem:[#allocation11 + $0xa8] sm:$0xf]  ;;  %v4820_v2 = vld [vmem:[#allocation11 + $0xb4] sm:$0xf0]  ;;  %3578 = vmatpush.bf16.msra.mxu1 %v4560_v28  ;;  %v4520_v36 = vor.u32 %v4808_v21, %v4519_v20 }
0x1041   :  { %v3254_v16 = vpop.f32.mrf.mxu3  ;;  %v4503_v28 = vld [vmem:[#allocation11 + $0x28] sm:$0xf] }
0x1042   :  { %v3255_v37 = vadd.f32 %v3254_v16, %v3236_v24  ;;  %v4818_v16 = vld [vmem:[#allocation11 + $0xac] sm:$0xf] }
0x1043   :  { %3634 = vmatpush.bf16.msrb.mxu0 %v4588_v7 }
0x1044   :  { %v3274_v43 = vadd.f32 %v3273_v25, %v3255_v37  ;;  %v4568_v25 = vor.u32 %v4820_v2, %v4567_v46  ;;  %v4569_v37 = vld [vmem:[#allocation11 + $0xb8] sm:$0xf0]  ;;  %v4804_v46 = vld [vmem:[#allocation11 + $0x34] sm:$0xf0]  ;;  %v4802_v2 = vld [vmem:[#allocation11 + $0x2c] sm:$0xf] }
0x1045   :  { %v4572_v41 = vor.u32 %v4818_v16, %v4569_v37  ;;  %v4505_v16 = vld [vmem:[#allocation11 + $0x38] sm:$0xf0] }
0x1046   :  { %v3280_v39 = vadd.f32 %v3274_v43, %v5761_v29  ;;  %v4543_v43 = vld [vmem:[#allocation11 + $0x80] sm:$0xf]  ;;  %v4508_v37 = vor.u32 %v4802_v2, %v4505_v16 }
0x1047   :  { %v3237_v45 = vpop.f32.mrf.mxu2  ;;  %3635 = vmatpush.bf16.msrb.mxu0 %v4572_v41  ;;  %v4479_v41 = vld [vmem:[#allocation11] sm:$0xf] }
0x1048   :  { %v3238_v14 = vadd.f32 %v3237_v45, %v3219_v63  ;;  %3286 = vadd.xlane.f32.xlu1 %v3280_v39  ;;  %v4815_v63 = vld [vmem:[#allocation11 + $0x8c] sm:$0xf0] }
0x1049   :  { %v3256_v17 = vpop.f32.mrf.mxu3 }
0x104a   :  { %v3257_v33 = vadd.f32 %v3256_v17, %v3238_v14  ;;  %v4544_v14 = vor.u32 %v4815_v63, %v4543_v43  ;;  %v4545_v17 = vld [vmem:[#allocation11 + $0x90] sm:$0xf0]  ;;  %v4799_v43 = vld [vmem:[#allocation11 + $0xc] sm:$0xf0]  ;;  %v4797_v63 = vld [vmem:[#allocation11 + $0x4] sm:$0xf] }
0x104c   :  { %v3276_v0 = vadd.f32 %v3275_v49, %v3257_v33  ;;  %v4551_v33 = vld [vmem:[#allocation11 + $0x88] sm:$0xf]  ;;  %v4816_v49 = vld [vmem:[#allocation11 + $0x94] sm:$0xf0]  ;;  %3579 = vmatpush.bf16.msra.mxu1 %v4544_v14  ;;  %v4481_v14 = vld [vmem:[#allocation11 + $0x10] sm:$0xf0] }
0x104e   :  { %v3281_v61 = vadd.f32 %v3276_v0, %v5763_v19 }
0x1050   :  { %3288 = vadd.xlane.f32.xlu2 %v3281_v61 }
0x10ab   :  { %v3283_v52 = vpop.xlane.xlu1 %3282 }
0x10ac   :  { %v3290_v56 = vmul.f32 %v3283_v52, %v5349_v10  ;;  %v4552_v52 = vor.u32 %v4816_v49, %v4551_v33  ;;  %v4484_v33 = vor.u32 %v4797_v63, %v4481_v14  ;;  %v4800_v49 = vld [vmem:[#allocation11 + $0x14] sm:$0xf0] }
0x10ae   :  { %v5909_v58 = vsub.f32 %v3278_v30, %v3290_v56  ;;  %v4584_v30 = vor.u32 %v4824_v51, %v4583_v11  ;;  %v4814_v56 = vld [vmem:[#allocation11 + $0x8c] sm:$0xf]  ;;  %v4521_v11 = vld [vmem:[#allocation11 + $0x58] sm:$0xf0] }
0x10af   :  { %v4524_v51 = vor.u32 %v4806_v18, %v4521_v11 }
0x10b0   :  { %v3298_v40 = vmul.f32 %v5909_v58, %v5909_v58  ;;  %3615 = vmatpush.bf16.msra.mxu3 %v4584_v30 }
0x10b2   :  { %3302 = vadd.xlane.f32.xlu0 %v3298_v40  ;;  %v4553_v40 = vld [vmem:[#allocation11 + $0x98] sm:$0xf0] }
0x10b3   :  { %v3285_v29 = vpop.xlane.xlu0 %3284 }
0x10b4   :  { %v3291_v57 = vmul.f32 %v3285_v29, %v5349_v10  ;;  %3616 = vmatpush.bf16.msra.mxu3 %v4568_v25  ;;  %v4556_v29 = vor.u32 %v4814_v56, %v4553_v40  ;;  %v4504_v25 = vor.u32 %v4804_v46, %v4503_v28 }
0x10b6   :  { %v5914_v48 = vsub.f32 %v3279_v38, %v3291_v57  ;;  %v4561_v38 = vld [vmem:[#allocation11 + $0xb0] sm:$0xf0]  ;;  %3636 = vmatpush.bf16.msrb.mxu0 %v4556_v29 }
0x10b7   :  { %v4564_v24 = vor.u32 %v4817_v54, %v4561_v38  ;;  %v4497_v54 = vld [vmem:[#allocation11 + $0x30] sm:$0xf0] }
0x10b8   :  { %v3299_v12 = vmul.f32 %v5914_v48, %v5914_v48  ;;  %3617 = vmatpush.bf16.msra.mxu3 %v4552_v52  ;;  %v4500_v38 = vor.u32 %v4801_v22, %v4497_v54 }
0x10b9   :  { %3597 = vmatpush.bf16.msrb.mxu2 %v4564_v24 }
0x10ba   :  { %3304 = vadd.xlane.f32.xlu1 %v3299_v12  ;;  %v4527_v12 = vld [vmem:[#allocation11 + $0x60] sm:$0xf]  ;;  %3637 = vmatpush.bf16.msrb.mxu0 %v4540_v3 }
0x10bb   :  { %v3287_v19 = vpop.xlane.xlu1 %3286 }
0x10bc   :  { %v3292_v50 = vmul.f32 %v3287_v19, %v5349_v10  ;;  %v4811_v19 = vld [vmem:[#allocation11 + $0x6c] sm:$0xf0] }
0x10be   :  { %v5919_v44 = vsub.f32 %v3280_v39, %v3292_v50  ;;  %v4813_v39 = vld [vmem:[#allocation11 + $0x84] sm:$0xf]  ;;  %v4528_v50 = vor.u32 %v4811_v19, %v4527_v12  ;;  %3638 = vmatpush.bf16.msrb.mxu0 %v4524_v51 }
0x10c0   :  { %v3300_v4 = vmul.f32 %v5919_v44, %v5919_v44  ;;  %3580 = vmatpush.bf16.msra.mxu1 %v4528_v50 }
0x10c2   :  { %3306 = vadd.xlane.f32.xlu2 %v3300_v4  ;;  %v4809_v4 = vld [vmem:[#allocation11 + $0x64] sm:$0xf]  ;;  %3639 = vmatpush.bf16.msrb.mxu0 %v4508_v37 }
0x10c3   :  { %v3289_v6 = vpop.xlane.xlu2 %3288 }
0x10c4   :  { %v3293_v13 = vmul.f32 %v3289_v6, %v5349_v10  ;;  %v4529_v6 = vld [vmem:[#allocation11 + $0x70] sm:$0xf0]  ;;  %3581 = vmatpush.bf16.msra.mxu1 %v4512_v27 }
0x10c6   :  { %v5924_v35 = vsub.f32 %v3281_v61, %v3293_v13  ;;  %v4548_v61 = vor.u32 %v4813_v39, %v4545_v17  ;;  %v4535_v13 = vld [vmem:[#allocation11 + $0x68] sm:$0xf] }
0x10c7   :  { %v4536_v60 = vor.u32 %v4812_v26, %v4535_v13  ;;  %v4487_v17 = vld [vmem:[#allocation11 + $0x8] sm:$0xf] }
0x10c8   :  { %v3301_v47 = vmul.f32 %v5924_v35, %v5924_v35  ;;  %3598 = vmatpush.bf16.msrb.mxu2 %v4548_v61  ;;  %3582 = vmatpush.bf16.msra.mxu1 %v4496_v59  ;;  %v4489_v61 = vld [vmem:[#allocation11 + $0x18] sm:$0xf0]  ;;  %v4488_v40 = vor.u32 %v4800_v49, %v4487_v17 }
0x10c9   :  { %3618 = vmatpush.bf16.msra.mxu3 %v4536_v60  ;;  %v3362_v60 = vperm.slane %v5901_v1, 7 }
0x10ca   :  { %3308 = vadd.xlane.f32.xlu0 %v3301_v47  ;;  %v4532_v47 = vor.u32 %v4809_v4, %v4529_v6 }
0x10cc   :  { %3599 = vmatpush.bf16.msrb.mxu2 %v4532_v47 }
0x10cd   :  { %3619 = vmatpush.bf16.msra.mxu3 %v4520_v36 }
0x10d0   :  { %3600 = vmatpush.bf16.msrb.mxu2 %v4516_v55 }
0x10d1   :  { %3620 = vmatpush.bf16.msra.mxu3 %v4504_v25  ;;  %v3406_v25 = vld [vmem:[%s5966_s10] sm:$0xf]  ;;  %s5240_s10 = smov [#allocation13]  }
0x10d2   :  { %v3411_v16 = vperm.slane %v3406_v25, 3  ;;  %s3672_s9 = sshll.u32 %s5240_s10, 4  ;;  %s3673_s9 = int_to_ptr.vmem [resolvable:$true] %s3672_s9 }
0x10d4   :  { %3601 = vmatpush.bf16.msrb.mxu2 %v4500_v38 }
0x10d5   :  { %3621 = vmatpush.bf16.msra.mxu3 %v4488_v40 }
0x10d8   :  { %3602 = vmatpush.bf16.msrb.mxu2 %v4484_v33 }
0x1125   :  { %v3303_v45 = vpop.xlane.xlu0 %3302 }
0x1126   :  { %v3310_v0 = vmul.f32 %v3303_v45, %v5349_v10  ;;  %v4480_v45 = vor.u32 %v4799_v43, %v4479_v41 }
0x1128   :  { %v5929_v57 = vadd.f32 1e-12, %v3310_v0  ;;  %v4798_v0 = vld [vmem:[#allocation11 + $0xc] sm:$0xf]  ;;  %3583 = vmatpush.bf16.msra.mxu1 %v4480_v45 }
0x1129   :  { %v4492_v29 = vor.u32 %v4798_v0, %v4489_v61 }
0x112a   :  { %5033 = vrsqrt.f32 %v5929_v57  ;;  %vm3324_vm6 = vweird.f32 %v5929_v57 }
0x112b   :  { %3640 = vmatpush.bf16.msrb.mxu0 %v4492_v29 }
0x112d   :  { %v3305_v31 = vpop.xlane.xlu1 %3304 }
0x112e   :  { %v3311_v34 = vmul.f32 %v3305_v31, %v5349_v10 }
0x1130   :  { %v5034_v9 = vpop.eup %5033  ;;  %v5933_v30 = vadd.f32 1e-12, %v3311_v34 }
0x1131   :  { %v3319_v7 = vmul.f32 %v5034_v9, %v5929_v57  ;;  %vm3325_vm5 = vweird.f32 %v5034_v9 }
0x1132   :  { %5035 = vrsqrt.f32 %v5933_v30  ;;  %vm3326_vm7 = vmor %vm3324_vm6, %vm3325_vm5  ;;  %vm3334_vm13 = vweird.f32 %v5933_v30 }
0x1133   :  { %v3320_v24 = vmul.f32 %v5034_v9, %v3319_v7 }
0x1135   :  { %v3321_v39 = vmul.f32 0.5, %v3320_v24  ;;  %v3307_v56 = vpop.xlane.xlu2 %3306 }
0x1136   :  { %v3312_v19 = vmul.f32 %v3307_v56, %v5349_v10 }
0x1137   :  { %v3322_v52 = vsub.f32 1.5, %v3321_v39  ;;  %v3410_v39 = vperm.slane %v3406_v25, 2 }
0x1138   :  { %v5036_v12 = vpop.eup %5035  ;;  %v3316_v6 = vadd.f32 1e-12, %v3312_v19 }
0x1139   :  { %v3323_v50 = vmul.f32 %v5034_v9, %v3322_v52  ;;  %v3329_v4 = vmul.f32 %v5036_v12, %v5933_v30  ;;  %vm3335_vm8 = vweird.f32 %v5036_v12 }
0x113a   :  { %5037 = vrsqrt.f32 %v3316_v6  ;;  %vm3336_vm14 = vmor %vm3334_vm13, %vm3335_vm8  ;;  %vm3344_vm10 = vweird.f32 %v3316_v6 }
0x113b   :  { %v3330_v13 = vmul.f32 %v5036_v12, %v3329_v4  ;;  %v3327_v47 = vsel %vm3326_vm7, %v5034_v9, %v3323_v50 }
0x113c   :  { %v3358_v3 = vmul.f32 %v3327_v47, %v5909_v58 }
0x113d   :  { %v3331_v26 = vmul.f32 0.5, %v3330_v13  ;;  %v3309_v62 = vpop.xlane.xlu0 %3308 }
0x113e   :  { %v3313_v15 = vmul.f32 %v3309_v62, %v5349_v10  ;;  %v3363_v20 = vmul.f32 %v3362_v60, %v3358_v3 }
0x113f   :  { %v3332_v32 = vsub.f32 1.5, %v3331_v26 }
0x1140   :  { %v5038_v8 = vpop.eup %5037  ;;  %v3317_v57 = vadd.f32 1e-12, %v3313_v15  ;;  %v3368_v10 = vadd.f32 %v4870_v23, %v3363_v20 }
0x1141   :  { %v3333_v42 = vmul.f32 %v5036_v12, %v3332_v32  ;;  %v3339_v27 = vmul.f32 %v5038_v8, %v3316_v6  ;;  %vm3345_vm9 = vweird.f32 %v5038_v8 }
0x1142   :  { %5039 = vrsqrt.f32 %v3317_v57  ;;  %vm3346_vm11 = vmor %vm3344_vm10, %vm3345_vm9  ;;  %vm3354_vm15 = vweird.f32 %v3317_v57 }
0x1143   :  { %v3337_v31 = vsel %vm3336_vm14, %v5036_v12, %v3333_v42  ;;  %v3340_v1 = vmul.f32 %v5038_v8, %v3339_v27 }
0x1144   :  { %v3359_v21 = vmul.f32 %v3337_v31, %v5914_v48 }
0x1145   :  { %v3341_v34 = vmul.f32 0.5, %v3340_v1 }
0x1146   :  { %v3364_v58 = vmul.f32 %v3362_v60, %v3359_v21 }
0x1147   :  { %v3342_v36 = vsub.f32 1.5, %v3341_v34 }
0x1148   :  { %v3369_v55 = vadd.f32 %v4870_v23, %v3364_v58  ;;  %v5040_v18 = vpop.eup %5039 }
0x1149   :  { %v3343_v51 = vmul.f32 %v5038_v8, %v3342_v36  ;;  %v3349_v9 = vmul.f32 %v5040_v18, %v3317_v57  ;;  %vm3355_vm12 = vweird.f32 %v5040_v18 }
0x114a   :  { %v3372_v11 = vpack.c.bf16 %v3369_v55, %v3368_v10  ;;  %vm3356_vm0 = vmor %vm3354_vm15, %vm3355_vm12 }
0x114b   :  { %v3350_v30 = vmul.f32 %v5040_v18, %v3349_v9  ;;  %v3347_v48 = vsel %vm3346_vm11, %v5038_v8, %v3343_v51 }
0x114c   :  { %3584 = vmatmul.bf16.vlgmr.msra.gmra.mxu1 %v3372_v11  ;;  %3603 = vmatmul.bf16.vlgmr.msrb.gmra.mxu2 %v3372_v11  ;;  %v3360_v7 = vmul.f32 %v3347_v48, %v5919_v44  ;;  %v3408_v44 = vperm.slane %v3406_v25, 0 }
0x114d   :  { %3622 = vmatmul.bf16.vlgmr.msra.gmra.mxu3 %v3372_v11  ;;  %3641 = vmatmul.bf16.vlgmr.msrb.gmra.mxu0 %v3372_v11  ;;  %v3351_v5 = vmul.f32 0.5, %v3350_v30 }
0x114e   :  { %v3365_v28 = vmul.f32 %v3362_v60, %v3360_v7 }
0x114f   :  { %v3352_v53 = vsub.f32 1.5, %v3351_v5 }
0x1150   :  { %v3370_v46 = vadd.f32 %v4870_v23, %v3365_v28 }
0x1151   :  { %v3353_v59 = vmul.f32 %v5040_v18, %v3352_v53 }
0x1153   :  { %v3357_v22 = vsel %vm3356_vm0, %v5040_v18, %v3353_v59 }
0x1154   :  { %v3361_v54 = vmul.f32 %v3357_v22, %v5924_v35  ;;  %v3409_v35 = vperm.slane %v3406_v25, 1 }
0x1156   :  { %v3366_v38 = vmul.f32 %v3362_v60, %v3361_v54 }
0x1158   :  { %v3371_v2 = vadd.f32 %v4870_v23, %v3366_v38 }
0x115a   :  { %v3373_v24 = vpack.c.bf16 %v3371_v2, %v3370_v46 }
0x115c   :  { %3589 = vmatmul.bf16.gmra.mxu1 %v3373_v24  ;;  %3608 = vmatmul.bf16.gmra.mxu2 %v3373_v24 }
0x115d   :  { %3627 = vmatmul.bf16.gmra.mxu3 %v3373_v24  ;;  %3646 = vmatmul.bf16.gmra.mxu0 %v3373_v24 }
0x11c9   :  { %v3585_v37 = vpop.f32.mrf.mxu1 }
0x11ca   :  { %v3586_v41 = vadd.f32 %v3585_v37, %v3408_v44  ;;  %v3642_v43 = vpop.f32.mrf.mxu0 }
0x11cb   :  { %v3643_v63 = vadd.f32 %v3642_v43, %v3411_v16 }
0x11cc   :  { %3652 = vst [vmem:[#allocation13] sm:$0xff] %v3586_v41 }
0x11cd   :  { %3655 = vst [vmem:[#allocation13 + $0x18] sm:$0xff] %v3643_v63 }
0x11cf   :  { %v3604_v45 = vpop.f32.mrf.mxu2 }
0x11d0   :  { %v3605_v14 = vadd.f32 %v3604_v45, %v3409_v35  ;;  %v3623_v17 = vpop.f32.mrf.mxu3 }
0x11d1   :  { %v3624_v33 = vadd.f32 %v3623_v17, %v3410_v39  ;;  %v3587_v49 = vpop.f32.mrf.mxu1 }
0x11d2   :  { %3653 = vst [vmem:[#allocation13 + $0x8] sm:$0xff] %v3605_v14  ;;  %v3588_v0 = vadd.f32 %v3587_v49, %v3408_v44  ;;  %v3644_v61 = vpop.f32.mrf.mxu0 }
0x11d3   :  { %3654 = vst [vmem:[#allocation13 + $0x10] sm:$0xff] %v3624_v33  ;;  %v3645_v52 = vadd.f32 %v3644_v61, %v3411_v16 }
0x11d4   :  { %3656 = vst [vmem:[#allocation13 + $0x20] sm:$0xff] %v3588_v0 }
0x11d5   :  { %3659 = vst [vmem:[#allocation13 + $0x38] sm:$0xff] %v3645_v52 }
0x11d7   :  { %v3606_v56 = vpop.f32.mrf.mxu2 }
0x11d8   :  { %v3607_v40 = vadd.f32 %v3606_v56, %v3409_v35  ;;  %v3625_v29 = vpop.f32.mrf.mxu3 }
0x11d9   :  { %v3626_v12 = vadd.f32 %v3625_v29, %v3410_v39  ;;  %v3590_v19 = vpop.f32.mrf.mxu1 }
0x11da   :  { %3657 = vst [vmem:[#allocation13 + $0x28] sm:$0xff] %v3607_v40  ;;  %v3591_v50 = vadd.f32 %v3590_v19, %v3408_v44  ;;  %v3647_v4 = vpop.f32.mrf.mxu0 }
0x11db   :  { %3658 = vst [vmem:[#allocation13 + $0x30] sm:$0xff] %v3626_v12  ;;  %v3648_v6 = vadd.f32 %v3647_v4, %v3411_v16 }
0x11dc   :  { %3660 = vst [vmem:[#allocation13 + $0x40] sm:$0xff] %v3591_v50 }
0x11dd   :  { %3663 = vst [vmem:[#allocation13 + $0x58] sm:$0xff] %v3648_v6 }
0x11df   :  { %v3609_v13 = vpop.f32.mrf.mxu2 }
0x11e0   :  { %v3610_v47 = vadd.f32 %v3609_v13, %v3409_v35  ;;  %v3628_v26 = vpop.f32.mrf.mxu3 }
0x11e1   :  { %v3629_v32 = vadd.f32 %v3628_v26, %v3410_v39  ;;  %v3592_v62 = vpop.f32.mrf.mxu1 }
0x11e2   :  { %3661 = vst [vmem:[#allocation13 + $0x48] sm:$0xff] %v3610_v47  ;;  %v3593_v60 = vadd.f32 %v3592_v62, %v3408_v44  ;;  %v3649_v3 = vpop.f32.mrf.mxu0 }
0x11e3   :  { %3662 = vst [vmem:[#allocation13 + $0x50] sm:$0xff] %v3629_v32  ;;  %v3650_v15 = vadd.f32 %v3649_v3, %v3411_v16 }
0x11e4   :  { %3664 = vst [vmem:[#allocation13 + $0x60] sm:$0xff] %v3593_v60 }
0x11e5   :  { %3667 = vst [vmem:[#allocation13 + $0x78] sm:$0xff] %v3650_v15 }
0x11e7   :  { %v3611_v42 = vpop.f32.mrf.mxu2 }
0x11e8   :  { %v3612_v8 = vadd.f32 %v3611_v42, %v3409_v35  ;;  %v3630_v57 = vpop.f32.mrf.mxu3 }
0x11e9   :  { %v3631_v31 = vadd.f32 %v3630_v57, %v3410_v39 }
0x11ea   :  { %3665 = vst [vmem:[#allocation13 + $0x68] sm:$0xff] %v3612_v8 }
0x11eb   :  { %3666 = vst [vmem:[#allocation13 + $0x70] sm:$0xff] %v3631_v31 }
0x11ec   :  { %3680 = dma.vmem_to_hbm [thread:$0]  %s3673_s9, 2048, %s3675_s29, [#allocation4], %s5241_s30, %s5241_s30, %s5242_s15  }
0x11ed   :  { %5223 = dma.done.wait [#allocation4], 2048  }
0x11ee   :  { %5224 = vsyncadd [#allocation4], 4294965248 }
0x11ef   :  { %3685 = vsyncpa [#allocation3], 1 }
0x11f0   :  { %3686 = vsyncpa [#allocation6], 1 }
0x11f1   :  { %3687 = vsyncpa [#allocation9], 1 }
0x11f2   :  { %3688 = vsyncpa [#allocation12], 1 }
0x11f3   :  { %3689 = vsyncpa [#allocation4], 1 }

</bundles_post_ra>
